<compile_context>
chip_gen: v6e
topology: v6e:2x2x1
jax: 0.10.0
libtpu: 0.0.40
codegen_flags: <defaults>
</compile_context>

<pallas_src>
import functools

import jax
import jax.numpy as jnp
import numpy as np
from jax.experimental import pallas as pl
from jax.experimental.pallas import tpu as pltpu


# ---------------------------------------------------------------------------
# In-kernel helpers
# ---------------------------------------------------------------------------
def _bn_norm_maps(xs, xss, o, ot, cnt):
    """Per-element (mean, 1/std) maps for BatchNorm1d applied to the quirky
    x.reshape(bs, f, n) memory reinterpretation (training-mode batch stats,
    identity affine).  Channel of element (i, j) is (i*f + j) // n.

    xs / xss : (n, f)    sums of x and x*x over the batch dim
    o        : (n, f, C) one-hot channel map
    ot       : (C, n, f) same map, channel-major
    """
    s1 = jnp.sum(jnp.sum(xs * ot, axis=-1), axis=-1, keepdims=True)    # (C, 1)
    s2 = jnp.sum(jnp.sum(xss * ot, axis=-1), axis=-1, keepdims=True)   # (C, 1)
    mu_c = s1 / cnt
    var_c = s2 / cnt - mu_c * mu_c                                     # biased var
    inv_c = jax.lax.rsqrt(var_c + 1e-5)
    mu, inv = mu_c.T, inv_c.T                                          # (1, C)
    mu_map = jnp.sum(o * mu, axis=-1)                                  # (n, f)
    inv_map = jnp.sum(o * inv, axis=-1)                                # (n, f)
    return mu_map, inv_map


def _head_attention(src_col, dst_col, rel, hp_head):
    """One attention head: logits -> LeakyReLU(0.2) -> Relation mask ->
    softmax -> weighted sum of h_prime.  src_col/dst_col: (n, 1), rel: (n, n)."""
    lg = src_col + dst_col.T                                  # (n, n)
    lg = jnp.where(lg >= 0.0, lg, 0.2 * lg)                   # LeakyReLU(0.2)
    lg = lg * rel                                             # relation mask (pre-softmax)
    lg = lg - jnp.max(lg, axis=-1, keepdims=True)
    e = jnp.exp(lg)
    p = e * pl.reciprocal(jnp.sum(e, axis=-1, keepdims=True), approx=True)
    # TODO(synk): attention dropout (p=0.2, training mode) omitted -> inference identity.
    return jnp.dot(p, hp_head, preferred_element_type=jnp.float32)


# ---------------------------------------------------------------------------
# Fused Pallas kernel: BN1 -> GAT layer 1 (4 heads) -> ELU -> BN2 -> GAT layer 2
# ---------------------------------------------------------------------------
def _fused_gat_kernel(x_ref, rel_ref, o1_ref, ot1_ref, w1_ref, b1_ref,
                      o2_ref, ot2_ref, w2_ref, b2_ref, out_ref, h1_ref,
                      *, n_head, f_mid):
    bs, n, _ = x_ref.shape
    fh = n_head * f_mid                      # layer-1 hidden width (heads on lanes)
    f2 = out_ref.shape[-1]
    cnt = float(bs * n)

    # ---- BatchNorm 1 (train-mode stats over the reshape-(bs, f0, n) view) ----
    x = x_ref[...]                                                    # (bs, n, f0)
    mu1, inv1 = _bn_norm_maps(jnp.sum(x, axis=0), jnp.sum(x * x, axis=0),
                              o1_ref[...], ot1_ref[...], cnt)

    # ---- Layer 1: heads + a_src/a_dst folded into one projection matmul ----
    w1 = w1_ref[...]                         # (f0, fh + 2*H)
    b1 = b1_ref[...]                         # (1, f_mid)
    for b in range(bs):
        rel = rel_ref[b]                                              # (n, n)
        hb = (x_ref[b] - mu1) * inv1                                  # (n, f0)
        z = jnp.dot(hb, w1, preferred_element_type=jnp.float32)       # (n, fh+2H)
        for h in range(n_head):
            oh = _head_attention(
                z[:, fh + h:fh + h + 1],                              # attn_src head h
                z[:, fh + n_head + h:fh + n_head + h + 1],            # attn_dst head h
                rel,
                z[:, h * f_mid:(h + 1) * f_mid]) + b1                 # h_prime head h
            # ELU fused; heads packed heads-major on the lane axis of the scratch,
            # matching transpose(1,2).reshape(bs, n, -1) in the reference.
            h1_ref[b, :, h * f_mid:(h + 1) * f_mid] = jnp.where(
                oh > 0.0, oh, jnp.exp(oh) - 1.0)
    # TODO(synk): F.dropout(x, 0.2) between layers omitted -> inference identity.

    # ---- BatchNorm 2 over the reshape-(bs, fh, n) view of the hidden state ----
    h1 = h1_ref[...]                                                  # (bs, n, fh)
    mu2, inv2 = _bn_norm_maps(jnp.sum(h1, axis=0), jnp.sum(h1 * h1, axis=0),
                              o2_ref[...], ot2_ref[...], cnt)

    # ---- Layer 2: single head, bias, squeeze(dim=1) ----
    w2 = w2_ref[...]                         # (fh, f2 + 2)
    b2 = b2_ref[...]                         # (1, f2)
    for b in range(bs):
        hb = (h1_ref[b] - mu2) * inv2                                 # (n, fh)
        z = jnp.dot(hb, w2, preferred_element_type=jnp.float32)       # (n, f2+2)
        out_ref[b] = _head_attention(z[:, f2:f2 + 1], z[:, f2 + 1:f2 + 2],
                                     rel_ref[b], z[:, :f2]) + b2


# ---------------------------------------------------------------------------
# Wrapper: parameter folding, BN channel maps, pallas_call
# ---------------------------------------------------------------------------
def _bn_channel_onehots(n, f):
    """One-hot channel maps for BatchNorm over x.reshape(bs, f, n):
    element (i, j) of the (n, f) slab belongs to channel (i*f + j) // n."""
    cid = np.arange(n * f).reshape(n, f) // n                         # (n, f)
    o = (cid[:, :, None] == np.arange(f)[None, None, :]).astype(np.float32)
    return jnp.asarray(o), jnp.asarray(np.transpose(o, (2, 0, 1)))    # (n,f,C), (C,n,f)


def _fold_multihead_params(w, a_src, a_dst):
    """W_aug = [W_all | W@a_src | W@a_dst] with heads packed on output columns."""
    n_head, f_in, f_out = w.shape
    w_all = jnp.transpose(w, (1, 0, 2)).reshape(f_in, n_head * f_out)
    w_src = jnp.einsum("hio,ho->ih", w, a_src[..., 0])                # (f_in, H)
    w_dst = jnp.einsum("hio,ho->ih", w, a_dst[..., 0])
    return jnp.concatenate([w_all, w_src, w_dst], axis=1)


def gat_net_forward(x, relation, params):
    """GAT.forward (2 layers, n_heads=[4,1]) as ONE fused Pallas kernel.
    x: (bs, n, 32), relation: (bs, n, n) -> (bs, n, 32)."""
    bs, n, f0 = x.shape
    p1, p2 = params
    n_head, _, f_mid = p1["w"].shape
    fh = n_head * f_mid
    f2 = p2["w"].shape[2]

    w1_aug = _fold_multihead_params(p1["w"], p1["a_src"], p1["a_dst"])  # (f0, fh+2H)
    w2_aug = _fold_multihead_params(p2["w"], p2["a_src"], p2["a_dst"])  # (fh, f2+2)
    o1, ot1 = _bn_channel_onehots(n, f0)
    o2, ot2 = _bn_channel_onehots(n, fh)

    kernel = functools.partial(_fused_gat_kernel, n_head=n_head, f_mid=f_mid)
    vmem = pl.BlockSpec(memory_space=pltpu.MemorySpace.VMEM)
    return pl.pallas_call(
        kernel,
        out_shape=jax.ShapeDtypeStruct((bs, n, f2), jnp.float32),
        in_specs=[vmem] * 10,
        out_specs=vmem,
        scratch_shapes=[pltpu.VMEM((bs, n, fh), jnp.float32)],
    )(x, relation, o1, ot1, w1_aug, p1["bias"][None, :],
      o2, ot2, w2_aug, p2["bias"][None, :])


# ---------------------------------------------------------------------------
# Plain-JAX glue: relation matrix (distance + field-of-view) and encoder loop
# ---------------------------------------------------------------------------
def relation_matrix(curr_dire):
    """Vectorized GATEncoder.relation_Matrix (positions at cols 2:4, heading col 5)."""
    pos = curr_dire[:, :, 2:4]                                        # (F, N, 2)
    dvec = pos[:, None, :, :] - pos[:, :, None, :]                    # [f,i,j] = pos_j - pos_i
    dist = jnp.sqrt(jnp.sum(dvec * dvec, axis=-1))
    d_ok = dist <= 156.0
    dire = jnp.degrees(jnp.arctan2(dvec[..., 1], dvec[..., 0]))
    dire = jnp.where(dire < 0.0, dire + 360.0, dire)                  # [0, 360)
    a = curr_dire[:, :, 5][:, :, None]
    up, down = a + 62.0, a - 62.0
    in_sector = jnp.where(
        up > 360.0,
        ((dire >= down) & (dire <= 360.0)) | ((dire >= 0.0) & (dire <= up - 360.0)),
        jnp.where((up >= 62.0) & (up <= 124.0),
                  ((dire >= down + 360.0) & (dire <= 360.0))
                  | ((dire >= 0.0) & (dire <= up)),
                  True))
    return jnp.where(d_ok, in_sector, False).astype(jnp.float32)


@jax.jit
def _encode_segment(emb, dire, params):
    return gat_net_forward(emb, relation_matrix(dire), params)


def gat_encoder_forward(obs_traj_embedding, seq_start_end, obs_dire, params):
    """GATEncoder.forward: per (start, end) segment build Relation and run the
    fused GAT kernel, then concatenate along the pedestrian axis."""
    outs = []
    for start, end in seq_start_end:
        outs.append(_encode_segment(obs_traj_embedding[:, start:end, :],
                                    obs_dire[:, start:end, :], params))
    return jnp.concatenate(outs, axis=1)


# ---------------------------------------------------------------------------
# Deterministic parameter init (xavier-uniform-like, gain=1.414; zero bias)
# ---------------------------------------------------------------------------
def init_params(key, n_units, n_heads):
    params = []
    n_layer = len(n_units) - 1
    for i in range(n_layer):
        f_in = n_units[i] * n_heads[i - 1] if i else n_units[i]
        f_out = n_units[i + 1]
        h = n_heads[i]
        key, k1, k2, k3 = jax.random.split(key, 4)

        def xavier(k, shape):
            rf = shape[2] if len(shape) > 2 else 1
            fan_in, fan_out = shape[1] * rf, shape[0] * rf
            bound = 1.414 * (6.0 / (fan_in + fan_out)) ** 0.5
            return jax.random.uniform(k, shape, jnp.float32, -bound, bound)

        params.append({
            "w": xavier(k1, (h, f_in, f_out)),
            "a_src": xavier(k2, (h, f_out, 1)),
            "a_dst": xavier(k3, (h, f_out, 1)),
            "bias": jnp.zeros((f_out,), jnp.float32),
        })
    return params


if __name__ == "__main__":
    n_units = [32, 16, 32]      # matches the module's BatchNorm1d(32)/BatchNorm1d(64)
    n_heads = [4, 1]
    T, N = 2, 16                # time steps (acts as batch), total pedestrians
    seq_start_end = [(0, 8), (8, 16)]

    key = jax.random.PRNGKey(0)
    key, k_emb, k_pos, k_head = jax.random.split(key, 4)
    obs_traj_embedding = jax.random.normal(k_emb, (T, N, n_units[0]), jnp.float32)
    pos = jax.random.uniform(k_pos, (T, N, 2), jnp.float32, 0.0, 220.0)
    heading = jax.random.uniform(k_head, (T, N, 1), jnp.float32, 0.0, 360.0)
    obs_dire = jnp.concatenate(
        [jnp.zeros((T, N, 2), jnp.float32), pos,
         jnp.zeros((T, N, 1), jnp.float32), heading], axis=-1)        # (T, N, 6)

    params = init_params(key, n_units, n_heads)

    out = gat_encoder_forward(obs_traj_embedding, seq_start_end, obs_dire, params)
    jax.block_until_ready(out)
    assert out.shape == (T, N, n_units[-1]), out.shape
    assert bool(jnp.all(jnp.isfinite(out)))
    print("KERNEL_OK")
</pallas_src>

<mosaic_0001>
module attributes {stable_mosaic.version = 11 : i64} {
  func.func @_fused_gat_kernel(%arg0: memref<2x8x32xf32, #tpu.memory_space<vmem>>, %arg1: memref<2x8x8xf32, #tpu.memory_space<vmem>>, %arg2: memref<8x32x32xf32, #tpu.memory_space<vmem>>, %arg3: memref<32x8x32xf32, #tpu.memory_space<vmem>>, %arg4: memref<32x72xf32, #tpu.memory_space<vmem>>, %arg5: memref<1x16xf32, #tpu.memory_space<vmem>>, %arg6: memref<8x64x64xf32, #tpu.memory_space<vmem>>, %arg7: memref<64x8x64xf32, #tpu.memory_space<vmem>>, %arg8: memref<64x34xf32, #tpu.memory_space<vmem>>, %arg9: memref<1x32xf32, #tpu.memory_space<vmem>>, %arg10: memref<2x8x32xf32, #tpu.memory_space<vmem>>, %arg11: memref<2x8x64xf32, #tpu.memory_space<vmem>>) attributes {dimension_semantics = [], scalar_prefetch = 0 : i64, scratch_operands = 1 : i64, tpu.core_type = #tpu.core_type<tc>} {
    %c0 = arith.constant 0 : index
    %c0_0 = arith.constant 0 : index
    %c0_1 = arith.constant 0 : index
    %0 = vector.load %arg0[%c0, %c0_0, %c0_1] : memref<2x8x32xf32, #tpu.memory_space<vmem>>, vector<2x8x32xf32>
    %cst = arith.constant dense<0.000000e+00> : vector<8x32xf32>
    %1 = vector.multi_reduction <add>, %0, %cst [0] : vector<2x8x32xf32> to vector<8x32xf32>
    %2 = arith.mulf %0, %0 : vector<2x8x32xf32>
    %cst_2 = arith.constant dense<0.000000e+00> : vector<8x32xf32>
    %3 = vector.multi_reduction <add>, %2, %cst_2 [0] : vector<2x8x32xf32> to vector<8x32xf32>
    %c0_3 = arith.constant 0 : index
    %c0_4 = arith.constant 0 : index
    %c0_5 = arith.constant 0 : index
    %4 = vector.load %arg2[%c0_3, %c0_4, %c0_5] : memref<8x32x32xf32, #tpu.memory_space<vmem>>, vector<8x32x32xf32>
    %c0_6 = arith.constant 0 : index
    %c0_7 = arith.constant 0 : index
    %c0_8 = arith.constant 0 : index
    %5 = vector.load %arg3[%c0_6, %c0_7, %c0_8] : memref<32x8x32xf32, #tpu.memory_space<vmem>>, vector<32x8x32xf32>
    %6 = vector.shape_cast %1 : vector<8x32xf32> to vector<1x8x32xf32>
    %7 = vector.broadcast %6 : vector<1x8x32xf32> to vector<32x8x32xf32>
    %8 = arith.mulf %7, %5 : vector<32x8x32xf32>
    %cst_9 = arith.constant dense<0.000000e+00> : vector<32x8xf32>
    %9 = vector.multi_reduction <add>, %8, %cst_9 [2] : vector<32x8x32xf32> to vector<32x8xf32>
    %cst_10 = arith.constant dense<0.000000e+00> : vector<32xf32>
    %10 = vector.multi_reduction <add>, %9, %cst_10 [1] : vector<32x8xf32> to vector<32xf32>
    %11 = vector.shape_cast %10 : vector<32xf32> to vector<32x1xf32>
    %12 = vector.shape_cast %3 : vector<8x32xf32> to vector<1x8x32xf32>
    %13 = vector.broadcast %12 : vector<1x8x32xf32> to vector<32x8x32xf32>
    %14 = arith.mulf %13, %5 : vector<32x8x32xf32>
    %cst_11 = arith.constant dense<0.000000e+00> : vector<32x8xf32>
    %15 = vector.multi_reduction <add>, %14, %cst_11 [2] : vector<32x8x32xf32> to vector<32x8xf32>
    %cst_12 = arith.constant dense<0.000000e+00> : vector<32xf32>
    %16 = vector.multi_reduction <add>, %15, %cst_12 [1] : vector<32x8xf32> to vector<32xf32>
    %17 = vector.shape_cast %16 : vector<32xf32> to vector<32x1xf32>
    %cst_13 = arith.constant 1.600000e+01 : f32
    %18 = vector.broadcast %cst_13 : f32 to vector<32x1xf32>
    %19 = arith.divf %11, %18 : vector<32x1xf32>
    %cst_14 = arith.constant 1.600000e+01 : f32
    %20 = vector.broadcast %cst_14 : f32 to vector<32x1xf32>
    %21 = arith.divf %17, %20 : vector<32x1xf32>
    %22 = arith.mulf %19, %19 : vector<32x1xf32>
    %23 = arith.subf %21, %22 : vector<32x1xf32>
    %cst_15 = arith.constant 9.99999974E-6 : f32
    %24 = vector.broadcast %cst_15 : f32 to vector<32x1xf32>
    %25 = arith.addf %23, %24 : vector<32x1xf32>
    %26 = math.rsqrt %25 : vector<32x1xf32>
    %27 = tpu.transpose %19, [1, 0] : vector<32x1xf32> -> vector<1x32xf32>
    %28 = tpu.transpose %26, [1, 0] : vector<32x1xf32> -> vector<1x32xf32>
    %29 = vector.shape_cast %27 : vector<1x32xf32> to vector<1x1x32xf32>
    %30 = vector.broadcast %29 : vector<1x1x32xf32> to vector<8x32x32xf32>
    %31 = arith.mulf %4, %30 : vector<8x32x32xf32>
    %cst_16 = arith.constant dense<0.000000e+00> : vector<8x32xf32>
    %32 = vector.multi_reduction <add>, %31, %cst_16 [2] : vector<8x32x32xf32> to vector<8x32xf32>
    %33 = vector.shape_cast %28 : vector<1x32xf32> to vector<1x1x32xf32>
    %34 = vector.broadcast %33 : vector<1x1x32xf32> to vector<8x32x32xf32>
    %35 = arith.mulf %4, %34 : vector<8x32x32xf32>
    %cst_17 = arith.constant dense<0.000000e+00> : vector<8x32xf32>
    %36 = vector.multi_reduction <add>, %35, %cst_17 [2] : vector<8x32x32xf32> to vector<8x32xf32>
    %c0_18 = arith.constant 0 : index
    %c0_19 = arith.constant 0 : index
    %37 = vector.load %arg4[%c0_18, %c0_19] : memref<32x72xf32, #tpu.memory_space<vmem>>, vector<32x72xf32>
    %c0_20 = arith.constant 0 : index
    %c0_21 = arith.constant 0 : index
    %38 = vector.load %arg5[%c0_20, %c0_21] : memref<1x16xf32, #tpu.memory_space<vmem>>, vector<1x16xf32>
    %c0_22 = arith.constant 0 : index
    %c0_23 = arith.constant 0 : index
    %c0_24 = arith.constant 0 : index
    %39 = vector.load %arg1[%c0_22, %c0_23, %c0_24] : memref<2x8x8xf32, #tpu.memory_space<vmem>>, vector<1x8x8xf32>
    %40 = vector.shape_cast %39 : vector<1x8x8xf32> to vector<8x8xf32>
    %c0_25 = arith.constant 0 : index
    %c0_26 = arith.constant 0 : index
    %c0_27 = arith.constant 0 : index
    %41 = vector.load %arg0[%c0_25, %c0_26, %c0_27] : memref<2x8x32xf32, #tpu.memory_space<vmem>>, vector<1x8x32xf32>
    %42 = vector.shape_cast %41 : vector<1x8x32xf32> to vector<8x32xf32>
    %43 = arith.subf %42, %32 : vector<8x32xf32>
    %44 = arith.mulf %43, %36 : vector<8x32xf32>
    %cst_28 = arith.constant dense<0.000000e+00> : vector<8x72xf32>
    %45 = tpu.matmul %44, %37, %cst_28 {dimension_numbers = #tpu.dot_dimension_numbers<[1], [0], [0], [1], [0, 0, 1, 1], [], []>} : vector<8x32xf32>, vector<32x72xf32>, vector<8x72xf32> -> vector<8x72xf32>
    %46 = vector.extract_strided_slice %45 {offsets = [0, 64], sizes = [8, 1], strides = [1, 1]} : vector<8x72xf32> to vector<8x1xf32>
    %47 = vector.extract_strided_slice %45 {offsets = [0, 68], sizes = [8, 1], strides = [1, 1]} : vector<8x72xf32> to vector<8x1xf32>
    %48 = vector.extract_strided_slice %45 {offsets = [0, 0], sizes = [8, 16], strides = [1, 1]} : vector<8x72xf32> to vector<8x16xf32>
    %49 = tpu.transpose %47, [1, 0] : vector<8x1xf32> -> vector<1x8xf32>
    %50 = vector.broadcast %46 : vector<8x1xf32> to vector<8x8xf32>
    %51 = vector.broadcast %49 : vector<1x8xf32> to vector<8x8xf32>
    %52 = arith.addf %50, %51 : vector<8x8xf32>
    %cst_29 = arith.constant 0.000000e+00 : f32
    %53 = vector.broadcast %cst_29 : f32 to vector<8x8xf32>
    %54 = arith.cmpf oge, %52, %53 : vector<8x8xf32>
    %cst_30 = arith.constant 2.000000e-01 : f32
    %55 = vector.broadcast %cst_30 : f32 to vector<8x8xf32>
    %56 = arith.mulf %55, %52 : vector<8x8xf32>
    %57 = arith.select %54, %52, %56 : vector<8x8xi1>, vector<8x8xf32>
    %58 = arith.mulf %57, %40 : vector<8x8xf32>
    %cst_31 = arith.constant dense<0xFF800000> : vector<8xf32>
    %59 = vector.multi_reduction <maximumf>, %58, %cst_31 [1] : vector<8x8xf32> to vector<8xf32>
    %60 = vector.shape_cast %59 : vector<8xf32> to vector<8x1xf32>
    %61 = vector.broadcast %60 : vector<8x1xf32> to vector<8x8xf32>
    %62 = arith.subf %58, %61 : vector<8x8xf32>
    %63 = math.exp %62 : vector<8x8xf32>
    %cst_32 = arith.constant dense<0.000000e+00> : vector<8xf32>
    %64 = vector.multi_reduction <add>, %63, %cst_32 [1] : vector<8x8xf32> to vector<8xf32>
    %65 = vector.shape_cast %64 : vector<8xf32> to vector<8x1xf32>
    %66 = tpu.reciprocal %65 {approx = true} : vector<8x1xf32> -> vector<8x1xf32>
    %67 = vector.broadcast %66 : vector<8x1xf32> to vector<8x8xf32>
    %68 = arith.mulf %63, %67 : vector<8x8xf32>
    %cst_33 = arith.constant dense<0.000000e+00> : vector<8x16xf32>
    %69 = tpu.matmul %68, %48, %cst_33 {dimension_numbers = #tpu.dot_dimension_numbers<[1], [0], [0], [1], [0, 0, 1, 1], [], []>} : vector<8x8xf32>, vector<8x16xf32>, vector<8x16xf32> -> vector<8x16xf32>
    %70 = vector.broadcast %38 : vector<1x16xf32> to vector<8x16xf32>
    %71 = arith.addf %69, %70 : vector<8x16xf32>
    %cst_34 = arith.constant 0.000000e+00 : f32
    %72 = vector.broadcast %cst_34 : f32 to vector<8x16xf32>
    %73 = arith.cmpf ogt, %71, %72 : vector<8x16xf32>
    %74 = math.exp %71 : vector<8x16xf32>
    %cst_35 = arith.constant 1.000000e+00 : f32
    %75 = vector.broadcast %cst_35 : f32 to vector<8x16xf32>
    %76 = arith.subf %74, %75 : vector<8x16xf32>
    %77 = arith.select %73, %71, %76 : vector<8x16xi1>, vector<8x16xf32>
    %c0_36 = arith.constant 0 : index
    %c0_37 = arith.constant 0 : index
    %c0_38 = arith.constant 0 : index
    %78 = vector.load %arg11[%c0_36, %c0_37, %c0_38] : memref<2x8x64xf32, #tpu.memory_space<vmem>>, vector<1x8x16xf32>
    %79 = vector.shape_cast %78 : vector<1x8x16xf32> to vector<8x16xf32>
    %80 = vector.shape_cast %77 : vector<8x16xf32> to vector<1x8x16xf32>
    tpu.vector_store %arg11[%c0_36, %c0_37, %c0_38], %80 {strides = array<i32>} : memref<2x8x64xf32, #tpu.memory_space<vmem>>, vector<1x8x16xf32>,
    %81 = vector.extract_strided_slice %45 {offsets = [0, 65], sizes = [8, 1], strides = [1, 1]} : vector<8x72xf32> to vector<8x1xf32>
    %82 = vector.extract_strided_slice %45 {offsets = [0, 69], sizes = [8, 1], strides = [1, 1]} : vector<8x72xf32> to vector<8x1xf32>
    %83 = vector.extract_strided_slice %45 {offsets = [0, 16], sizes = [8, 16], strides = [1, 1]} : vector<8x72xf32> to vector<8x16xf32>
    %84 = tpu.transpose %82, [1, 0] : vector<8x1xf32> -> vector<1x8xf32>
    %85 = vector.broadcast %81 : vector<8x1xf32> to vector<8x8xf32>
    %86 = vector.broadcast %84 : vector<1x8xf32> to vector<8x8xf32>
    %87 = arith.addf %85, %86 : vector<8x8xf32>
    %cst_39 = arith.constant 0.000000e+00 : f32
    %88 = vector.broadcast %cst_39 : f32 to vector<8x8xf32>
    %89 = arith.cmpf oge, %87, %88 : vector<8x8xf32>
    %cst_40 = arith.constant 2.000000e-01 : f32
    %90 = vector.broadcast %cst_40 : f32 to vector<8x8xf32>
    %91 = arith.mulf %90, %87 : vector<8x8xf32>
    %92 = arith.select %89, %87, %91 : vector<8x8xi1>, vector<8x8xf32>
    %93 = arith.mulf %92, %40 : vector<8x8xf32>
    %cst_41 = arith.constant dense<0xFF800000> : vector<8xf32>
    %94 = vector.multi_reduction <maximumf>, %93, %cst_41 [1] : vector<8x8xf32> to vector<8xf32>
    %95 = vector.shape_cast %94 : vector<8xf32> to vector<8x1xf32>
    %96 = vector.broadcast %95 : vector<8x1xf32> to vector<8x8xf32>
    %97 = arith.subf %93, %96 : vector<8x8xf32>
    %98 = math.exp %97 : vector<8x8xf32>
    %cst_42 = arith.constant dense<0.000000e+00> : vector<8xf32>
    %99 = vector.multi_reduction <add>, %98, %cst_42 [1] : vector<8x8xf32> to vector<8xf32>
    %100 = vector.shape_cast %99 : vector<8xf32> to vector<8x1xf32>
    %101 = tpu.reciprocal %100 {approx = true} : vector<8x1xf32> -> vector<8x1xf32>
    %102 = vector.broadcast %101 : vector<8x1xf32> to vector<8x8xf32>
    %103 = arith.mulf %98, %102 : vector<8x8xf32>
    %cst_43 = arith.constant dense<0.000000e+00> : vector<8x16xf32>
    %104 = tpu.matmul %103, %83, %cst_43 {dimension_numbers = #tpu.dot_dimension_numbers<[1], [0], [0], [1], [0, 0, 1, 1], [], []>} : vector<8x8xf32>, vector<8x16xf32>, vector<8x16xf32> -> vector<8x16xf32>
    %105 = vector.broadcast %38 : vector<1x16xf32> to vector<8x16xf32>
    %106 = arith.addf %104, %105 : vector<8x16xf32>
    %cst_44 = arith.constant 0.000000e+00 : f32
    %107 = vector.broadcast %cst_44 : f32 to vector<8x16xf32>
    %108 = arith.cmpf ogt, %106, %107 : vector<8x16xf32>
    %109 = math.exp %106 : vector<8x16xf32>
    %cst_45 = arith.constant 1.000000e+00 : f32
    %110 = vector.broadcast %cst_45 : f32 to vector<8x16xf32>
    %111 = arith.subf %109, %110 : vector<8x16xf32>
    %112 = arith.select %108, %106, %111 : vector<8x16xi1>, vector<8x16xf32>
    %c0_46 = arith.constant 0 : index
    %c0_47 = arith.constant 0 : index
    %c16 = arith.constant 16 : index
    %113 = vector.load %arg11[%c0_46, %c0_47, %c16] : memref<2x8x64xf32, #tpu.memory_space<vmem>>, vector<1x8x16xf32>
    %114 = vector.shape_cast %113 : vector<1x8x16xf32> to vector<8x16xf32>
    %115 = vector.shape_cast %112 : vector<8x16xf32> to vector<1x8x16xf32>
    tpu.vector_store %arg11[%c0_46, %c0_47, %c16], %115 {strides = array<i32>} : memref<2x8x64xf32, #tpu.memory_space<vmem>>, vector<1x8x16xf32>,
    %116 = vector.extract_strided_slice %45 {offsets = [0, 66], sizes = [8, 1], strides = [1, 1]} : vector<8x72xf32> to vector<8x1xf32>
    %117 = vector.extract_strided_slice %45 {offsets = [0, 70], sizes = [8, 1], strides = [1, 1]} : vector<8x72xf32> to vector<8x1xf32>
    %118 = vector.extract_strided_slice %45 {offsets = [0, 32], sizes = [8, 16], strides = [1, 1]} : vector<8x72xf32> to vector<8x16xf32>
    %119 = tpu.transpose %117, [1, 0] : vector<8x1xf32> -> vector<1x8xf32>
    %120 = vector.broadcast %116 : vector<8x1xf32> to vector<8x8xf32>
    %121 = vector.broadcast %119 : vector<1x8xf32> to vector<8x8xf32>
    %122 = arith.addf %120, %121 : vector<8x8xf32>
    %cst_48 = arith.constant 0.000000e+00 : f32
    %123 = vector.broadcast %cst_48 : f32 to vector<8x8xf32>
    %124 = arith.cmpf oge, %122, %123 : vector<8x8xf32>
    %cst_49 = arith.constant 2.000000e-01 : f32
    %125 = vector.broadcast %cst_49 : f32 to vector<8x8xf32>
    %126 = arith.mulf %125, %122 : vector<8x8xf32>
    %127 = arith.select %124, %122, %126 : vector<8x8xi1>, vector<8x8xf32>
    %128 = arith.mulf %127, %40 : vector<8x8xf32>
    %cst_50 = arith.constant dense<0xFF800000> : vector<8xf32>
    %129 = vector.multi_reduction <maximumf>, %128, %cst_50 [1] : vector<8x8xf32> to vector<8xf32>
    %130 = vector.shape_cast %129 : vector<8xf32> to vector<8x1xf32>
    %131 = vector.broadcast %130 : vector<8x1xf32> to vector<8x8xf32>
    %132 = arith.subf %128, %131 : vector<8x8xf32>
    %133 = math.exp %132 : vector<8x8xf32>
    %cst_51 = arith.constant dense<0.000000e+00> : vector<8xf32>
    %134 = vector.multi_reduction <add>, %133, %cst_51 [1] : vector<8x8xf32> to vector<8xf32>
    %135 = vector.shape_cast %134 : vector<8xf32> to vector<8x1xf32>
    %136 = tpu.reciprocal %135 {approx = true} : vector<8x1xf32> -> vector<8x1xf32>
    %137 = vector.broadcast %136 : vector<8x1xf32> to vector<8x8xf32>
    %138 = arith.mulf %133, %137 : vector<8x8xf32>
    %cst_52 = arith.constant dense<0.000000e+00> : vector<8x16xf32>
    %139 = tpu.matmul %138, %118, %cst_52 {dimension_numbers = #tpu.dot_dimension_numbers<[1], [0], [0], [1], [0, 0, 1, 1], [], []>} : vector<8x8xf32>, vector<8x16xf32>, vector<8x16xf32> -> vector<8x16xf32>
    %140 = vector.broadcast %38 : vector<1x16xf32> to vector<8x16xf32>
    %141 = arith.addf %139, %140 : vector<8x16xf32>
    %cst_53 = arith.constant 0.000000e+00 : f32
    %142 = vector.broadcast %cst_53 : f32 to vector<8x16xf32>
    %143 = arith.cmpf ogt, %141, %142 : vector<8x16xf32>
    %144 = math.exp %141 : vector<8x16xf32>
    %cst_54 = arith.constant 1.000000e+00 : f32
    %145 = vector.broadcast %cst_54 : f32 to vector<8x16xf32>
    %146 = arith.subf %144, %145 : vector<8x16xf32>
    %147 = arith.select %143, %141, %146 : vector<8x16xi1>, vector<8x16xf32>
    %c0_55 = arith.constant 0 : index
    %c0_56 = arith.constant 0 : index
    %c32 = arith.constant 32 : index
    %148 = vector.load %arg11[%c0_55, %c0_56, %c32] : memref<2x8x64xf32, #tpu.memory_space<vmem>>, vector<1x8x16xf32>
    %149 = vector.shape_cast %148 : vector<1x8x16xf32> to vector<8x16xf32>
    %150 = vector.shape_cast %147 : vector<8x16xf32> to vector<1x8x16xf32>
    tpu.vector_store %arg11[%c0_55, %c0_56, %c32], %150 {strides = array<i32>} : memref<2x8x64xf32, #tpu.memory_space<vmem>>, vector<1x8x16xf32>,
    %151 = vector.extract_strided_slice %45 {offsets = [0, 67], sizes = [8, 1], strides = [1, 1]} : vector<8x72xf32> to vector<8x1xf32>
    %152 = vector.extract_strided_slice %45 {offsets = [0, 71], sizes = [8, 1], strides = [1, 1]} : vector<8x72xf32> to vector<8x1xf32>
    %153 = vector.extract_strided_slice %45 {offsets = [0, 48], sizes = [8, 16], strides = [1, 1]} : vector<8x72xf32> to vector<8x16xf32>
    %154 = tpu.transpose %152, [1, 0] : vector<8x1xf32> -> vector<1x8xf32>
    %155 = vector.broadcast %151 : vector<8x1xf32> to vector<8x8xf32>
    %156 = vector.broadcast %154 : vector<1x8xf32> to vector<8x8xf32>
    %157 = arith.addf %155, %156 : vector<8x8xf32>
    %cst_57 = arith.constant 0.000000e+00 : f32
    %158 = vector.broadcast %cst_57 : f32 to vector<8x8xf32>
    %159 = arith.cmpf oge, %157, %158 : vector<8x8xf32>
    %cst_58 = arith.constant 2.000000e-01 : f32
    %160 = vector.broadcast %cst_58 : f32 to vector<8x8xf32>
    %161 = arith.mulf %160, %157 : vector<8x8xf32>
    %162 = arith.select %159, %157, %161 : vector<8x8xi1>, vector<8x8xf32>
    %163 = arith.mulf %162, %40 : vector<8x8xf32>
    %cst_59 = arith.constant dense<0xFF800000> : vector<8xf32>
    %164 = vector.multi_reduction <maximumf>, %163, %cst_59 [1] : vector<8x8xf32> to vector<8xf32>
    %165 = vector.shape_cast %164 : vector<8xf32> to vector<8x1xf32>
    %166 = vector.broadcast %165 : vector<8x1xf32> to vector<8x8xf32>
    %167 = arith.subf %163, %166 : vector<8x8xf32>
    %168 = math.exp %167 : vector<8x8xf32>
    %cst_60 = arith.constant dense<0.000000e+00> : vector<8xf32>
    %169 = vector.multi_reduction <add>, %168, %cst_60 [1] : vector<8x8xf32> to vector<8xf32>
    %170 = vector.shape_cast %169 : vector<8xf32> to vector<8x1xf32>
    %171 = tpu.reciprocal %170 {approx = true} : vector<8x1xf32> -> vector<8x1xf32>
    %172 = vector.broadcast %171 : vector<8x1xf32> to vector<8x8xf32>
    %173 = arith.mulf %168, %172 : vector<8x8xf32>
    %cst_61 = arith.constant dense<0.000000e+00> : vector<8x16xf32>
    %174 = tpu.matmul %173, %153, %cst_61 {dimension_numbers = #tpu.dot_dimension_numbers<[1], [0], [0], [1], [0, 0, 1, 1], [], []>} : vector<8x8xf32>, vector<8x16xf32>, vector<8x16xf32> -> vector<8x16xf32>
    %175 = vector.broadcast %38 : vector<1x16xf32> to vector<8x16xf32>
    %176 = arith.addf %174, %175 : vector<8x16xf32>
    %cst_62 = arith.constant 0.000000e+00 : f32
    %177 = vector.broadcast %cst_62 : f32 to vector<8x16xf32>
    %178 = arith.cmpf ogt, %176, %177 : vector<8x16xf32>
    %179 = math.exp %176 : vector<8x16xf32>
    %cst_63 = arith.constant 1.000000e+00 : f32
    %180 = vector.broadcast %cst_63 : f32 to vector<8x16xf32>
    %181 = arith.subf %179, %180 : vector<8x16xf32>
    %182 = arith.select %178, %176, %181 : vector<8x16xi1>, vector<8x16xf32>
    %c0_64 = arith.constant 0 : index
    %c0_65 = arith.constant 0 : index
    %c48 = arith.constant 48 : index
    %183 = vector.load %arg11[%c0_64, %c0_65, %c48] : memref<2x8x64xf32, #tpu.memory_space<vmem>>, vector<1x8x16xf32>
    %184 = vector.shape_cast %183 : vector<1x8x16xf32> to vector<8x16xf32>
    %185 = vector.shape_cast %182 : vector<8x16xf32> to vector<1x8x16xf32>
    tpu.vector_store %arg11[%c0_64, %c0_65, %c48], %185 {strides = array<i32>} : memref<2x8x64xf32, #tpu.memory_space<vmem>>, vector<1x8x16xf32>,
    %c1 = arith.constant 1 : index
    %c0_66 = arith.constant 0 : index
    %c0_67 = arith.constant 0 : index
    %186 = vector.load %arg1[%c1, %c0_66, %c0_67] : memref<2x8x8xf32, #tpu.memory_space<vmem>>, vector<1x8x8xf32>
    %187 = vector.shape_cast %186 : vector<1x8x8xf32> to vector<8x8xf32>
    %c1_68 = arith.constant 1 : index
    %c0_69 = arith.constant 0 : index
    %c0_70 = arith.constant 0 : index
    %188 = vector.load %arg0[%c1_68, %c0_69, %c0_70] : memref<2x8x32xf32, #tpu.memory_space<vmem>>, vector<1x8x32xf32>
    %189 = vector.shape_cast %188 : vector<1x8x32xf32> to vector<8x32xf32>
    %190 = arith.subf %189, %32 : vector<8x32xf32>
    %191 = arith.mulf %190, %36 : vector<8x32xf32>
    %cst_71 = arith.constant dense<0.000000e+00> : vector<8x72xf32>
    %192 = tpu.matmul %191, %37, %cst_71 {dimension_numbers = #tpu.dot_dimension_numbers<[1], [0], [0], [1], [0, 0, 1, 1], [], []>} : vector<8x32xf32>, vector<32x72xf32>, vector<8x72xf32> -> vector<8x72xf32>
    %193 = vector.extract_strided_slice %192 {offsets = [0, 64], sizes = [8, 1], strides = [1, 1]} : vector<8x72xf32> to vector<8x1xf32>
    %194 = vector.extract_strided_slice %192 {offsets = [0, 68], sizes = [8, 1], strides = [1, 1]} : vector<8x72xf32> to vector<8x1xf32>
    %195 = vector.extract_strided_slice %192 {offsets = [0, 0], sizes = [8, 16], strides = [1, 1]} : vector<8x72xf32> to vector<8x16xf32>
    %196 = tpu.transpose %194, [1, 0] : vector<8x1xf32> -> vector<1x8xf32>
    %197 = vector.broadcast %193 : vector<8x1xf32> to vector<8x8xf32>
    %198 = vector.broadcast %196 : vector<1x8xf32> to vector<8x8xf32>
    %199 = arith.addf %197, %198 : vector<8x8xf32>
    %cst_72 = arith.constant 0.000000e+00 : f32
    %200 = vector.broadcast %cst_72 : f32 to vector<8x8xf32>
    %201 = arith.cmpf oge, %199, %200 : vector<8x8xf32>
    %cst_73 = arith.constant 2.000000e-01 : f32
    %202 = vector.broadcast %cst_73 : f32 to vector<8x8xf32>
    %203 = arith.mulf %202, %199 : vector<8x8xf32>
    %204 = arith.select %201, %199, %203 : vector<8x8xi1>, vector<8x8xf32>
    %205 = arith.mulf %204, %187 : vector<8x8xf32>
    %cst_74 = arith.constant dense<0xFF800000> : vector<8xf32>
    %206 = vector.multi_reduction <maximumf>, %205, %cst_74 [1] : vector<8x8xf32> to vector<8xf32>
    %207 = vector.shape_cast %206 : vector<8xf32> to vector<8x1xf32>
    %208 = vector.broadcast %207 : vector<8x1xf32> to vector<8x8xf32>
    %209 = arith.subf %205, %208 : vector<8x8xf32>
    %210 = math.exp %209 : vector<8x8xf32>
    %cst_75 = arith.constant dense<0.000000e+00> : vector<8xf32>
    %211 = vector.multi_reduction <add>, %210, %cst_75 [1] : vector<8x8xf32> to vector<8xf32>
    %212 = vector.shape_cast %211 : vector<8xf32> to vector<8x1xf32>
    %213 = tpu.reciprocal %212 {approx = true} : vector<8x1xf32> -> vector<8x1xf32>
    %214 = vector.broadcast %213 : vector<8x1xf32> to vector<8x8xf32>
    %215 = arith.mulf %210, %214 : vector<8x8xf32>
    %cst_76 = arith.constant dense<0.000000e+00> : vector<8x16xf32>
    %216 = tpu.matmul %215, %195, %cst_76 {dimension_numbers = #tpu.dot_dimension_numbers<[1], [0], [0], [1], [0, 0, 1, 1], [], []>} : vector<8x8xf32>, vector<8x16xf32>, vector<8x16xf32> -> vector<8x16xf32>
    %217 = vector.broadcast %38 : vector<1x16xf32> to vector<8x16xf32>
    %218 = arith.addf %216, %217 : vector<8x16xf32>
    %cst_77 = arith.constant 0.000000e+00 : f32
    %219 = vector.broadcast %cst_77 : f32 to vector<8x16xf32>
    %220 = arith.cmpf ogt, %218, %219 : vector<8x16xf32>
    %221 = math.exp %218 : vector<8x16xf32>
    %cst_78 = arith.constant 1.000000e+00 : f32
    %222 = vector.broadcast %cst_78 : f32 to vector<8x16xf32>
    %223 = arith.subf %221, %222 : vector<8x16xf32>
    %224 = arith.select %220, %218, %223 : vector<8x16xi1>, vector<8x16xf32>
    %c1_79 = arith.constant 1 : index
    %c0_80 = arith.constant 0 : index
    %c0_81 = arith.constant 0 : index
    %225 = vector.load %arg11[%c1_79, %c0_80, %c0_81] : memref<2x8x64xf32, #tpu.memory_space<vmem>>, vector<1x8x16xf32>
    %226 = vector.shape_cast %225 : vector<1x8x16xf32> to vector<8x16xf32>
    %227 = vector.shape_cast %224 : vector<8x16xf32> to vector<1x8x16xf32>
    tpu.vector_store %arg11[%c1_79, %c0_80, %c0_81], %227 {strides = array<i32>} : memref<2x8x64xf32, #tpu.memory_space<vmem>>, vector<1x8x16xf32>,
    %228 = vector.extract_strided_slice %192 {offsets = [0, 65], sizes = [8, 1], strides = [1, 1]} : vector<8x72xf32> to vector<8x1xf32>
    %229 = vector.extract_strided_slice %192 {offsets = [0, 69], sizes = [8, 1], strides = [1, 1]} : vector<8x72xf32> to vector<8x1xf32>
    %230 = vector.extract_strided_slice %192 {offsets = [0, 16], sizes = [8, 16], strides = [1, 1]} : vector<8x72xf32> to vector<8x16xf32>
    %231 = tpu.transpose %229, [1, 0] : vector<8x1xf32> -> vector<1x8xf32>
    %232 = vector.broadcast %228 : vector<8x1xf32> to vector<8x8xf32>
    %233 = vector.broadcast %231 : vector<1x8xf32> to vector<8x8xf32>
    %234 = arith.addf %232, %233 : vector<8x8xf32>
    %cst_82 = arith.constant 0.000000e+00 : f32
    %235 = vector.broadcast %cst_82 : f32 to vector<8x8xf32>
    %236 = arith.cmpf oge, %234, %235 : vector<8x8xf32>
    %cst_83 = arith.constant 2.000000e-01 : f32
    %237 = vector.broadcast %cst_83 : f32 to vector<8x8xf32>
    %238 = arith.mulf %237, %234 : vector<8x8xf32>
    %239 = arith.select %236, %234, %238 : vector<8x8xi1>, vector<8x8xf32>
    %240 = arith.mulf %239, %187 : vector<8x8xf32>
    %cst_84 = arith.constant dense<0xFF800000> : vector<8xf32>
    %241 = vector.multi_reduction <maximumf>, %240, %cst_84 [1] : vector<8x8xf32> to vector<8xf32>
    %242 = vector.shape_cast %241 : vector<8xf32> to vector<8x1xf32>
    %243 = vector.broadcast %242 : vector<8x1xf32> to vector<8x8xf32>
    %244 = arith.subf %240, %243 : vector<8x8xf32>
    %245 = math.exp %244 : vector<8x8xf32>
    %cst_85 = arith.constant dense<0.000000e+00> : vector<8xf32>
    %246 = vector.multi_reduction <add>, %245, %cst_85 [1] : vector<8x8xf32> to vector<8xf32>
    %247 = vector.shape_cast %246 : vector<8xf32> to vector<8x1xf32>
    %248 = tpu.reciprocal %247 {approx = true} : vector<8x1xf32> -> vector<8x1xf32>
    %249 = vector.broadcast %248 : vector<8x1xf32> to vector<8x8xf32>
    %250 = arith.mulf %245, %249 : vector<8x8xf32>
    %cst_86 = arith.constant dense<0.000000e+00> : vector<8x16xf32>
    %251 = tpu.matmul %250, %230, %cst_86 {dimension_numbers = #tpu.dot_dimension_numbers<[1], [0], [0], [1], [0, 0, 1, 1], [], []>} : vector<8x8xf32>, vector<8x16xf32>, vector<8x16xf32> -> vector<8x16xf32>
    %252 = vector.broadcast %38 : vector<1x16xf32> to vector<8x16xf32>
    %253 = arith.addf %251, %252 : vector<8x16xf32>
    %cst_87 = arith.constant 0.000000e+00 : f32
    %254 = vector.broadcast %cst_87 : f32 to vector<8x16xf32>
    %255 = arith.cmpf ogt, %253, %254 : vector<8x16xf32>
    %256 = math.exp %253 : vector<8x16xf32>
    %cst_88 = arith.constant 1.000000e+00 : f32
    %257 = vector.broadcast %cst_88 : f32 to vector<8x16xf32>
    %258 = arith.subf %256, %257 : vector<8x16xf32>
    %259 = arith.select %255, %253, %258 : vector<8x16xi1>, vector<8x16xf32>
    %c1_89 = arith.constant 1 : index
    %c0_90 = arith.constant 0 : index
    %c16_91 = arith.constant 16 : index
    %260 = vector.load %arg11[%c1_89, %c0_90, %c16_91] : memref<2x8x64xf32, #tpu.memory_space<vmem>>, vector<1x8x16xf32>
    %261 = vector.shape_cast %260 : vector<1x8x16xf32> to vector<8x16xf32>
    %262 = vector.shape_cast %259 : vector<8x16xf32> to vector<1x8x16xf32>
    tpu.vector_store %arg11[%c1_89, %c0_90, %c16_91], %262 {strides = array<i32>} : memref<2x8x64xf32, #tpu.memory_space<vmem>>, vector<1x8x16xf32>,
    %263 = vector.extract_strided_slice %192 {offsets = [0, 66], sizes = [8, 1], strides = [1, 1]} : vector<8x72xf32> to vector<8x1xf32>
    %264 = vector.extract_strided_slice %192 {offsets = [0, 70], sizes = [8, 1], strides = [1, 1]} : vector<8x72xf32> to vector<8x1xf32>
    %265 = vector.extract_strided_slice %192 {offsets = [0, 32], sizes = [8, 16], strides = [1, 1]} : vector<8x72xf32> to vector<8x16xf32>
    %266 = tpu.transpose %264, [1, 0] : vector<8x1xf32> -> vector<1x8xf32>
    %267 = vector.broadcast %263 : vector<8x1xf32> to vector<8x8xf32>
    %268 = vector.broadcast %266 : vector<1x8xf32> to vector<8x8xf32>
    %269 = arith.addf %267, %268 : vector<8x8xf32>
    %cst_92 = arith.constant 0.000000e+00 : f32
    %270 = vector.broadcast %cst_92 : f32 to vector<8x8xf32>
    %271 = arith.cmpf oge, %269, %270 : vector<8x8xf32>
    %cst_93 = arith.constant 2.000000e-01 : f32
    %272 = vector.broadcast %cst_93 : f32 to vector<8x8xf32>
    %273 = arith.mulf %272, %269 : vector<8x8xf32>
    %274 = arith.select %271, %269, %273 : vector<8x8xi1>, vector<8x8xf32>
    %275 = arith.mulf %274, %187 : vector<8x8xf32>
    %cst_94 = arith.constant dense<0xFF800000> : vector<8xf32>
    %276 = vector.multi_reduction <maximumf>, %275, %cst_94 [1] : vector<8x8xf32> to vector<8xf32>
    %277 = vector.shape_cast %276 : vector<8xf32> to vector<8x1xf32>
    %278 = vector.broadcast %277 : vector<8x1xf32> to vector<8x8xf32>
    %279 = arith.subf %275, %278 : vector<8x8xf32>
    %280 = math.exp %279 : vector<8x8xf32>
    %cst_95 = arith.constant dense<0.000000e+00> : vector<8xf32>
    %281 = vector.multi_reduction <add>, %280, %cst_95 [1] : vector<8x8xf32> to vector<8xf32>
    %282 = vector.shape_cast %281 : vector<8xf32> to vector<8x1xf32>
    %283 = tpu.reciprocal %282 {approx = true} : vector<8x1xf32> -> vector<8x1xf32>
    %284 = vector.broadcast %283 : vector<8x1xf32> to vector<8x8xf32>
    %285 = arith.mulf %280, %284 : vector<8x8xf32>
    %cst_96 = arith.constant dense<0.000000e+00> : vector<8x16xf32>
    %286 = tpu.matmul %285, %265, %cst_96 {dimension_numbers = #tpu.dot_dimension_numbers<[1], [0], [0], [1], [0, 0, 1, 1], [], []>} : vector<8x8xf32>, vector<8x16xf32>, vector<8x16xf32> -> vector<8x16xf32>
    %287 = vector.broadcast %38 : vector<1x16xf32> to vector<8x16xf32>
    %288 = arith.addf %286, %287 : vector<8x16xf32>
    %cst_97 = arith.constant 0.000000e+00 : f32
    %289 = vector.broadcast %cst_97 : f32 to vector<8x16xf32>
    %290 = arith.cmpf ogt, %288, %289 : vector<8x16xf32>
    %291 = math.exp %288 : vector<8x16xf32>
    %cst_98 = arith.constant 1.000000e+00 : f32
    %292 = vector.broadcast %cst_98 : f32 to vector<8x16xf32>
    %293 = arith.subf %291, %292 : vector<8x16xf32>
    %294 = arith.select %290, %288, %293 : vector<8x16xi1>, vector<8x16xf32>
    %c1_99 = arith.constant 1 : index
    %c0_100 = arith.constant 0 : index
    %c32_101 = arith.constant 32 : index
    %295 = vector.load %arg11[%c1_99, %c0_100, %c32_101] : memref<2x8x64xf32, #tpu.memory_space<vmem>>, vector<1x8x16xf32>
    %296 = vector.shape_cast %295 : vector<1x8x16xf32> to vector<8x16xf32>
    %297 = vector.shape_cast %294 : vector<8x16xf32> to vector<1x8x16xf32>
    tpu.vector_store %arg11[%c1_99, %c0_100, %c32_101], %297 {strides = array<i32>} : memref<2x8x64xf32, #tpu.memory_space<vmem>>, vector<1x8x16xf32>,
    %298 = vector.extract_strided_slice %192 {offsets = [0, 67], sizes = [8, 1], strides = [1, 1]} : vector<8x72xf32> to vector<8x1xf32>
    %299 = vector.extract_strided_slice %192 {offsets = [0, 71], sizes = [8, 1], strides = [1, 1]} : vector<8x72xf32> to vector<8x1xf32>
    %300 = vector.extract_strided_slice %192 {offsets = [0, 48], sizes = [8, 16], strides = [1, 1]} : vector<8x72xf32> to vector<8x16xf32>
    %301 = tpu.transpose %299, [1, 0] : vector<8x1xf32> -> vector<1x8xf32>
    %302 = vector.broadcast %298 : vector<8x1xf32> to vector<8x8xf32>
    %303 = vector.broadcast %301 : vector<1x8xf32> to vector<8x8xf32>
    %304 = arith.addf %302, %303 : vector<8x8xf32>
    %cst_102 = arith.constant 0.000000e+00 : f32
    %305 = vector.broadcast %cst_102 : f32 to vector<8x8xf32>
    %306 = arith.cmpf oge, %304, %305 : vector<8x8xf32>
    %cst_103 = arith.constant 2.000000e-01 : f32
    %307 = vector.broadcast %cst_103 : f32 to vector<8x8xf32>
    %308 = arith.mulf %307, %304 : vector<8x8xf32>
    %309 = arith.select %306, %304, %308 : vector<8x8xi1>, vector<8x8xf32>
    %310 = arith.mulf %309, %187 : vector<8x8xf32>
    %cst_104 = arith.constant dense<0xFF800000> : vector<8xf32>
    %311 = vector.multi_reduction <maximumf>, %310, %cst_104 [1] : vector<8x8xf32> to vector<8xf32>
    %312 = vector.shape_cast %311 : vector<8xf32> to vector<8x1xf32>
    %313 = vector.broadcast %312 : vector<8x1xf32> to vector<8x8xf32>
    %314 = arith.subf %310, %313 : vector<8x8xf32>
    %315 = math.exp %314 : vector<8x8xf32>
    %cst_105 = arith.constant dense<0.000000e+00> : vector<8xf32>
    %316 = vector.multi_reduction <add>, %315, %cst_105 [1] : vector<8x8xf32> to vector<8xf32>
    %317 = vector.shape_cast %316 : vector<8xf32> to vector<8x1xf32>
    %318 = tpu.reciprocal %317 {approx = true} : vector<8x1xf32> -> vector<8x1xf32>
    %319 = vector.broadcast %318 : vector<8x1xf32> to vector<8x8xf32>
    %320 = arith.mulf %315, %319 : vector<8x8xf32>
    %cst_106 = arith.constant dense<0.000000e+00> : vector<8x16xf32>
    %321 = tpu.matmul %320, %300, %cst_106 {dimension_numbers = #tpu.dot_dimension_numbers<[1], [0], [0], [1], [0, 0, 1, 1], [], []>} : vector<8x8xf32>, vector<8x16xf32>, vector<8x16xf32> -> vector<8x16xf32>
    %322 = vector.broadcast %38 : vector<1x16xf32> to vector<8x16xf32>
    %323 = arith.addf %321, %322 : vector<8x16xf32>
    %cst_107 = arith.constant 0.000000e+00 : f32
    %324 = vector.broadcast %cst_107 : f32 to vector<8x16xf32>
    %325 = arith.cmpf ogt, %323, %324 : vector<8x16xf32>
    %326 = math.exp %323 : vector<8x16xf32>
    %cst_108 = arith.constant 1.000000e+00 : f32
    %327 = vector.broadcast %cst_108 : f32 to vector<8x16xf32>
    %328 = arith.subf %326, %327 : vector<8x16xf32>
    %329 = arith.select %325, %323, %328 : vector<8x16xi1>, vector<8x16xf32>
    %c1_109 = arith.constant 1 : index
    %c0_110 = arith.constant 0 : index
    %c48_111 = arith.constant 48 : index
    %330 = vector.load %arg11[%c1_109, %c0_110, %c48_111] : memref<2x8x64xf32, #tpu.memory_space<vmem>>, vector<1x8x16xf32>
    %331 = vector.shape_cast %330 : vector<1x8x16xf32> to vector<8x16xf32>
    %332 = vector.shape_cast %329 : vector<8x16xf32> to vector<1x8x16xf32>
    tpu.vector_store %arg11[%c1_109, %c0_110, %c48_111], %332 {strides = array<i32>} : memref<2x8x64xf32, #tpu.memory_space<vmem>>, vector<1x8x16xf32>,
    %c0_112 = arith.constant 0 : index
    %c0_113 = arith.constant 0 : index
    %c0_114 = arith.constant 0 : index
    %333 = vector.load %arg11[%c0_112, %c0_113, %c0_114] : memref<2x8x64xf32, #tpu.memory_space<vmem>>, vector<2x8x64xf32>
    %cst_115 = arith.constant dense<0.000000e+00> : vector<8x64xf32>
    %334 = vector.multi_reduction <add>, %333, %cst_115 [0] : vector<2x8x64xf32> to vector<8x64xf32>
    %335 = arith.mulf %333, %333 : vector<2x8x64xf32>
    %cst_116 = arith.constant dense<0.000000e+00> : vector<8x64xf32>
    %336 = vector.multi_reduction <add>, %335, %cst_116 [0] : vector<2x8x64xf32> to vector<8x64xf32>
    %c0_117 = arith.constant 0 : index
    %c0_118 = arith.constant 0 : index
    %c0_119 = arith.constant 0 : index
    %337 = vector.load %arg6[%c0_117, %c0_118, %c0_119] : memref<8x64x64xf32, #tpu.memory_space<vmem>>, vector<8x64x64xf32>
    %c0_120 = arith.constant 0 : index
    %c0_121 = arith.constant 0 : index
    %c0_122 = arith.constant 0 : index
    %338 = vector.load %arg7[%c0_120, %c0_121, %c0_122] : memref<64x8x64xf32, #tpu.memory_space<vmem>>, vector<64x8x64xf32>
    %339 = vector.shape_cast %334 : vector<8x64xf32> to vector<1x8x64xf32>
    %340 = vector.broadcast %339 : vector<1x8x64xf32> to vector<64x8x64xf32>
    %341 = arith.mulf %340, %338 : vector<64x8x64xf32>
    %cst_123 = arith.constant dense<0.000000e+00> : vector<64x8xf32>
    %342 = vector.multi_reduction <add>, %341, %cst_123 [2] : vector<64x8x64xf32> to vector<64x8xf32>
    %cst_124 = arith.constant dense<0.000000e+00> : vector<64xf32>
    %343 = vector.multi_reduction <add>, %342, %cst_124 [1] : vector<64x8xf32> to vector<64xf32>
    %344 = vector.shape_cast %343 : vector<64xf32> to vector<64x1xf32>
    %345 = vector.shape_cast %336 : vector<8x64xf32> to vector<1x8x64xf32>
    %346 = vector.broadcast %345 : vector<1x8x64xf32> to vector<64x8x64xf32>
    %347 = arith.mulf %346, %338 : vector<64x8x64xf32>
    %cst_125 = arith.constant dense<0.000000e+00> : vector<64x8xf32>
    %348 = vector.multi_reduction <add>, %347, %cst_125 [2] : vector<64x8x64xf32> to vector<64x8xf32>
    %cst_126 = arith.constant dense<0.000000e+00> : vector<64xf32>
    %349 = vector.multi_reduction <add>, %348, %cst_126 [1] : vector<64x8xf32> to vector<64xf32>
    %350 = vector.shape_cast %349 : vector<64xf32> to vector<64x1xf32>
    %cst_127 = arith.constant 1.600000e+01 : f32
    %351 = vector.broadcast %cst_127 : f32 to vector<64x1xf32>
    %352 = arith.divf %344, %351 : vector<64x1xf32>
    %cst_128 = arith.constant 1.600000e+01 : f32
    %353 = vector.broadcast %cst_128 : f32 to vector<64x1xf32>
    %354 = arith.divf %350, %353 : vector<64x1xf32>
    %355 = arith.mulf %352, %352 : vector<64x1xf32>
    %356 = arith.subf %354, %355 : vector<64x1xf32>
    %cst_129 = arith.constant 9.99999974E-6 : f32
    %357 = vector.broadcast %cst_129 : f32 to vector<64x1xf32>
    %358 = arith.addf %356, %357 : vector<64x1xf32>
    %359 = math.rsqrt %358 : vector<64x1xf32>
    %360 = tpu.transpose %352, [1, 0] : vector<64x1xf32> -> vector<1x64xf32>
    %361 = tpu.transpose %359, [1, 0] : vector<64x1xf32> -> vector<1x64xf32>
    %362 = vector.shape_cast %360 : vector<1x64xf32> to vector<1x1x64xf32>
    %363 = vector.broadcast %362 : vector<1x1x64xf32> to vector<8x64x64xf32>
    %364 = arith.mulf %337, %363 : vector<8x64x64xf32>
    %cst_130 = arith.constant dense<0.000000e+00> : vector<8x64xf32>
    %365 = vector.multi_reduction <add>, %364, %cst_130 [2] : vector<8x64x64xf32> to vector<8x64xf32>
    %366 = vector.shape_cast %361 : vector<1x64xf32> to vector<1x1x64xf32>
    %367 = vector.broadcast %366 : vector<1x1x64xf32> to vector<8x64x64xf32>
    %368 = arith.mulf %337, %367 : vector<8x64x64xf32>
    %cst_131 = arith.constant dense<0.000000e+00> : vector<8x64xf32>
    %369 = vector.multi_reduction <add>, %368, %cst_131 [2] : vector<8x64x64xf32> to vector<8x64xf32>
    %c0_132 = arith.constant 0 : index
    %c0_133 = arith.constant 0 : index
    %370 = vector.load %arg8[%c0_132, %c0_133] : memref<64x34xf32, #tpu.memory_space<vmem>>, vector<64x34xf32>
    %c0_134 = arith.constant 0 : index
    %c0_135 = arith.constant 0 : index
    %371 = vector.load %arg9[%c0_134, %c0_135] : memref<1x32xf32, #tpu.memory_space<vmem>>, vector<1x32xf32>
    %c0_136 = arith.constant 0 : index
    %c0_137 = arith.constant 0 : index
    %c0_138 = arith.constant 0 : index
    %372 = vector.load %arg11[%c0_136, %c0_137, %c0_138] : memref<2x8x64xf32, #tpu.memory_space<vmem>>, vector<1x8x64xf32>
    %373 = vector.shape_cast %372 : vector<1x8x64xf32> to vector<8x64xf32>
    %374 = arith.subf %373, %365 : vector<8x64xf32>
    %375 = arith.mulf %374, %369 : vector<8x64xf32>
    %cst_139 = arith.constant dense<0.000000e+00> : vector<8x34xf32>
    %376 = tpu.matmul %375, %370, %cst_139 {dimension_numbers = #tpu.dot_dimension_numbers<[1], [0], [0], [1], [0, 0, 1, 1], [], []>} : vector<8x64xf32>, vector<64x34xf32>, vector<8x34xf32> -> vector<8x34xf32>
    %377 = vector.extract_strided_slice %376 {offsets = [0, 32], sizes = [8, 1], strides = [1, 1]} : vector<8x34xf32> to vector<8x1xf32>
    %378 = vector.extract_strided_slice %376 {offsets = [0, 33], sizes = [8, 1], strides = [1, 1]} : vector<8x34xf32> to vector<8x1xf32>
    %c0_140 = arith.constant 0 : index
    %c0_141 = arith.constant 0 : index
    %c0_142 = arith.constant 0 : index
    %379 = vector.load %arg1[%c0_140, %c0_141, %c0_142] : memref<2x8x8xf32, #tpu.memory_space<vmem>>, vector<1x8x8xf32>
    %380 = vector.shape_cast %379 : vector<1x8x8xf32> to vector<8x8xf32>
    %381 = vector.extract_strided_slice %376 {offsets = [0, 0], sizes = [8, 32], strides = [1, 1]} : vector<8x34xf32> to vector<8x32xf32>
    %382 = tpu.transpose %378, [1, 0] : vector<8x1xf32> -> vector<1x8xf32>
    %383 = vector.broadcast %377 : vector<8x1xf32> to vector<8x8xf32>
    %384 = vector.broadcast %382 : vector<1x8xf32> to vector<8x8xf32>
    %385 = arith.addf %383, %384 : vector<8x8xf32>
    %cst_143 = arith.constant 0.000000e+00 : f32
    %386 = vector.broadcast %cst_143 : f32 to vector<8x8xf32>
    %387 = arith.cmpf oge, %385, %386 : vector<8x8xf32>
    %cst_144 = arith.constant 2.000000e-01 : f32
    %388 = vector.broadcast %cst_144 : f32 to vector<8x8xf32>
    %389 = arith.mulf %388, %385 : vector<8x8xf32>
    %390 = arith.select %387, %385, %389 : vector<8x8xi1>, vector<8x8xf32>
    %391 = arith.mulf %390, %380 : vector<8x8xf32>
    %cst_145 = arith.constant dense<0xFF800000> : vector<8xf32>
    %392 = vector.multi_reduction <maximumf>, %391, %cst_145 [1] : vector<8x8xf32> to vector<8xf32>
    %393 = vector.shape_cast %392 : vector<8xf32> to vector<8x1xf32>
    %394 = vector.broadcast %393 : vector<8x1xf32> to vector<8x8xf32>
    %395 = arith.subf %391, %394 : vector<8x8xf32>
    %396 = math.exp %395 : vector<8x8xf32>
    %cst_146 = arith.constant dense<0.000000e+00> : vector<8xf32>
    %397 = vector.multi_reduction <add>, %396, %cst_146 [1] : vector<8x8xf32> to vector<8xf32>
    %398 = vector.shape_cast %397 : vector<8xf32> to vector<8x1xf32>
    %399 = tpu.reciprocal %398 {approx = true} : vector<8x1xf32> -> vector<8x1xf32>
    %400 = vector.broadcast %399 : vector<8x1xf32> to vector<8x8xf32>
    %401 = arith.mulf %396, %400 : vector<8x8xf32>
    %cst_147 = arith.constant dense<0.000000e+00> : vector<8x32xf32>
    %402 = tpu.matmul %401, %381, %cst_147 {dimension_numbers = #tpu.dot_dimension_numbers<[1], [0], [0], [1], [0, 0, 1, 1], [], []>} : vector<8x8xf32>, vector<8x32xf32>, vector<8x32xf32> -> vector<8x32xf32>
    %403 = vector.broadcast %371 : vector<1x32xf32> to vector<8x32xf32>
    %404 = arith.addf %402, %403 : vector<8x32xf32>
    %c0_148 = arith.constant 0 : index
    %c0_149 = arith.constant 0 : index
    %c0_150 = arith.constant 0 : index
    %405 = vector.load %arg10[%c0_148, %c0_149, %c0_150] : memref<2x8x32xf32, #tpu.memory_space<vmem>>, vector<1x8x32xf32>
    %406 = vector.shape_cast %405 : vector<1x8x32xf32> to vector<8x32xf32>
    %407 = vector.shape_cast %404 : vector<8x32xf32> to vector<1x8x32xf32>
    tpu.vector_store %arg10[%c0_148, %c0_149, %c0_150], %407 {strides = array<i32>} : memref<2x8x32xf32, #tpu.memory_space<vmem>>, vector<1x8x32xf32>,
    %c1_151 = arith.constant 1 : index
    %c0_152 = arith.constant 0 : index
    %c0_153 = arith.constant 0 : index
    %408 = vector.load %arg11[%c1_151, %c0_152, %c0_153] : memref<2x8x64xf32, #tpu.memory_space<vmem>>, vector<1x8x64xf32>
    %409 = vector.shape_cast %408 : vector<1x8x64xf32> to vector<8x64xf32>
    %410 = arith.subf %409, %365 : vector<8x64xf32>
    %411 = arith.mulf %410, %369 : vector<8x64xf32>
    %cst_154 = arith.constant dense<0.000000e+00> : vector<8x34xf32>
    %412 = tpu.matmul %411, %370, %cst_154 {dimension_numbers = #tpu.dot_dimension_numbers<[1], [0], [0], [1], [0, 0, 1, 1], [], []>} : vector<8x64xf32>, vector<64x34xf32>, vector<8x34xf32> -> vector<8x34xf32>
    %413 = vector.extract_strided_slice %412 {offsets = [0, 32], sizes = [8, 1], strides = [1, 1]} : vector<8x34xf32> to vector<8x1xf32>
    %414 = vector.extract_strided_slice %412 {offsets = [0, 33], sizes = [8, 1], strides = [1, 1]} : vector<8x34xf32> to vector<8x1xf32>
    %c1_155 = arith.constant 1 : index
    %c0_156 = arith.constant 0 : index
    %c0_157 = arith.constant 0 : index
    %415 = vector.load %arg1[%c1_155, %c0_156, %c0_157] : memref<2x8x8xf32, #tpu.memory_space<vmem>>, vector<1x8x8xf32>
    %416 = vector.shape_cast %415 : vector<1x8x8xf32> to vector<8x8xf32>
    %417 = vector.extract_strided_slice %412 {offsets = [0, 0], sizes = [8, 32], strides = [1, 1]} : vector<8x34xf32> to vector<8x32xf32>
    %418 = tpu.transpose %414, [1, 0] : vector<8x1xf32> -> vector<1x8xf32>
    %419 = vector.broadcast %413 : vector<8x1xf32> to vector<8x8xf32>
    %420 = vector.broadcast %418 : vector<1x8xf32> to vector<8x8xf32>
    %421 = arith.addf %419, %420 : vector<8x8xf32>
    %cst_158 = arith.constant 0.000000e+00 : f32
    %422 = vector.broadcast %cst_158 : f32 to vector<8x8xf32>
    %423 = arith.cmpf oge, %421, %422 : vector<8x8xf32>
    %cst_159 = arith.constant 2.000000e-01 : f32
    %424 = vector.broadcast %cst_159 : f32 to vector<8x8xf32>
    %425 = arith.mulf %424, %421 : vector<8x8xf32>
    %426 = arith.select %423, %421, %425 : vector<8x8xi1>, vector<8x8xf32>
    %427 = arith.mulf %426, %416 : vector<8x8xf32>
    %cst_160 = arith.constant dense<0xFF800000> : vector<8xf32>
    %428 = vector.multi_reduction <maximumf>, %427, %cst_160 [1] : vector<8x8xf32> to vector<8xf32>
    %429 = vector.shape_cast %428 : vector<8xf32> to vector<8x1xf32>
    %430 = vector.broadcast %429 : vector<8x1xf32> to vector<8x8xf32>
    %431 = arith.subf %427, %430 : vector<8x8xf32>
    %432 = math.exp %431 : vector<8x8xf32>
    %cst_161 = arith.constant dense<0.000000e+00> : vector<8xf32>
    %433 = vector.multi_reduction <add>, %432, %cst_161 [1] : vector<8x8xf32> to vector<8xf32>
    %434 = vector.shape_cast %433 : vector<8xf32> to vector<8x1xf32>
    %435 = tpu.reciprocal %434 {approx = true} : vector<8x1xf32> -> vector<8x1xf32>
    %436 = vector.broadcast %435 : vector<8x1xf32> to vector<8x8xf32>
    %437 = arith.mulf %432, %436 : vector<8x8xf32>
    %cst_162 = arith.constant dense<0.000000e+00> : vector<8x32xf32>
    %438 = tpu.matmul %437, %417, %cst_162 {dimension_numbers = #tpu.dot_dimension_numbers<[1], [0], [0], [1], [0, 0, 1, 1], [], []>} : vector<8x8xf32>, vector<8x32xf32>, vector<8x32xf32> -> vector<8x32xf32>
    %439 = vector.broadcast %371 : vector<1x32xf32> to vector<8x32xf32>
    %440 = arith.addf %438, %439 : vector<8x32xf32>
    %c1_163 = arith.constant 1 : index
    %c0_164 = arith.constant 0 : index
    %c0_165 = arith.constant 0 : index
    %441 = vector.load %arg10[%c1_163, %c0_164, %c0_165] : memref<2x8x32xf32, #tpu.memory_space<vmem>>, vector<1x8x32xf32>
    %442 = vector.shape_cast %441 : vector<1x8x32xf32> to vector<8x32xf32>
    %443 = vector.shape_cast %440 : vector<8x32xf32> to vector<1x8x32xf32>
    tpu.vector_store %arg10[%c1_163, %c0_164, %c0_165], %443 {strides = array<i32>} : memref<2x8x32xf32, #tpu.memory_space<vmem>>, vector<1x8x32xf32>,
    return
  }
}

</mosaic_0001>

<bundles_post_ra>
// kernel: _encode_segment.1
= control target key start
LH: loop header
LB: loop body
LE: loop exit
PB: predicated region body
PF: predicated region fallthrough
CT: control target
= control target key end

     0   :  { %15 = vsyncpa [#allocation4], 0  ;;  %s10351_s0 = inlined_call_operand.hbm [shape: f32[2,8,32], index: 0, kind: input, shape index: {}]   ;;  %s10352_s1 = inlined_call_operand.vmem [shape: f32[2,8,8], index: 1, kind: input, shape index: {}]   ;;  %s10353_s2 = inlined_call_operand.hbm [shape: f32[8,32,32], index: 2, kind: input, shape index: {}]   ;;  %s10354_s3 = inlined_call_operand.hbm [shape: f32[32,8,32], index: 3, kind: input, shape index: {}]   ;;  %s10355_s4 = inlined_call_operand.vmem [shape: f32[32,72], index: 4, kind: input, shape index: {}]   ;;  %s10356_s5 = inlined_call_operand.vmem [shape: f32[1,16], index: 5, kind: input, shape index: {}]   ;;  %s10357_s6 = inlined_call_operand.vmem [shape: f32[8,64,64], index: 6, kind: input, shape index: {}]   ;;  %s10358_s7 = inlined_call_operand.vmem [shape: f32[64,8,64], index: 7, kind: input, shape index: {}]   ;;  %s10359_s8 = inlined_call_operand.vmem [shape: f32[64,34], index: 8, kind: input, shape index: {}]   ;;  %s10360_s9 = inlined_call_operand.hbm [shape: f32[1,32], index: 9, kind: input, shape index: {}]   ;;  %s10361_s10 = inlined_call_operand.hbm [shape: f32[2,8,32], index: 10, kind: output, shape index: {}]  }
   0x1   :  { %16 = vsyncpa [#allocation7], 0 }
   0x2   :  { %17 = vsyncpa [#allocation10], 0 }
   0x3   :  { %18 = vsyncpa [#allocation5], 0  ;;  %s6640_s13 = smov [#allocation6]   ;;  %s6641_s15 = smov [#allocation3]  }
   0x4   :  { %s38_s14 = sshll.u32 %s6640_s13, 4  ;;  %s24_s16 = sshll.u32 %s6641_s15, 4  ;;  %s39_s14 = int_to_ptr.vmem [resolvable:$true] %s38_s14  ;;  %s25_s16 = int_to_ptr.vmem [resolvable:$true] %s24_s16 }
   0x5   :  { %s6540_s17 = scalar_lea.vmem %s39_s14, 4096  ;;  %p6545_p1 = scmp.lt.s32.totalorder %s39_s14, %s39_s14 }
   0x6   :  { %p6541_p0 = scmp.ne.s32.totalorder %s39_s14, %s6540_s17  ;;  %p6546_p2 = scmp.lt.s32.totalorder %s6540_s17, %s6540_s17 }
   0x8   :  { %p6547_p3 = por %p6546_p2, %p6545_p1 }
   0xa   :  { %p6548_p4 = pnand %p6547_p3, %p6541_p0 }
   0xc   :  { %6551 = shalt.err (!%p6548_p4)
}
   0xd   :  { %s6642_s18 = smov 128   ;;  %s6643_s19 = smov 8  }
   0xe   :  { %44 = dma.hbm_to_vmem [thread:$0]  %s10353_s2, 4096, %s39_s14, [#allocation7], %s6642_s18, %s6642_s18, %s6643_s19  }
   0xf   :  { %s6560_s22 = scalar_lea.vmem %s25_s16, 256  ;;  %p6565_p6 = scmp.lt.s32.totalorder %s25_s16, %s25_s16 }
  0x10   :  { %p6561_p5 = scmp.ne.s32.totalorder %s25_s16, %s6560_s22  ;;  %p6566_p7 = scmp.lt.s32.totalorder %s6560_s22, %s6560_s22 }
  0x12   :  { %p6567_p8 = por %p6566_p7, %p6565_p6 }
  0x14   :  { %p6568_p9 = pnand %p6567_p8, %p6561_p5 }
  0x16   :  { %6571 = shalt.err (!%p6568_p9)
}
  0x17   :  { %30 = dma.hbm_to_vmem [thread:$0]  %s10351_s0, 256, %s25_s16, [#allocation4], %s6642_s18, %s6642_s18, %s6643_s19  }
  0x18   :  { %s6644_s25 = smov [#allocation8]   ;;  %s6645_s27 = smov [#allocation9]  }
  0x19   :  { %s50_s26 = sshll.u32 %s6644_s25, 4  ;;  %s73_s28 = sshll.u32 %s6645_s27, 4  ;;  %s51_s26 = int_to_ptr.vmem [resolvable:$true] %s50_s26  ;;  %s74_s28 = int_to_ptr.vmem [resolvable:$true] %s73_s28 }
  0x1a   :  { %s6580_s2 = scalar_lea.vmem %s51_s26, 4096  ;;  %p6585_p11 = scmp.lt.s32.totalorder %s51_s26, %s51_s26 }
  0x1b   :  { %p6581_p10 = scmp.ne.s32.totalorder %s51_s26, %s6580_s2  ;;  %p6586_p12 = scmp.lt.s32.totalorder %s6580_s2, %s6580_s2 }
  0x1d   :  { %p6587_p13 = por %p6586_p12, %p6585_p11 }
  0x1f   :  { %p6588_p0 = pnand %p6587_p13, %p6581_p10 }
  0x21   :  { %6591 = shalt.err (!%p6588_p0)
}
  0x22   :  { %56 = dma.hbm_to_vmem [thread:$0]  %s10354_s3, 4096, %s51_s26, [#allocation7], %s6642_s18, %s6642_s18, %s6643_s19  }
  0x23   :  { %s6600_s0 = scalar_lea.vmem %s74_s28, 16  ;;  %s6604_s11 = scalar_lea.vmem %s74_s28, 32 }
  0x24   :  { %p6601_p1 = scmp.ne.s32.totalorder %s74_s28, %s6600_s0  ;;  %p6605_p2 = scmp.lt.s32.totalorder %s74_s28, %s74_s28 }
  0x25   :  { %p6606_p3 = scmp.lt.s32.totalorder %s6604_s11, %s6600_s0 }
  0x27   :  { %p6607_p4 = por %p6606_p3, %p6605_p2 }
  0x29   :  { %p6608_p5 = pnand %p6607_p4, %p6601_p1 }
  0x2b   :  { %6611 = shalt.err (!%p6608_p5)
}
  0x2c   :  { %76 = dma.hbm_to_vmem [thread:$0]  %s10360_s9, 16, %s74_s28, [#allocation10]  }
  0x2d   :  { %6632 = dma.done.wait [#allocation4], 256  }
  0x2e   :  { %6633 = vsyncadd [#allocation4], 4294967040 }
  0x2f   :  { %6634 = dma.done.wait [#allocation7], 8192  }
  0x30   :  { %6635 = vsyncadd [#allocation7], 4294959104 }
  0x31   :  { %6636 = dma.done.wait [#allocation10], 16  }
  0x32   :  { %6637 = vsyncadd [#allocation10], 4294967280  ;;  %vm10371_vm0 = vcmask 261120   ;;  %v89_v0 = vld [vmem:[#allocation3] sm:$0xff]  ;;  %v90_v1 = vld [vmem:[#allocation3 + $0x8] sm:$0xff]  ;;  %vm454_vm1 = vcmask 1041409  }
  0x33   :  { %v134_v2 = vld [vmem:[#allocation8 + $0x10] sm:$0xff]  ;;  %v92_v3 = vsel %vm10371_vm0, %v89_v0, 0.0  ;;  %v93_v4 = vsel %vm10371_vm0, %v90_v1, 0.0  ;;  %v132_v5 = vld [vmem:[#allocation8] sm:$0xff]  ;;  %v135_v6 = vld [vmem:[#allocation8 + $0x18] sm:$0xff]  ;;  %v95_v13 = vmul.f32 %v89_v0, %v89_v0  ;;  %v96_v14 = vmul.f32 %v90_v1, %v90_v1  ;;  %s6651_s22 = smov 60  }
  0x34   :  { %v133_v7 = vld [vmem:[#allocation8 + $0x8] sm:$0xff]  ;;  %v6743_v8 = vadd.f32 %v93_v4, %v92_v3  ;;  %v140_v16 = vld [vmem:[#allocation8 + $0x40] sm:$0xff]  ;;  %v6755_v23 = vld [vmem:[#allocation8 + $0x50] sm:$0xff]  ;;  %vm456_vm2 = vcmask 1042434   ;;  %vm458_vm3 = vcmask 1043459   ;;  %vm460_vm4 = vcmask 1044484  }
  0x35   :  { %v141_v15 = vld [vmem:[#allocation8 + $0x48] sm:$0xff]  ;;  %v136_v24 = vld [vmem:[#allocation8 + $0x20] sm:$0xff]  ;;  %v97_v25 = vsel %vm10371_vm0, %v95_v13, 0.0  ;;  %v98_v26 = vsel %vm10371_vm0, %v96_v14, 0.0  ;;  %v143_v42 = vld [vmem:[#allocation8 + $0x58] sm:$0xff]  ;;  %vm462_vm5 = vcmask 1045509  }
  0x36   :  { %v166_v9 = vmul.f32 %v134_v2, %v6743_v8  ;;  %v164_v10 = vmul.f32 %v132_v5, %v6743_v8  ;;  %v167_v11 = vmul.f32 %v135_v6, %v6743_v8  ;;  %v165_v12 = vmul.f32 %v133_v7, %v6743_v8  ;;  %v6770_v36 = vld [vmem:[#allocation8 + $0x28] sm:$0xff]  ;;  %v6777_v41 = vld [vmem:[#allocation8 + $0x80] sm:$0xff]  ;;  %v138_v57 = vld [vmem:[#allocation8 + $0x30] sm:$0xff]  ;;  %s6652_s23 = smov 58   ;;  %s6654_s26 = smov 96  }
  0x37   :  { %v173_v21 = vmul.f32 %v141_v15, %v6743_v8  ;;  %v172_v22 = vmul.f32 %v140_v16, %v6743_v8  ;;  %v174_v27 = vmul.f32 %v6755_v23, %v6743_v8  ;;  %v168_v30 = vmul.f32 %v136_v24, %v6743_v8  ;;  %v149_v47 = vld [vmem:[#allocation8 + $0x88] sm:$0xff]  ;;  %v6792_v56 = vld [vmem:[#allocation8 + $0x60] sm:$0xff]  ;;  %v150_v62 = vld [vmem:[#allocation8 + $0x90] sm:$0xff]  ;;  %s6655_s27 = smov 112   ;;  %s6656_s28 = smov 57  }
  0x38   :  { %v202_v17 = vsel %vm10371_vm0, %v166_v9, 0.0  ;;  %v196_v18 = vsel %vm10371_vm0, %v164_v10, 0.0  ;;  %v205_v19 = vsel %vm10371_vm0, %v167_v11, 0.0  ;;  %v199_v20 = vsel %vm10371_vm0, %v165_v12, 0.0  ;;  %v6803_v3 = vld [vmem:[#allocation8 + $0x38] sm:$0xff]  ;;  %v6813_v10 = vld [vmem:[#allocation8 + $0x68] sm:$0xff] }
  0x39   :  { %203 = vadd.xlane.f32.xlu1 %v202_v17  ;;  %197 = vadd.xlane.f32.xlu0 %v196_v18  ;;  %v223_v28 = vsel %vm10371_vm0, %v173_v21, 0.0  ;;  %v220_v29 = vsel %vm10371_vm0, %v172_v22, 0.0  ;;  %v6764_v31 = vadd.f32 %v98_v26, %v97_v25  ;;  %v226_v32 = vsel %vm10371_vm0, %v174_v27, 0.0  ;;  %v6811_v9 = vld [vmem:[#allocation8 + $0x98] sm:$0xff]  ;;  %s6658_s2 = smov 80   ;;  %s6660_s0 = smov 32  }
  0x3a   :  { %v208_v33 = vsel %vm10371_vm0, %v168_v30, 0.0  ;;  %v169_v39 = vmul.f32 %v6770_v36, %v6743_v8  ;;  %v180_v45 = vmul.f32 %v6777_v41, %v6743_v8  ;;  %v175_v46 = vmul.f32 %v143_v42, %v6743_v8  ;;  %v146_v30 = vld [vmem:[#allocation8 + $0x70] sm:$0xff]  ;;  %s6661_s13 = smov 48  }
  0x3b   :  { %v507_v34 = vmul.f32 %v133_v7, %v6764_v31  ;;  %v506_v35 = vmul.f32 %v132_v5, %v6764_v31  ;;  %v508_v40 = vmul.f32 %v134_v2, %v6764_v31  ;;  %v509_v50 = vmul.f32 %v135_v6, %v6764_v31 }
  0x3c   :  { %v211_v43 = vsel %vm10371_vm0, %v169_v39, 0.0  ;;  %v244_v48 = vsel %vm10371_vm0, %v180_v45, 0.0  ;;  %v229_v49 = vsel %vm10371_vm0, %v175_v46, 0.0  ;;  %v181_v51 = vmul.f32 %v149_v47, %v6743_v8  ;;  %v153_v45 = vld [vmem:[#allocation8 + $0xa8] sm:$0xff]  ;;  %v147_v46 = vld [vmem:[#allocation8 + $0x78] sm:$0xff] }
  0x3d   :  { %206 = vadd.xlane.f32.xlu1 %v205_v19  ;;  %200 = vadd.xlane.f32.xlu0 %v199_v20  ;;  %v541_v37 = vsel %vm10371_vm0, %v507_v34, 0.0  ;;  %v538_v38 = vsel %vm10371_vm0, %v506_v35, 0.0  ;;  %v544_v44 = vsel %vm10371_vm0, %v508_v40, 0.0  ;;  %v547_v52 = vsel %vm10371_vm0, %v509_v50, 0.0 }
  0x3e   :  { %v247_v53 = vsel %vm10371_vm0, %v181_v51, 0.0  ;;  %v515_v54 = vmul.f32 %v141_v15, %v6764_v31  ;;  %v514_v55 = vmul.f32 %v140_v16, %v6764_v31  ;;  %v176_v60 = vmul.f32 %v6792_v56, %v6743_v8  ;;  %v6821_v15 = vld [vmem:[#allocation8 + $0xc8] sm:$0xff]  ;;  %v6823_v16 = vld [vmem:[#allocation8 + $0xc0] sm:$0xff]  ;;  %v159_v51 = vld [vmem:[#allocation8 + $0xd8] sm:$0xff] }
  0x3f   :  { %v170_v61 = vmul.f32 %v138_v57, %v6743_v8  ;;  %v510_v1 = vmul.f32 %v136_v24, %v6764_v31  ;;  %v182_v2 = vmul.f32 %v150_v62, %v6743_v8  ;;  %v171_v6 = vmul.f32 %v6803_v3, %v6743_v8 }
  0x40   :  { %v565_v58 = vsel %vm10371_vm0, %v515_v54, 0.0  ;;  %v562_v59 = vsel %vm10371_vm0, %v514_v55, 0.0  ;;  %v232_v63 = vsel %vm10371_vm0, %v176_v60, 0.0  ;;  %v516_v7 = vmul.f32 %v6755_v23, %v6764_v31 }
  0x41   :  { %224 = vadd.xlane.f32.xlu1 %v223_v28  ;;  %221 = vadd.xlane.f32.xlu0 %v220_v29  ;;  %v214_v0 = vsel %vm10371_vm0, %v170_v61, 0.0  ;;  %v550_v4 = vsel %vm10371_vm0, %v510_v1, 0.0  ;;  %v250_v5 = vsel %vm10371_vm0, %v182_v2, 0.0  ;;  %v217_v11 = vsel %vm10371_vm0, %v171_v6, 0.0  ;;  %v152_v29 = vld [vmem:[#allocation8 + $0xa0] sm:$0xff]  ;;  %v154_v1 = vld [vmem:[#allocation8 + $0xb0] sm:$0xff] }
  0x42   :  { %v568_v12 = vsel %vm10371_vm0, %v516_v7, 0.0  ;;  %v183_v13 = vmul.f32 %v6811_v9, %v6743_v8  ;;  %v177_v14 = vmul.f32 %v6813_v10, %v6743_v8  ;;  %v189_v19 = vmul.f32 %v6821_v15, %v6743_v8 }
  0x43   :  { %v188_v20 = vmul.f32 %v6823_v16, %v6743_v8  ;;  %v517_v23 = vmul.f32 %v143_v42, %v6764_v31  ;;  %v511_v24 = vmul.f32 %v6770_v36, %v6764_v31  ;;  %v523_v27 = vmul.f32 %v149_v47, %v6764_v31  ;;  %v158_v36 = vld [vmem:[#allocation8 + $0xd0] sm:$0xff] }
  0x44   :  { %v253_v17 = vsel %vm10371_vm0, %v183_v13, 0.0  ;;  %v235_v18 = vsel %vm10371_vm0, %v177_v14, 0.0  ;;  %v271_v21 = vsel %vm10371_vm0, %v189_v19, 0.0  ;;  %v522_v28 = vmul.f32 %v6777_v41, %v6764_v31 }
  0x45   :  { %227 = vadd.xlane.f32.xlu1 %v226_v32  ;;  %209 = vadd.xlane.f32.xlu0 %v208_v33  ;;  %v268_v22 = vsel %vm10371_vm0, %v188_v20, 0.0  ;;  %v571_v25 = vsel %vm10371_vm0, %v517_v23, 0.0  ;;  %v553_v26 = vsel %vm10371_vm0, %v511_v24, 0.0  ;;  %v589_v32 = vsel %vm10371_vm0, %v523_v27, 0.0 }
  0x46   :  { %v586_v33 = vsel %vm10371_vm0, %v522_v28, 0.0  ;;  %v184_v34 = vmul.f32 %v152_v29, %v6743_v8  ;;  %v178_v35 = vmul.f32 %v146_v30, %v6743_v8  ;;  %v512_v39 = vmul.f32 %v138_v57, %v6764_v31 }
  0x47   :  { %v190_v40 = vmul.f32 %v158_v36, %v6743_v8  ;;  %v179_v50 = vmul.f32 %v147_v46, %v6743_v8  ;;  %v513_v54 = vmul.f32 %v6803_v3, %v6764_v31  ;;  %v191_v55 = vmul.f32 %v159_v51, %v6743_v8 }
  0x48   :  { %v556_v41 = vsel %vm10371_vm0, %v512_v39, 0.0  ;;  %v521_v19 = vmul.f32 %v147_v46, %v6764_v31  ;;  %v533_v23 = vmul.f32 %v159_v51, %v6764_v31  ;;  %v527_v24 = vmul.f32 %v153_v45, %v6764_v31 }
  0x49   :  { %542 = vadd.xlane.f32.xlu1 %v541_v37  ;;  %539 = vadd.xlane.f32.xlu0 %v538_v38  ;;  %v256_v37 = vsel %vm10371_vm0, %v184_v34, 0.0  ;;  %v238_v38 = vsel %vm10371_vm0, %v178_v35, 0.0  ;;  %v274_v42 = vsel %vm10371_vm0, %v190_v40, 0.0  ;;  %v277_v57 = vsel %vm10371_vm0, %v191_v55, 0.0 }
  0x4a   :  { %v601_v27 = vsel %vm10371_vm0, %v527_v24, 0.0  ;;  %v528_v28 = vmul.f32 %v154_v1, %v6764_v31  ;;  %vm464_vm6 = vcmask 1046534   ;;  %vm466_vm7 = vcmask 1047559  }
  0x4b   :  { %vm10394_vm8 = vcmask 64512   ;;  %vm10395_vm9 = vmmov 0   ;;  %vm1239_vm10 = vcmask 130112   ;;  %vm10373_vm11 = vcmask 195712  }
  0x4c   :  { %vm10372_vm12 = vcmask 261312  }
  0x4d   :  { %212 = vadd.xlane.f32.xlu1 %v211_v43  ;;  %545 = vadd.xlane.f32.xlu0 %v544_v44  ;;  %v524_v43 = vmul.f32 %v150_v62, %v6764_v31  ;;  %v518_v44 = vmul.f32 %v6792_v56, %v6764_v31  ;;  %v559_v56 = vsel %vm10371_vm0, %v513_v54, 0.0  ;;  %v531_v62 = vmul.f32 %v6821_v15, %v6764_v31 }
  0x4e   :  { %v532_v15 = vmul.f32 %v158_v36, %v6764_v31 }
  0x4f   :  { %v592_v47 = vsel %vm10371_vm0, %v524_v43, 0.0  ;;  %v613_v2 = vsel %vm10371_vm0, %v531_v62, 0.0 }
  0x51   :  { %245 = vadd.xlane.f32.xlu1 %v244_v48  ;;  %230 = vadd.xlane.f32.xlu0 %v229_v49  ;;  %v574_v48 = vsel %vm10371_vm0, %v518_v44, 0.0  ;;  %v185_v49 = vmul.f32 %v153_v45, %v6743_v8 }
  0x55   :  { %548 = vadd.xlane.f32.xlu1 %v547_v52  ;;  %248 = vadd.xlane.f32.xlu0 %v247_v53  ;;  %v259_v52 = vsel %vm10371_vm0, %v185_v49, 0.0  ;;  %v241_v53 = vsel %vm10371_vm0, %v179_v50, 0.0 }
  0x59   :  { %566 = vadd.xlane.f32.xlu1 %v565_v58  ;;  %563 = vadd.xlane.f32.xlu0 %v562_v59  ;;  %v525_v58 = vmul.f32 %v6811_v9, %v6764_v31  ;;  %v519_v59 = vmul.f32 %v6813_v10, %v6764_v31  ;;  %v526_v9 = vmul.f32 %v152_v29, %v6764_v31 }
  0x5a   :  { %v520_v10 = vmul.f32 %v146_v30, %v6764_v31  ;;  %v163_v30 = vld [vmem:[#allocation8 + $0xf8] sm:$0xff] }
  0x5b   :  { %v595_v60 = vsel %vm10371_vm0, %v525_v58, 0.0  ;;  %v577_v61 = vsel %vm10371_vm0, %v519_v59, 0.0  ;;  %v195_v34 = vmul.f32 %v163_v30, %v6743_v8 }
  0x5c   :  { %v580_v13 = vsel %vm10371_vm0, %v520_v10, 0.0 }
  0x5d   :  { %233 = vadd.xlane.f32.xlu1 %v232_v63  ;;  %215 = vadd.xlane.f32.xlu0 %v214_v0  ;;  %v530_v63 = vmul.f32 %v6823_v16, %v6764_v31  ;;  %v160_v0 = vld [vmem:[#allocation8 + $0xe0] sm:$0xff]  ;;  %v161_v16 = vld [vmem:[#allocation8 + $0xe8] sm:$0xff]  ;;  %v289_v36 = vsel %vm10371_vm0, %v195_v34, 0.0 }
  0x5e   :  { %v193_v20 = vmul.f32 %v161_v16, %v6743_v8  ;;  %v534_v35 = vmul.f32 %v160_v0, %v6764_v31 }
  0x5f   :  { %v610_v3 = vsel %vm10371_vm0, %v530_v63, 0.0 }
  0x61   :  { %551 = vadd.xlane.f32.xlu1 %v550_v4  ;;  %251 = vadd.xlane.f32.xlu0 %v250_v5  ;;  %v192_v4 = vmul.f32 %v160_v0, %v6743_v8  ;;  %v186_v5 = vmul.f32 %v154_v1, %v6743_v8 }
  0x63   :  { %v280_v6 = vsel %vm10371_vm0, %v192_v4, 0.0  ;;  %v262_v7 = vsel %vm10371_vm0, %v186_v5, 0.0 }
  0x65   :  { %218 = vadd.xlane.f32.xlu1 %v217_v11  ;;  %569 = vadd.xlane.f32.xlu0 %v568_v12  ;;  %v155_v11 = vld [vmem:[#allocation8 + $0xb8] sm:$0xff]  ;;  %v598_v12 = vsel %vm10371_vm0, %v526_v9, 0.0 }
  0x66   :  { %v187_v14 = vmul.f32 %v155_v11, %v6743_v8  ;;  %v529_v39 = vmul.f32 %v155_v11, %v6764_v31 }
  0x69   :  { %254 = vadd.xlane.f32.xlu1 %v253_v17  ;;  %236 = vadd.xlane.f32.xlu0 %v235_v18  ;;  %v265_v17 = vsel %vm10371_vm0, %v187_v14, 0.0  ;;  %v616_v18 = vsel %vm10371_vm0, %v532_v15, 0.0 }
  0x6d   :  { %272 = vadd.xlane.f32.xlu1 %v271_v21  ;;  %269 = vadd.xlane.f32.xlu0 %v268_v22  ;;  %v583_v21 = vsel %vm10371_vm0, %v521_v19, 0.0  ;;  %v283_v22 = vsel %vm10371_vm0, %v193_v20, 0.0 }
  0x71   :  { %572 = vadd.xlane.f32.xlu1 %v571_v25  ;;  %554 = vadd.xlane.f32.xlu0 %v553_v26  ;;  %v162_v25 = vld [vmem:[#allocation8 + $0xf0] sm:$0xff]  ;;  %v619_v26 = vsel %vm10371_vm0, %v533_v23, 0.0 }
  0x72   :  { %v194_v29 = vmul.f32 %v162_v25, %v6743_v8  ;;  %v536_v8 = vmul.f32 %v162_v25, %v6764_v31 }
  0x74   :  { %v628_v43 = vsel %vm10371_vm0, %v536_v8, 0.0 }
  0x75   :  { %590 = vadd.xlane.f32.xlu1 %v589_v32  ;;  %587 = vadd.xlane.f32.xlu0 %v586_v33  ;;  %v604_v32 = vsel %vm10371_vm0, %v528_v28, 0.0  ;;  %v286_v33 = vsel %vm10371_vm0, %v194_v29, 0.0 }
  0x79   :  { %257 = vadd.xlane.f32.xlu1 %v256_v37  ;;  %239 = vadd.xlane.f32.xlu0 %v238_v38  ;;  %v622_v37 = vsel %vm10371_vm0, %v534_v35, 0.0  ;;  %v535_v38 = vmul.f32 %v161_v16, %v6764_v31 }
  0x7b   :  { %v625_v40 = vsel %vm10371_vm0, %v535_v38, 0.0 }
  0x7d   :  { %557 = vadd.xlane.f32.xlu1 %v556_v41  ;;  %275 = vadd.xlane.f32.xlu0 %v274_v42  ;;  %v607_v41 = vsel %vm10371_vm0, %v529_v39, 0.0  ;;  %v537_v42 = vmul.f32 %v163_v30, %v6764_v31 }
  0x7f   :  { %v631_v44 = vsel %vm10371_vm0, %v537_v42, 0.0 }
  0x81   :  { %593 = vadd.xlane.f32.xlu1 %v592_v47  ;;  %575 = vadd.xlane.f32.xlu0 %v574_v48 }
  0x85   :  { %260 = vadd.xlane.f32.xlu1 %v259_v52  ;;  %242 = vadd.xlane.f32.xlu0 %v241_v53 }
  0x89   :  { %560 = vadd.xlane.f32.xlu1 %v559_v56  ;;  %278 = vadd.xlane.f32.xlu0 %v277_v57  ;;  %v324_v56 = vlaneseq }
  0x8b   :  { %v6929_v59 = vand.u32 127, %v324_v56 }
  0x8d   :  { %596 = vadd.xlane.f32.xlu1 %v595_v60  ;;  %578 = vadd.xlane.f32.xlu0 %v577_v61  ;;  %10397 = vst [vmem:[#allocation16_spill] sm:$0xff] %v6929_v59  ;;  %v6931_v60 = vshrl.u32 %v324_v56, 7 }
  0x8f   :  { %10398 = vst [vmem:[#allocation17_spill] sm:$0xff] %v6931_v60  ;;  %v6939_v63 = vsub.s32 %v6929_v59, %v6931_v60 }
  0x91   :  { %614 = vadd.xlane.f32.xlu1 %v613_v2  ;;  %611 = vadd.xlane.f32.xlu0 %v610_v3 }
  0x95   :  { %281 = vadd.xlane.f32.xlu1 %v280_v6  ;;  %263 = vadd.xlane.f32.xlu0 %v262_v7 }
  0x99   :  { %599 = vadd.xlane.f32.xlu1 %v598_v12  ;;  %581 = vadd.xlane.f32.xlu0 %v580_v13 }
  0x9d   :  { %266 = vadd.xlane.f32.xlu1 %v265_v17  ;;  %617 = vadd.xlane.f32.xlu0 %v616_v18 }
  0xa1   :  { %584 = vadd.xlane.f32.xlu1 %v583_v21  ;;  %284 = vadd.xlane.f32.xlu0 %v283_v22 }
  0xa5   :  { %620 = vadd.xlane.f32.xlu1 %v619_v26  ;;  %602 = vadd.xlane.f32.xlu0 %v601_v27 }
  0xa9   :  { %605 = vadd.xlane.f32.xlu1 %v604_v32  ;;  %287 = vadd.xlane.f32.xlu0 %v286_v33 }
  0xad   :  { %290 = vadd.xlane.f32.xlu1 %v289_v36  ;;  %623 = vadd.xlane.f32.xlu0 %v622_v37 }
  0xb1   :  { %626 = vadd.xlane.f32.xlu1 %v625_v40  ;;  %608 = vadd.xlane.f32.xlu0 %v607_v41 }
  0xb5   :  { %629 = vadd.xlane.f32.xlu0 %v628_v43  ;;  %632 = vadd.xlane.f32.xlu1 %v631_v44 }
  0xc2   :  { %v204_v45 = vpop.xlane.xlu1 %203  ;;  %v198_v46 = vpop.xlane.xlu0 %197 }
  0xc3   :  { %v329_v2 = vrot.slane %v198_v46, %v6939_v63  ;;  %v337_v7 = vrot.slane %v204_v45, %v6939_v63 }
  0xc6   :  { %v207_v47 = vpop.xlane.xlu1 %206  ;;  %v201_v48 = vpop.xlane.xlu0 %200 }
  0xc7   :  { %v333_v3 = vrot.slane %v201_v48, %v6939_v63  ;;  %v341_v13 = vrot.slane %v207_v47, %v6939_v63 }
  0xc9   :  { %v455_v6 = vsel %vm454_vm1, %v333_v3, %v329_v2 }
  0xca   :  { %v6913_v49 = vpop.xlane.xlu1 %224  ;;  %v6915_v50 = vpop.xlane.xlu0 %221  ;;  %v457_v9 = vsel %vm456_vm2, %v337_v7, %v455_v6 }
  0xcb   :  { %v459_v16 = vsel %vm458_vm3, %v341_v13, %v457_v9  ;;  %v365_v38 = vrot.slane %v6913_v49, %v6939_v63  ;;  %v361_v39 = vrot.slane %v6915_v50, %v6939_v63 }
  0xcd   :  { %v468_v44 = vsel %vm454_vm1, %v365_v38, %v361_v39 }
  0xce   :  { %v6917_v51 = vpop.xlane.xlu1 %227  ;;  %v210_v52 = vpop.xlane.xlu0 %209 }
  0xcf   :  { %v345_v10 = vrot.slane %v210_v52, %v6939_v63  ;;  %v369_v40 = vrot.slane %v6917_v51, %v6939_v63 }
  0xd1   :  { %v461_v17 = vsel %vm460_vm4, %v345_v10, %v459_v16  ;;  %v469_v48 = vsel %vm456_vm2, %v369_v40, %v468_v44 }
  0xd2   :  { %v6919_v31 = vpop.xlane.xlu1 %542  ;;  %v6921_v53 = vpop.xlane.xlu0 %539 }
  0xd3   :  { %v673_v45 = vrot.slane %v6919_v31, %v6939_v63  ;;  %v669_v46 = vrot.slane %v6921_v53, %v6939_v63 }
  0xd6   :  { %v213_v54 = vpop.xlane.xlu1 %212  ;;  %v6923_v55 = vpop.xlane.xlu0 %545 }
  0xd7   :  { %v349_v14 = vrot.slane %v213_v54, %v6939_v63  ;;  %v677_v49 = vrot.slane %v6923_v55, %v6939_v63 }
  0xd9   :  { %v463_v21 = vsel %vm462_vm5, %v349_v14, %v461_v17 }
  0xda   :  { %v6925_v57 = vpop.xlane.xlu1 %245  ;;  %v6927_v58 = vpop.xlane.xlu0 %230 }
  0xdb   :  { %v373_v41 = vrot.slane %v6927_v58, %v6939_v63  ;;  %v794_v58 = vsel %vm454_vm1, %v673_v45, %v669_v46 }
  0xdd   :  { %v470_v51 = vsel %vm458_vm3, %v373_v41, %v469_v48 }
  0xde   :  { %v6933_v61 = vpop.xlane.xlu1 %548  ;;  %v6935_v62 = vpop.xlane.xlu0 %248 }
  0xdf   :  { %v681_v52 = vrot.slane %v6933_v61, %v6939_v63 }
  0xe2   :  { %v6941_v0 = vpop.xlane.xlu1 %566  ;;  %v6943_v1 = vpop.xlane.xlu0 %563 }
  0xe6   :  { %v234_v4 = vpop.xlane.xlu1 %233  ;;  %v216_v5 = vpop.xlane.xlu0 %215 }
  0xe7   :  { %v353_v15 = vrot.slane %v216_v5, %v6939_v63  ;;  %v377_v8 = vrot.slane %v234_v4, %v6939_v63  ;;  %v795_v4 = vsel %vm456_vm2, %v677_v49, %v794_v58 }
  0xe8   :  { %v796_v6 = vsel %vm458_vm3, %v681_v52, %v795_v4 }
  0xe9   :  { %v465_v22 = vsel %vm464_vm6, %v353_v15, %v463_v21  ;;  %v471_v54 = vsel %vm460_vm4, %v377_v8, %v470_v51 }
  0xea   :  { %v6951_v11 = vpop.xlane.xlu1 %551  ;;  %v6953_v12 = vpop.xlane.xlu0 %251 }
  0xeb   :  { %v685_v31 = vrot.slane %v6951_v11, %v6939_v63 }
  0xed   :  { %v797_v9 = vsel %vm460_vm4, %v685_v31, %v796_v6 }
  0xee   :  { %v219_v18 = vpop.xlane.xlu1 %218  ;;  %v6960_v19 = vpop.xlane.xlu0 %569 }
  0xef   :  { %v357_v20 = vrot.slane %v219_v18, %v6939_v63 }
  0xf1   :  { %v467_v23 = vsel %vm466_vm7, %v357_v20, %v465_v22 }
  0xf2   :  { %v6966_v24 = vpop.xlane.xlu1 %254  ;;  %v237_v25 = vpop.xlane.xlu0 %236  ;;  %v494_v26 = vsel %vm10394_vm8, %v467_v23, 0.0 }
  0xf3   :  { %495 = vadd.xlane.f32.xlu0 %v494_v26  ;;  %v381_v47 = vrot.slane %v237_v25, %v6939_v63  ;;  %v405_v38 = vrot.slane %v6966_v24, %v6939_v63  ;;  %v709_v24 = vrot.slane %v6960_v19, %v6939_v63 }
  0xf5   :  { %v472_v3 = vsel %vm462_vm5, %v381_v47, %v471_v54 }
  0xf6   :  { %v6969_v27 = vpop.xlane.xlu1 %272  ;;  %v6971_v28 = vpop.xlane.xlu0 %269 }
  0xfa   :  { %v6973_v29 = vpop.xlane.xlu1 %572  ;;  %v555_v30 = vpop.xlane.xlu0 %554 }
  0xfb   :  { %v689_v2 = vrot.slane %v555_v30, %v6939_v63  ;;  %v397_v30 = vrot.slane %v6935_v62, %v6939_v63  ;;  %v705_v62 = vrot.slane %v6941_v0, %v6939_v63  ;;  %v713_v46 = vrot.slane %v6973_v29, %v6939_v63 }
  0xfd   :  { %v798_v15 = vsel %vm462_vm5, %v689_v2, %v797_v9  ;;  %v429_v9 = vrot.slane %v6969_v27, %v6939_v63 }
  0xfe   :  { %v6975_v32 = vpop.xlane.xlu1 %590  ;;  %v6977_v33 = vpop.xlane.xlu0 %587 }
 0x102   :  { %v6979_v34 = vpop.xlane.xlu1 %257  ;;  %v240_v35 = vpop.xlane.xlu0 %239 }
 0x103   :  { %v385_v50 = vrot.slane %v240_v35, %v6939_v63  ;;  %v401_v35 = vrot.slane %v6953_v12, %v6939_v63  ;;  %v409_v39 = vrot.slane %v6979_v34, %v6939_v63  ;;  %v701_v12 = vrot.slane %v6943_v1, %v6939_v63 }
 0x105   :  { %v473_v61 = vsel %vm464_vm6, %v385_v50, %v472_v3  ;;  %v801_v49 = vsel %vm454_vm1, %v705_v62, %v701_v12 }
 0x106   :  { %v558_v36 = vpop.xlane.xlu1 %557  ;;  %v6981_v37 = vpop.xlane.xlu0 %275  ;;  %v802_v52 = vsel %vm456_vm2, %v709_v24, %v801_v49 }
 0x107   :  { %v693_v5 = vrot.slane %v558_v36, %v6939_v63  ;;  %v393_v36 = vrot.slane %v6925_v57, %v6939_v63  ;;  %v803_v31 = vsel %vm458_vm3, %v713_v46, %v802_v52 }
 0x109   :  { %v799_v16 = vsel %vm464_vm6, %v693_v5, %v798_v15  ;;  %v475_v8 = vsel %vm454_vm1, %v397_v30, %v393_v36  ;;  %v737_v15 = vrot.slane %v6975_v32, %v6939_v63 }
 0x10a   :  { %v6992_v42 = vpop.xlane.xlu1 %593  ;;  %v6994_v43 = vpop.xlane.xlu0 %575  ;;  %v476_v57 = vsel %vm456_vm2, %v401_v35, %v475_v8 }
 0x10b   :  { %v477_v45 = vsel %vm458_vm3, %v405_v38, %v476_v57  ;;  %v717_v0 = vrot.slane %v6994_v43, %v6939_v63 }
 0x10c   :  { %v478_v47 = vsel %vm460_vm4, %v409_v39, %v477_v45 }
 0x10e   :  { %v261_v53 = vpop.xlane.xlu1 %260  ;;  %v243_v56 = vpop.xlane.xlu0 %242 }
 0x10f   :  { %v389_v55 = vrot.slane %v243_v56, %v6939_v63  ;;  %v413_v44 = vrot.slane %v261_v53, %v6939_v63  ;;  %v804_v53 = vsel %vm460_vm4, %v717_v0, %v803_v31 }
 0x111   :  { %v474_v7 = vsel %vm466_vm7, %v389_v55, %v473_v61  ;;  %v479_v51 = vsel %vm462_vm5, %v413_v44, %v478_v47 }
 0x112   :  { %v561_v10 = vpop.xlane.xlu1 %560  ;;  %v7022_v11 = vpop.xlane.xlu0 %278  ;;  %v497_v13 = vsel %vm10394_vm8, %v474_v7, 0.0 }
 0x113   :  { %v697_v14 = vrot.slane %v561_v10, %v6939_v63  ;;  %498 = vadd.xlane.f32.xlu1 %v497_v13  ;;  %v425_v10 = vrot.slane %v6971_v28, %v6939_v63  ;;  %v433_v13 = vrot.slane %v6981_v37, %v6939_v63 }
 0x115   :  { %v800_v17 = vsel %vm466_vm7, %v697_v14, %v799_v16  ;;  %v437_v14 = vrot.slane %v7022_v11, %v6939_v63  ;;  %v733_v16 = vrot.slane %v6977_v33, %v6939_v63  ;;  %v482_v28 = vsel %vm454_vm1, %v429_v9, %v425_v10 }
 0x116   :  { %v7029_v18 = vpop.xlane.xlu1 %596  ;;  %v579_v20 = vpop.xlane.xlu0 %578  ;;  %v826_v21 = vsel %vm10394_vm8, %v800_v17, 0.0  ;;  %v483_v11 = vsel %vm456_vm2, %v433_v13, %v482_v28 }
 0x117   :  { %827 = vadd.xlane.f32.xlu0 %v826_v21  ;;  %v721_v50 = vrot.slane %v579_v20, %v6939_v63  ;;  %v741_v21 = vrot.slane %v6992_v42, %v6939_v63  ;;  %v484_v32 = vsel %vm458_vm3, %v437_v14, %v483_v11  ;;  %v745_v33 = vrot.slane %v7029_v18, %v6939_v63 }
 0x119   :  { %v805_v3 = vsel %vm462_vm5, %v721_v50, %v804_v53 }
 0x11a   :  { %v7032_v22 = vpop.xlane.xlu1 %614  ;;  %v7034_v23 = vpop.xlane.xlu0 %611 }
 0x11b   :  { %v769_v18 = vrot.slane %v7032_v22, %v6939_v63  ;;  %v765_v62 = vrot.slane %v7034_v23, %v6939_v63 }
 0x11d   :  { %v815_v49 = vsel %vm454_vm1, %v769_v18, %v765_v62 }
 0x11e   :  { %v7036_v25 = vpop.xlane.xlu1 %281  ;;  %v264_v26 = vpop.xlane.xlu0 %263 }
 0x11f   :  { %v417_v34 = vrot.slane %v264_v26, %v6939_v63  ;;  %v441_v17 = vrot.slane %v7036_v25, %v6939_v63  ;;  %v808_v25 = vsel %vm454_vm1, %v737_v15, %v733_v16 }
 0x120   :  { %v809_v38 = vsel %vm456_vm2, %v741_v21, %v808_v25 }
 0x121   :  { %v480_v54 = vsel %vm464_vm6, %v417_v34, %v479_v51  ;;  %v485_v30 = vsel %vm460_vm4, %v441_v17, %v484_v32  ;;  %v810_v44 = vsel %vm458_vm3, %v745_v33, %v809_v38 }
 0x122   :  { %v7048_v40 = vpop.xlane.xlu1 %599  ;;  %v582_v41 = vpop.xlane.xlu0 %581 }
 0x123   :  { %v725_v29 = vrot.slane %v582_v41, %v6939_v63  ;;  %v749_v35 = vrot.slane %v7048_v40, %v6939_v63 }
 0x125   :  { %v806_v4 = vsel %vm464_vm6, %v725_v29, %v805_v3  ;;  %v811_v34 = vsel %vm460_vm4, %v749_v35, %v810_v44  ;;  %v7148_v44 = vld [vmem:[#allocation6 + $0x8] sm:$0xff] }
 0x126   :  { %v267_v1 = vpop.xlane.xlu1 %266  ;;  %v7066_v48 = vpop.xlane.xlu0 %617 }
 0x127   :  { %v421_v19 = vrot.slane %v267_v1, %v6939_v63  ;;  %v773_v57 = vrot.slane %v7066_v48, %v6939_v63 }
 0x129   :  { %v481_v43 = vsel %vm466_vm7, %v421_v19, %v480_v54  ;;  %v816_v19 = vsel %vm456_vm2, %v773_v57, %v815_v49  ;;  %v7150_v57 = vld [vmem:[#allocation6] sm:$0xff]  ;;  %v7169_v49 = vld [vmem:[#allocation6 + $0x30] sm:$0xff] }
 0x12a   :  { %v585_v56 = vpop.xlane.xlu1 %584  ;;  %v285_v58 = vpop.xlane.xlu0 %284  ;;  %v500_v2 = vsel %vm10394_vm8, %v481_v43, 0.0 }
 0x12b   :  { %v729_v55 = vrot.slane %v585_v56, %v6939_v63  ;;  %501 = vadd.xlane.f32.xlu1 %v500_v2  ;;  %v445_v37 = vrot.slane %v285_v58, %v6939_v63 }
 0x12d   :  { %v807_v5 = vsel %vm466_vm7, %v729_v55, %v806_v4  ;;  %v486_v8 = vsel %vm462_vm5, %v445_v37, %v485_v30 }
 0x12e   :  { %v621_v61 = vpop.xlane.xlu1 %620  ;;  %v603_v6 = vpop.xlane.xlu0 %602  ;;  %v829_v7 = vsel %vm10394_vm8, %v807_v5, 0.0 }
 0x12f   :  { %830 = vadd.xlane.f32.xlu0 %v829_v7  ;;  %v753_v39 = vrot.slane %v603_v6, %v6939_v63  ;;  %v777_v45 = vrot.slane %v621_v61, %v6939_v63 }
 0x131   :  { %v812_v1 = vsel %vm462_vm5, %v753_v39, %v811_v34  ;;  %v817_v52 = vsel %vm458_vm3, %v777_v45, %v816_v19  ;;  %v7155_v34 = vld [vmem:[#allocation6 + $0x28] sm:$0xff]  ;;  %v7157_v45 = vld [vmem:[#allocation6 + $0x20] sm:$0xff] }
 0x132   :  { %v606_v27 = vpop.xlane.xlu1 %605  ;;  %v288_v20 = vpop.xlane.xlu0 %287 }
 0x133   :  { %v449_v26 = vrot.slane %v288_v20, %v6939_v63  ;;  %v757_v12 = vrot.slane %v606_v27, %v6939_v63 }
 0x135   :  { %v487_v40 = vsel %vm464_vm6, %v449_v26, %v486_v8  ;;  %v813_v50 = vsel %vm464_vm6, %v757_v12, %v812_v1  ;;  %v7146_v12 = vsub.s32 0, %v6931_v60 }
 0x136   :  { %v291_v36 = vpop.xlane.xlu1 %290  ;;  %v624_v42 = vpop.xlane.xlu0 %623 }
 0x137   :  { %v453_v41 = vrot.slane %v291_v36, %v6939_v63  ;;  %v781_v23 = vrot.slane %v624_v42, %v6939_v63  ;;  %10399 = vst [vmem:[#allocation18_spill] sm:$0xff] %v7146_v12 }
 0x139   :  { %v488_v24 = vsel %vm466_vm7, %v453_v41, %v487_v40  ;;  %v818_v43 = vsel %vm460_vm4, %v781_v23, %v817_v52 }
 0x13a   :  { %v627_v46 = vpop.xlane.xlu1 %626  ;;  %v609_v22 = vpop.xlane.xlu0 %608  ;;  %v503_v47 = vsel %vm10394_vm8, %v488_v24, 0.0 }
 0x13b   :  { %v761_v0 = vrot.slane %v609_v22, %v6939_v63  ;;  %504 = vadd.xlane.f32.xlu1 %v503_v47  ;;  %v785_v48 = vrot.slane %v627_v46, %v6939_v63 }
 0x13d   :  { %v814_v51 = vsel %vm466_vm7, %v761_v0, %v813_v50  ;;  %v819_v58 = vsel %vm462_vm5, %v785_v48, %v818_v43  ;;  %v7171_v48 = vld [vmem:[#allocation6 + $0x10] sm:$0xff] }
 0x13e   :  { %v630_v29 = vpop.xlane.xlu0 %629  ;;  %v633_v54 = vpop.xlane.xlu1 %632  ;;  %v832_v31 = vsel %vm10394_vm8, %v814_v51, 0.0 }
 0x13f   :  { %v789_v53 = vrot.slane %v630_v29, %v6939_v63  ;;  %v793_v56 = vrot.slane %v633_v54, %v6939_v63  ;;  %833 = vadd.xlane.f32.xlu0 %v832_v31  ;;  %v7179_v29 = vld [vmem:[#allocation6 + $0x48] sm:$0xff]  ;;  %v7181_v54 = vld [vmem:[#allocation6 + $0x40] sm:$0xff] }
 0x141   :  { %v820_v2 = vsel %vm464_vm6, %v789_v53, %v819_v58  ;;  %v7189_v58 = vld [vmem:[#allocation6 + $0x38] sm:$0xff] }
 0x142   :  { %v821_v55 = vsel %vm466_vm7, %v793_v56, %v820_v2  ;;  %v7191_v2 = vld [vmem:[#allocation6 + $0x18] sm:$0xff] }
 0x143   :  { %v835_v3 = vsel %vm10394_vm8, %v821_v55, 0.0 }
 0x144   :  { %836 = vadd.xlane.f32.xlu1 %v835_v3 }
 0x17c   :  { %v496_v4 = vpop.xlane.xlu0 %495 }
 0x17d   :  { %v839_v5 = vmul.f32 0.0625, %v496_v4 }
 0x17f   :  { %863 = vxpose.xlu0.b32.start [1/4] (short) (narrow) %v839_v5, 8  ;;  %v847_v9 = vmul.f32 %v839_v5, %v839_v5 }
 0x19c   :  { %v499_v61 = vpop.xlane.xlu1 %498 }
 0x19d   :  { %v840_v6 = vmul.f32 0.0625, %v499_v61  ;;  %v7199_v61 = vld [vmem:[#allocation6 + $0x60] sm:$0xff] }
 0x19f   :  { %864 = vxpose.xlu0.b32.cont [2/4] (short) (narrow) %v840_v6, 8  ;;  %v848_v20 = vmul.f32 %v840_v6, %v840_v6  ;;  %v7201_v6 = vld [vmem:[#allocation6 + $0x50] sm:$0xff] }
 0x1a0   :  { %v828_v7 = vpop.xlane.xlu0 %827 }
 0x1a1   :  { %v843_v10 = vmul.f32 0.0625, %v828_v7 }
 0x1a3   :  { %v851_v13 = vsub.f32 %v843_v10, %v847_v9 }
 0x1a5   :  { %v855_v14 = vadd.f32 1e-05, %v851_v13 }
 0x1a7   :  { %6452 = vrsqrt.f32 %v855_v14  ;;  %v7209_v14 = vld [vmem:[#allocation6 + $0x58] sm:$0xff] }
 0x1b4   :  { %v6453_v15 = vpop.eup %6452  ;;  %v502_v16 = vpop.xlane.xlu1 %501 }
 0x1b5   :  { %v841_v17 = vmul.f32 0.0625, %v502_v16  ;;  %895 = vxpose.xlu1.b32.start [1/4] (short) (narrow) %v6453_v15, 8  ;;  %v7211_v15 = vld [vmem:[#allocation6 + $0x68] sm:$0xff] }
 0x1b7   :  { %865 = vxpose.xlu0.b32.cont [3/4] (short) (narrow) %v841_v17, 8  ;;  %v849_v33 = vmul.f32 %v841_v17, %v841_v17 }
 0x1b8   :  { %v831_v27 = vpop.xlane.xlu0 %830 }
 0x1b9   :  { %v844_v28 = vmul.f32 0.0625, %v831_v27 }
 0x1bb   :  { %v852_v21 = vsub.f32 %v844_v28, %v848_v20  ;;  %v7219_v28 = vld [vmem:[#allocation6 + $0x80] sm:$0xff] }
 0x1bd   :  { %v856_v37 = vadd.f32 1e-05, %v852_v21  ;;  %v7221_v21 = vld [vmem:[#allocation6 + $0x70] sm:$0xff] }
 0x1bf   :  { %6454 = vrsqrt.f32 %v856_v37 }
 0x1c4   :  { %v505_v11 = vpop.xlane.xlu1 %504 }
 0x1c5   :  { %v842_v26 = vmul.f32 0.0625, %v505_v11 }
 0x1c7   :  { %866 = vxpose.xlu0.b32.end [4/4] (short) (narrow) %v842_v26, 8  ;;  %v850_v38 = vmul.f32 %v842_v26, %v842_v26 }
 0x1c8   :  { %v834_v32 = vpop.xlane.xlu0 %833 }
 0x1c9   :  { %v845_v25 = vmul.f32 0.0625, %v834_v32 }
 0x1cb   :  { %v853_v30 = vsub.f32 %v845_v25, %v849_v33  ;;  %v7229_v33 = vld [vmem:[#allocation6 + $0x78] sm:$0xff]  ;;  %v7231_v25 = vld [vmem:[#allocation6 + $0x88] sm:$0xff] }
 0x1cc   :  { %v6455_v35 = vpop.eup %6454 }
 0x1cd   :  { %v857_v36 = vadd.f32 1e-05, %v853_v30  ;;  %v837_v42 = vpop.xlane.xlu1 %836  ;;  %896 = vxpose.xlu1.b32.cont [2/4] (short) (narrow) %v6455_v35, 8 }
 0x1ce   :  { %v846_v39 = vmul.f32 0.0625, %v837_v42 }
 0x1cf   :  { %6456 = vrsqrt.f32 %v857_v36 }
 0x1d0   :  { %v854_v41 = vsub.f32 %v846_v39, %v850_v38  ;;  %v7239_v38 = vld [vmem:[#allocation6 + $0xa0] sm:$0xff]  ;;  %v7241_v39 = vld [vmem:[#allocation6 + $0x90] sm:$0xff] }
 0x1d2   :  { %v858_v8 = vadd.f32 1e-05, %v854_v41 }
 0x1d4   :  { %6458 = vrsqrt.f32 %v858_v8 }
 0x1dc   :  { %v6457_v18 = vpop.eup %6456 }
 0x1dd   :  { %897 = vxpose.xlu1.b32.cont [3/4] (short) (narrow) %v6457_v18, 8 }
 0x1e1   :  { %v6459_v62 = vpop.eup %6458 }
 0x1e2   :  { %898 = vxpose.xlu1.b32.end [4/4] (short) (narrow) %v6459_v62, 8 }
 0x237   :  { %v879_v40 = vpop.trf.xlu0 }
 0x238   :  { %v7153_v24 = vrot.slane %v879_v40, %v7146_v12 }
 0x23a   :  { %v932_v46 = vmul.f32 %v7153_v24, %v7148_v44  ;;  %v931_v22 = vmul.f32 %v7153_v24, %v7150_v57  ;;  %v936_v0 = vmul.f32 %v7153_v24, %v7155_v34  ;;  %v935_v1 = vmul.f32 %v7153_v24, %v7157_v45 }
 0x23b   :  { %v937_v51 = vmul.f32 %v7153_v24, %v7169_v49  ;;  %v933_v52 = vmul.f32 %v7153_v24, %v7171_v48  ;;  %v940_v53 = vmul.f32 %v7153_v24, %v7179_v29  ;;  %v939_v56 = vmul.f32 %v7153_v24, %v7181_v54 }
 0x23c   :  { %v966_v47 = vsel %vm10371_vm0, %v932_v46, 0.0  ;;  %v963_v23 = vsel %vm10371_vm0, %v931_v22, 0.0  ;;  %v978_v50 = vsel %vm10371_vm0, %v936_v0, 0.0  ;;  %v975_v19 = vsel %vm10371_vm0, %v935_v1, 0.0  ;;  %v7249_v46 = vld [vmem:[#allocation6 + $0xb0] sm:$0xff]  ;;  %v7251_v22 = vld [vmem:[#allocation6 + $0xa8] sm:$0xff] }
 0x23d   :  { %967 = vadd.xlane.f32.xlu1 %v966_v47  ;;  %964 = vadd.xlane.f32.xlu0 %v963_v23  ;;  %v981_v31 = vsel %vm10371_vm0, %v937_v51, 0.0  ;;  %v969_v43 = vsel %vm10371_vm0, %v933_v52, 0.0  ;;  %v990_v55 = vsel %vm10371_vm0, %v940_v53, 0.0  ;;  %v987_v3 = vsel %vm10371_vm0, %v939_v56, 0.0  ;;  %v7264_v51 = vld [vmem:[#allocation6 + $0x98] sm:$0xff]  ;;  %v130_v52 = vld [vmem:[#allocation6 + $0xf0] sm:$0xff] }
 0x23e   :  { %v938_v4 = vmul.f32 %v7153_v24, %v7189_v58  ;;  %v934_v5 = vmul.f32 %v7153_v24, %v7191_v2  ;;  %v943_v10 = vmul.f32 %v7153_v24, %v7199_v61  ;;  %v941_v13 = vmul.f32 %v7153_v24, %v7201_v6 }
 0x23f   :  { %v942_v27 = vmul.f32 %v7153_v24, %v7209_v14  ;;  %v944_v20 = vmul.f32 %v7153_v24, %v7211_v15  ;;  %v947_v26 = vmul.f32 %v7153_v24, %v7219_v28  ;;  %v945_v32 = vmul.f32 %v7153_v24, %v7221_v21 }
 0x240   :  { %v984_v7 = vsel %vm10371_vm0, %v938_v4, 0.0  ;;  %v972_v9 = vsel %vm10371_vm0, %v934_v5, 0.0  ;;  %v999_v16 = vsel %vm10371_vm0, %v943_v10, 0.0  ;;  %v993_v17 = vsel %vm10371_vm0, %v941_v13, 0.0  ;;  %v7277_v4 = vld [vmem:[#allocation6 + $0xc0] sm:$0xff]  ;;  %v7285_v13 = vld [vmem:[#allocation6 + $0xe8] sm:$0xff] }
 0x241   :  { %979 = vadd.xlane.f32.xlu1 %v978_v50  ;;  %976 = vadd.xlane.f32.xlu0 %v975_v19  ;;  %v996_v37 = vsel %vm10371_vm0, %v942_v27, 0.0  ;;  %v1002_v11 = vsel %vm10371_vm0, %v944_v20, 0.0  ;;  %v1011_v30 = vsel %vm10371_vm0, %v947_v26, 0.0  ;;  %v1005_v35 = vsel %vm10371_vm0, %v945_v32, 0.0  ;;  %v7262_v19 = vld [vmem:[#allocation6 + $0xc8] sm:$0xff] }
 0x242   :  { %v946_v36 = vmul.f32 %v7153_v24, %v7229_v33  ;;  %v948_v42 = vmul.f32 %v7153_v24, %v7231_v25  ;;  %v951_v18 = vmul.f32 %v7153_v24, %v7239_v38  ;;  %v949_v62 = vmul.f32 %v7153_v24, %v7241_v39 }
 0x243   :  { %v953_v1 = vmul.f32 %v7153_v24, %v7249_v46  ;;  %v952_v50 = vmul.f32 %v7153_v24, %v7251_v22  ;;  %v956_v56 = vmul.f32 %v7153_v24, %v7262_v19  ;;  %v955_v10 = vmul.f32 %v7153_v24, %v7277_v4 }
 0x244   :  { %v1008_v41 = vsel %vm10371_vm0, %v946_v36, 0.0  ;;  %v1014_v8 = vsel %vm10371_vm0, %v948_v42, 0.0  ;;  %v1023_v23 = vsel %vm10371_vm0, %v951_v18, 0.0  ;;  %v1017_v0 = vsel %vm10371_vm0, %v949_v62, 0.0  ;;  %v7302_v36 = vld [vmem:[#allocation6 + $0xd8] sm:$0xff] }
 0x245   :  { %982 = vadd.xlane.f32.xlu1 %v981_v31  ;;  %970 = vadd.xlane.f32.xlu0 %v969_v43  ;;  %v1029_v43 = vsel %vm10371_vm0, %v953_v1, 0.0  ;;  %v1026_v53 = vsel %vm10371_vm0, %v952_v50, 0.0  ;;  %v1038_v5 = vsel %vm10371_vm0, %v956_v56, 0.0  ;;  %v1035_v27 = vsel %vm10371_vm0, %v955_v10, 0.0  ;;  %v7310_v62 = vld [vmem:[#allocation6 + $0xf8] sm:$0xff] }
 0x246   :  { %v960_v20 = vmul.f32 %v7153_v24, %v7285_v13  ;;  %v958_v18 = vmul.f32 %v7153_v24, %v7302_v36 }
 0x248   :  { %v1050_v26 = vsel %vm10371_vm0, %v960_v20, 0.0 }
 0x249   :  { %991 = vadd.xlane.f32.xlu1 %v990_v55  ;;  %988 = vadd.xlane.f32.xlu0 %v987_v3  ;;  %v950_v55 = vmul.f32 %v7153_v24, %v7264_v51  ;;  %v7275_v3 = vld [vmem:[#allocation6 + $0xd0] sm:$0xff] }
 0x24d   :  { %985 = vadd.xlane.f32.xlu1 %v984_v7  ;;  %973 = vadd.xlane.f32.xlu0 %v972_v9  ;;  %v1020_v7 = vsel %vm10371_vm0, %v950_v55, 0.0  ;;  %v957_v9 = vmul.f32 %v7153_v24, %v7275_v3 }
 0x251   :  { %1000 = vadd.xlane.f32.xlu1 %v999_v16  ;;  %994 = vadd.xlane.f32.xlu0 %v993_v17  ;;  %v7287_v16 = vld [vmem:[#allocation6 + $0xb8] sm:$0xff]  ;;  %v1041_v17 = vsel %vm10371_vm0, %v957_v9, 0.0 }
 0x252   :  { %v911_v40 = vpop.trf.xlu1 }
 0x253   :  { %v7254_v47 = vrot.slane %v911_v40, %v7146_v12 }
 0x255   :  { %997 = vadd.xlane.f32.xlu1 %v996_v37  ;;  %1003 = vadd.xlane.f32.xlu0 %v1002_v11  ;;  %v7267_v31 = vmul.f32 %v7254_v47, %v130_v52  ;;  %v954_v37 = vmul.f32 %v7153_v24, %v7287_v16  ;;  %v7295_v11 = vld [vmem:[#allocation6 + $0xe0] sm:$0xff]  ;;  %v1063_v42 = vmul.f32 %v7254_v47, %v7150_v57 }
 0x256   :  { %v962_v57 = vmul.f32 %v7153_v24, %v7310_v62  ;;  %v1068_v56 = vmul.f32 %v7254_v47, %v7155_v34  ;;  %v1073_v34 = vmul.f32 %v7254_v47, %v7201_v6  ;;  %v1072_v9 = vmul.f32 %v7254_v47, %v7179_v29 }
 0x257   :  { %v1032_v32 = vsel %vm10371_vm0, %v954_v37, 0.0  ;;  %v1095_v40 = vsel %vm10371_vm0, %v1063_v42, 0.0  ;;  %v1077_v29 = vmul.f32 %v7254_v47, %v7221_v21  ;;  %v1075_v20 = vmul.f32 %v7254_v47, %v7199_v61 }
 0x258   :  { %v1056_v50 = vsel %vm10371_vm0, %v962_v57, 0.0  ;;  %v1125_v10 = vsel %vm10371_vm0, %v1073_v34, 0.0  ;;  %v1081_v61 = vmul.f32 %v7254_v47, %v7241_v39  ;;  %v1078_v42 = vmul.f32 %v7254_v47, %v7229_v33 }
 0x259   :  { %1012 = vadd.xlane.f32.xlu1 %v1011_v30  ;;  %1006 = vadd.xlane.f32.xlu0 %v1005_v35  ;;  %v961_v30 = vmul.f32 %v7153_v24, %v130_v52  ;;  %v959_v35 = vmul.f32 %v7153_v24, %v7295_v11  ;;  %v1065_v52 = vmul.f32 %v7254_v47, %v7171_v48  ;;  %v1110_v48 = vsel %vm10371_vm0, %v1068_v56, 0.0 }
 0x25a   :  { %v1071_v24 = vmul.f32 %v7254_v47, %v7181_v54  ;;  %v1137_v37 = vsel %vm10371_vm0, %v1077_v29, 0.0  ;;  %v1140_v39 = vsel %vm10371_vm0, %v1078_v42, 0.0  ;;  %v1088_v33 = vmul.f32 %v7254_v47, %v7262_v19 }
 0x25c   :  { %v1119_v55 = vsel %vm10371_vm0, %v1071_v24, 0.0 }
 0x25d   :  { %1009 = vadd.xlane.f32.xlu1 %v1008_v41  ;;  %1015 = vadd.xlane.f32.xlu0 %v1014_v8  ;;  %v1053_v41 = vsel %vm10371_vm0, %v961_v30, 0.0  ;;  %v1047_v8 = vsel %vm10371_vm0, %v959_v35, 0.0  ;;  %v1079_v30 = vmul.f32 %v7254_v47, %v7219_v28  ;;  %v1149_v35 = vsel %vm10371_vm0, %v1081_v61, 0.0 }
 0x25e   :  { %v1085_v28 = vmul.f32 %v7254_v47, %v7249_v46 }
 0x261   :  { %1024 = vadd.xlane.f32.xlu1 %v1023_v23  ;;  %1018 = vadd.xlane.f32.xlu0 %v1017_v0  ;;  %v1044_v23 = vsel %vm10371_vm0, %v958_v18, 0.0  ;;  %v1067_v0 = vmul.f32 %v7254_v47, %v7157_v45  ;;  %v1161_v18 = vsel %vm10371_vm0, %v1085_v28, 0.0 }
 0x263   :  { %v1107_v1 = vsel %vm10371_vm0, %v1067_v0, 0.0  ;;  %v1087_v0 = vmul.f32 %v7254_v47, %v7277_v4  ;;  %v1090_v4 = vmul.f32 %v7254_v47, %v7302_v36  ;;  %v10362_v36 = vmov 0.0  }
 0x264   :  { %6307 = vmatprep.subr.mxu0 %v10362_v36  ;;  %6318 = vmatprep.subr.mxu1 %v10362_v36 }
 0x265   :  { %1030 = vadd.xlane.f32.xlu1 %v1029_v43  ;;  %1027 = vadd.xlane.f32.xlu0 %v1026_v53  ;;  %v1064_v43 = vmul.f32 %v7254_v47, %v7148_v44  ;;  %v1101_v53 = vsel %vm10371_vm0, %v1065_v52, 0.0  ;;  %v1066_v44 = vmul.f32 %v7254_v47, %v7191_v2  ;;  %v1122_v2 = vsel %vm10371_vm0, %v1072_v9, 0.0 }
 0x266   :  { %v1167_v19 = vsel %vm10371_vm0, %v1087_v0, 0.0  ;;  %v1092_v52 = vmul.f32 %v7254_v47, %v7285_v13  ;;  %6315 = vmatprep.mubr.msk.f32.mxu0 %vm10395_vm9, %v10362_v36  ;;  %6320 = vmatprep.mubr.msk.f32.mxu1 %vm10395_vm9, %v10362_v36 }
 0x267   :  { %v1098_v45 = vsel %vm10371_vm0, %v1064_v43, 0.0  ;;  %v1176_v43 = vsel %vm10371_vm0, %v1090_v4, 0.0  ;;  %v1248_v4 = vadd.s32 4294967272, %v6929_v59 }
 0x269   :  { %1039 = vadd.xlane.f32.xlu1 %v1038_v5  ;;  %1021 = vadd.xlane.f32.xlu0 %v1020_v7  ;;  %v1069_v5 = vmul.f32 %v7254_v47, %v7169_v49  ;;  %v1104_v7 = vsel %vm10371_vm0, %v1066_v44, 0.0  ;;  %v1076_v49 = vmul.f32 %v7254_v47, %v7211_v15  ;;  %v1131_v15 = vsel %vm10371_vm0, %v1075_v20, 0.0 }
 0x26b   :  { %v1113_v54 = vsel %vm10371_vm0, %v1069_v5, 0.0 }
 0x26d   :  { %1042 = vadd.xlane.f32.xlu1 %v1041_v17  ;;  %1036 = vadd.xlane.f32.xlu0 %v1035_v27  ;;  %v1070_v17 = vmul.f32 %v7254_v47, %v7189_v58  ;;  %v1134_v27 = vsel %vm10371_vm0, %v1076_v49, 0.0  ;;  %v1080_v58 = vmul.f32 %v7254_v47, %v7231_v25  ;;  %v1143_v25 = vsel %vm10371_vm0, %v1079_v30, 0.0 }
 0x26f   :  { %v1116_v6 = vsel %vm10371_vm0, %v1070_v17, 0.0 }
 0x271   :  { %1051 = vadd.xlane.f32.xlu1 %v1050_v26  ;;  %1033 = vadd.xlane.f32.xlu0 %v1032_v32  ;;  %v1074_v26 = vmul.f32 %v7254_v47, %v7209_v14  ;;  %v1146_v32 = vsel %vm10371_vm0, %v1080_v58, 0.0  ;;  %v1084_v14 = vmul.f32 %v7254_v47, %v7251_v22 }
 0x273   :  { %v1128_v21 = vsel %vm10371_vm0, %v1074_v26, 0.0 }
 0x275   :  { %1054 = vadd.xlane.f32.xlu1 %v1053_v41  ;;  %1048 = vadd.xlane.f32.xlu0 %v1047_v8  ;;  %v1158_v41 = vsel %vm10371_vm0, %v1084_v14, 0.0  ;;  %v1083_v8 = vmul.f32 %v7254_v47, %v7239_v38  ;;  %v1086_v38 = vmul.f32 %v7254_v47, %v7287_v16 }
 0x277   :  { %v1155_v22 = vsel %vm10371_vm0, %v1083_v8, 0.0  ;;  %v1164_v57 = vsel %vm10371_vm0, %v1086_v38, 0.0 }
 0x279   :  { %1096 = vadd.xlane.f32.xlu1 %v1095_v40  ;;  %1045 = vadd.xlane.f32.xlu0 %v1044_v23  ;;  %v1082_v40 = vmul.f32 %v7254_v47, %v7264_v51  ;;  %v1170_v23 = vsel %vm10371_vm0, %v1088_v33, 0.0  ;;  %v1091_v51 = vmul.f32 %v7254_v47, %v7295_v11  ;;  %v1182_v11 = vsel %vm10371_vm0, %v1092_v52, 0.0 }
 0x27b   :  { %v1152_v46 = vsel %vm10371_vm0, %v1082_v40, 0.0 }
 0x27d   :  { %1108 = vadd.xlane.f32.xlu1 %v1107_v1  ;;  %1057 = vadd.xlane.f32.xlu0 %v1056_v50  ;;  %v1089_v1 = vmul.f32 %v7254_v47, %v7275_v3  ;;  %v1179_v50 = vsel %vm10371_vm0, %v1091_v51, 0.0  ;;  %v1094_v3 = vmul.f32 %v7254_v47, %v7310_v62  ;;  %v7418_v47 = vld [vmem:[%s10355_s4 + $0x18] sm:$0xff]  ;;  %v7432_v62 = vld [vmem:[%s10355_s4 + $0x8] sm:$0xff]  ;;  %v1234_v51 = vadd.s32 4294967288, %v6929_v59 }
 0x27e   :  { %6308 = vmatpush3.msra.mxu0 %v7418_v47  ;;  %10401 = vst [vmem:[#allocation20_spill] sm:$0xff] %v7432_v62 }
 0x27f   :  { %v1173_v16 = vsel %vm10371_vm0, %v1089_v1, 0.0  ;;  %6309 = vmatprep.subr.mxu0 %v10362_v36  ;;  %v1241_v1 = vadd.s32 4294967280, %v6929_v59  ;;  %v7539_v52 = vsub.s32 %v1234_v51, %v6931_v60 }
 0x281   :  { %1102 = vadd.xlane.f32.xlu1 %v1101_v53  ;;  %1099 = vadd.xlane.f32.xlu0 %v1098_v45  ;;  %v1188_v53 = vsel %vm10371_vm0, %v1094_v3, 0.0  ;;  %v1185_v45 = vsel %vm10371_vm0, %v7267_v31, 0.0  ;;  %v7423_v31 = vld [vmem:[%s10355_s4 + $0x10] sm:$0xff]  ;;  %10403 = vst [vmem:[#allocation22_spill] sm:$0xff] %v7539_v52 }
 0x282   :  { %10400 = vst [vmem:[#allocation19_spill] sm:$0xff] %v7423_v31  ;;  %6310 = vmatpush3.msra.mxu0 %v7423_v31 }
 0x283   :  { %6311 = vmatprep.subr.mxu0 %v10362_v36 }
 0x284   :  { %6312 = vmatpush3.msra.mxu0 %v7432_v62 }
 0x285   :  { %1120 = vadd.xlane.f32.xlu1 %v1119_v55  ;;  %1111 = vadd.xlane.f32.xlu0 %v1110_v48  ;;  %v7445_v48 = vld [vmem:[%s10355_s4] sm:$0xff]  ;;  %s6650_s4 = smov 59  }
 0x286   :  { %10402 = vst [vmem:[#allocation21_spill] sm:$0xff] %v7445_v48  ;;  %6313 = vmatprep.subr.mxu0 %v10362_v36 }
 0x287   :  { %6314 = vmatpush3.msra.mxu0 %v7445_v48 }
 0x288   :  { %6333 = vmatprep.subr.mxu0 %v10362_v36 }
 0x289   :  { %1105 = vadd.xlane.f32.xlu1 %v1104_v7  ;;  %1114 = vadd.xlane.f32.xlu0 %v1113_v54 }
 0x28d   :  { %1126 = vadd.xlane.f32.xlu1 %v1125_v10  ;;  %1123 = vadd.xlane.f32.xlu0 %v1122_v2 }
 0x291   :  { %1135 = vadd.xlane.f32.xlu1 %v1134_v27  ;;  %1117 = vadd.xlane.f32.xlu0 %v1116_v6 }
 0x295   :  { %1138 = vadd.xlane.f32.xlu1 %v1137_v37  ;;  %1132 = vadd.xlane.f32.xlu0 %v1131_v15 }
 0x299   :  { %1147 = vadd.xlane.f32.xlu1 %v1146_v32  ;;  %1129 = vadd.xlane.f32.xlu0 %v1128_v21 }
 0x29d   :  { %1150 = vadd.xlane.f32.xlu1 %v1149_v35  ;;  %1144 = vadd.xlane.f32.xlu0 %v1143_v25 }
 0x2a1   :  { %1159 = vadd.xlane.f32.xlu1 %v1158_v41  ;;  %1141 = vadd.xlane.f32.xlu0 %v1140_v39 }
 0x2a5   :  { %1162 = vadd.xlane.f32.xlu1 %v1161_v18  ;;  %1156 = vadd.xlane.f32.xlu0 %v1155_v22 }
 0x2a9   :  { %1171 = vadd.xlane.f32.xlu1 %v1170_v23  ;;  %1153 = vadd.xlane.f32.xlu0 %v1152_v46 }
 0x2ad   :  { %1165 = vadd.xlane.f32.xlu1 %v1164_v57  ;;  %1168 = vadd.xlane.f32.xlu0 %v1167_v19 }
 0x2b1   :  { %1180 = vadd.xlane.f32.xlu1 %v1179_v50  ;;  %1174 = vadd.xlane.f32.xlu0 %v1173_v16 }
 0x2b5   :  { %1177 = vadd.xlane.f32.xlu1 %v1176_v43  ;;  %1183 = vadd.xlane.f32.xlu0 %v1182_v11  ;;  %v7542_v43 = vsub.s32 %v1241_v1, %v6931_v60 }
 0x2b7   :  { %10404 = vst [vmem:[#allocation23_spill] sm:$0xff] %v7542_v43 }
 0x2b9   :  { %1189 = vadd.xlane.f32.xlu1 %v1188_v53  ;;  %1186 = vadd.xlane.f32.xlu0 %v1185_v45  ;;  %v7549_v53 = vsub.s32 %v1248_v4, %v6931_v60 }
 0x2bb   :  { %10405 = vst [vmem:[#allocation24_spill] sm:$0xff] %v7549_v53 }
 0x2c6   :  { %v7411_v13 = vpop.xlane.xlu1 %967  ;;  %v7413_v24 = vpop.xlane.xlu0 %964 }
 0x2c7   :  { %v1238_v45 = vrot.slane %v7411_v13, %v7539_v52  ;;  %v1233_v1 = vrot.slane %v7413_v24, %v6939_v63 }
 0x2ca   :  { %v7437_v56 = vpop.xlane.xlu1 %979  ;;  %v7439_v55 = vpop.xlane.xlu0 %976 }
 0x2cb   :  { %v1262_v36 = vrot.slane %v7437_v56, %v7539_v52  ;;  %v1258_v51 = vrot.slane %v7439_v55, %v6939_v63 }
 0x2cd   :  { %v1263_v60 = vsel %vm1239_vm10, %v1262_v36, %v1258_v51 }
 0x2ce   :  { %v7450_v44 = vpop.xlane.xlu1 %982  ;;  %v7452_v5 = vpop.xlane.xlu0 %970 }
 0x2cf   :  { %v1267_v59 = vrot.slane %v7450_v44, %v7542_v43  ;;  %v1245_v13 = vrot.slane %v7452_v5, %v7542_v43 }
 0x2d1   :  { %v1268_v62 = vsel %vm10373_vm11, %v1267_v59, %v1263_v60 }
 0x2d2   :  { %v7455_v7 = vpop.xlane.xlu1 %991  ;;  %v7457_v54 = vpop.xlane.xlu0 %988 }
 0x2d3   :  { %v1281_v48 = vrot.slane %v7455_v7, %v7539_v52  ;;  %v1277_v4 = vrot.slane %v7457_v54, %v6939_v63 }
 0x2d5   :  { %v1282_v31 = vsel %vm1239_vm10, %v1281_v48, %v1277_v4 }
 0x2d6   :  { %v7459_v34 = vpop.xlane.xlu1 %985  ;;  %v7461_v9 = vpop.xlane.xlu0 %973 }
 0x2d7   :  { %v1272_v44 = vrot.slane %v7459_v34, %v7549_v53  ;;  %v1252_v7 = vrot.slane %v7461_v9, %v7549_v53 }
 0x2d9   :  { %v1273_v59 = vsel %vm10372_vm12, %v1272_v44, %v1268_v62 }
 0x2da   :  { %v7463_v10 = vpop.xlane.xlu1 %1000  ;;  %v7465_v2 = vpop.xlane.xlu0 %994 }
 0x2db   :  { %v1286_v56 = vrot.slane %v7465_v2, %v7542_v43  ;;  %v1240_v2 = vsel %vm1239_vm10, %v1238_v45, %v1233_v1 }
 0x2dc   :  { %v1247_v9 = vsel %vm10373_vm11, %v1245_v13, %v1240_v2 }
 0x2dd   :  { %v1287_v36 = vsel %vm10373_vm11, %v1286_v56, %v1282_v31  ;;  %v1254_v60 = vsel %vm10372_vm12, %v1252_v7, %v1247_v9 }
 0x2de   :  { %v7467_v49 = vpop.xlane.xlu1 %997  ;;  %v7469_v17 = vpop.xlane.xlu0 %1003  ;;  %v1388_v2 = vsel %vm454_vm1, %v1273_v59, %v1254_v60 }
 0x2df   :  { %v1291_v54 = vrot.slane %v7467_v49, %v7549_v53  ;;  %v1300_v5 = vrot.slane %v7469_v17, %v7539_v52  ;;  %v1296_v49 = vrot.slane %v7463_v10, %v6939_v63 }
 0x2e1   :  { %v1292_v48 = vsel %vm10372_vm12, %v1291_v54, %v1287_v36  ;;  %v1301_v10 = vsel %vm1239_vm10, %v1300_v5, %v1296_v49 }
 0x2e2   :  { %v7471_v27 = vpop.xlane.xlu1 %1012  ;;  %v7473_v6 = vpop.xlane.xlu0 %1006 }
 0x2e3   :  { %v1305_v34 = vrot.slane %v7473_v6, %v7542_v43  ;;  %v1315_v31 = vrot.slane %v7471_v27, %v6939_v63 }
 0x2e5   :  { %v1306_v62 = vsel %vm10373_vm11, %v1305_v34, %v1301_v10 }
 0x2e6   :  { %v7475_v29 = vpop.xlane.xlu1 %1009  ;;  %v7477_v20 = vpop.xlane.xlu0 %1015 }
 0x2e7   :  { %v1310_v51 = vrot.slane %v7475_v29, %v7549_v53  ;;  %v1319_v29 = vrot.slane %v7477_v20, %v7539_v52 }
 0x2e9   :  { %v1311_v56 = vsel %vm10372_vm12, %v1310_v51, %v1306_v62 }
 0x2ea   :  { %v7479_v37 = vpop.xlane.xlu1 %1024  ;;  %v7481_v15 = vpop.xlane.xlu0 %1018 }
 0x2eb   :  { %v1334_v4 = vrot.slane %v7479_v37, %v6939_v63  ;;  %v1324_v13 = vrot.slane %v7481_v15, %v7542_v43 }
 0x2ee   :  { %v7483_v58 = vpop.xlane.xlu1 %1030  ;;  %v7485_v26 = vpop.xlane.xlu0 %1027 }
 0x2ef   :  { %v1338_v6 = vrot.slane %v7485_v26, %v7539_v52  ;;  %v1343_v27 = vrot.slane %v7483_v58, %v7542_v43 }
 0x2f1   :  { %v1339_v15 = vsel %vm1239_vm10, %v1338_v6, %v1334_v4 }
 0x2f2   :  { %v7487_v32 = vpop.xlane.xlu1 %1039  ;;  %v7489_v21 = vpop.xlane.xlu0 %1021  ;;  %v1344_v49 = vsel %vm10373_vm11, %v1343_v27, %v1339_v15 }
 0x2f3   :  { %v1357_v20 = vrot.slane %v7487_v32, %v7539_v52  ;;  %v1320_v32 = vsel %vm1239_vm10, %v1319_v29, %v1315_v31 }
 0x2f6   :  { %v7491_v61 = vpop.xlane.xlu1 %1042  ;;  %v7493_v30 = vpop.xlane.xlu0 %1036 }
 0x2f7   :  { %v1353_v1 = vrot.slane %v7493_v30, %v6939_v63  ;;  %v1329_v30 = vrot.slane %v7489_v21, %v7549_v53 }
 0x2f9   :  { %v1358_v54 = vsel %vm1239_vm10, %v1357_v20, %v1353_v1 }
 0x2fa   :  { %v7495_v35 = vpop.xlane.xlu1 %1051  ;;  %v7497_v25 = vpop.xlane.xlu0 %1033 }
 0x2fb   :  { %v1376_v7 = vrot.slane %v7495_v35, %v7539_v52  ;;  %v1348_v58 = vrot.slane %v7497_v25, %v7549_v53  ;;  %v1389_v25 = vsel %vm456_vm2, %v1292_v48, %v1388_v2 }
 0x2fc   :  { %v1390_v51 = vsel %vm458_vm3, %v1311_v56, %v1389_v25 }
 0x2fd   :  { %v1349_v59 = vsel %vm10372_vm12, %v1348_v58, %v1344_v49 }
 0x2fe   :  { %v7499_v14 = vpop.xlane.xlu1 %1054  ;;  %v7501_v42 = vpop.xlane.xlu0 %1048 }
 0x2ff   :  { %v1372_v26 = vrot.slane %v7501_v42, %v6939_v63  ;;  %v1362_v42 = vrot.slane %v7491_v61, %v7542_v43  ;;  %v1381_v21 = vrot.slane %v7499_v14, %v7542_v43  ;;  %v1325_v61 = vsel %vm10373_vm11, %v1324_v13, %v1320_v32 }
 0x300   :  { %v1330_v9 = vsel %vm10372_vm12, %v1329_v30, %v1325_v61 }
 0x301   :  { %v1377_v34 = vsel %vm1239_vm10, %v1376_v7, %v1372_v26  ;;  %v1363_v60 = vsel %vm10373_vm11, %v1362_v42, %v1358_v54  ;;  %v1391_v10 = vsel %vm460_vm4, %v1330_v9, %v1390_v51 }
 0x302   :  { %v7503_v41 = vpop.xlane.xlu1 %1096  ;;  %v7505_v39 = vpop.xlane.xlu0 %1045  ;;  %v1382_v6 = vsel %vm10373_vm11, %v1381_v21, %v1377_v34  ;;  %v1392_v62 = vsel %vm462_vm5, %v1349_v59, %v1391_v10 }
 0x303   :  { %v1367_v5 = vrot.slane %v7505_v39, %v7549_v53 }
 0x305   :  { %v1368_v48 = vsel %vm10372_vm12, %v1367_v5, %v1363_v60 }
 0x306   :  { %v7507_v28 = vpop.xlane.xlu1 %1108  ;;  %v7509_v8 = vpop.xlane.xlu0 %1057  ;;  %v1393_v56 = vsel %vm464_vm6, %v1368_v48, %v1392_v62  ;;  %v2250_v62 = vld [vmem:[#allocation3 + $0x8] sm:$0xff] }
 0x307   :  { %v1386_v35 = vrot.slane %v7509_v8, %v7549_v53  ;;  %v1432_v8 = vrot.slane %v7503_v41, %v6939_v63 }
 0x309   :  { %v1387_v31 = vsel %vm10372_vm12, %v1386_v35, %v1382_v6 }
 0x30a   :  { %v7511_v18 = vpop.xlane.xlu1 %1102  ;;  %v7513_v22 = vpop.xlane.xlu0 %1099  ;;  %v7681_v27 = vsel %vm466_vm7, %v1387_v31, %v1393_v56 }
 0x30b   :  { %v1436_v14 = vrot.slane %v7513_v22, %v7539_v52  ;;  %v1441_v29 = vrot.slane %v7511_v18, %v7542_v43  ;;  %v1451_v18 = vrot.slane %v7507_v28, %v6939_v63 }
 0x30d   :  { %v1437_v41 = vsel %vm1239_vm10, %v1436_v14, %v1432_v8 }
 0x30e   :  { %v7515_v33 = vpop.xlane.xlu1 %1120  ;;  %v7517_v40 = vpop.xlane.xlu0 %1111  ;;  %v1442_v30 = vsel %vm10373_vm11, %v1441_v29, %v1437_v41 }
 0x30f   :  { %v1455_v1 = vrot.slane %v7517_v40, %v7539_v52  ;;  %v1470_v4 = vrot.slane %v7515_v33, %v6939_v63 }
 0x312   :  { %v7519_v23 = vpop.xlane.xlu1 %1105  ;;  %v7521_v46 = vpop.xlane.xlu0 %1114 }
 0x313   :  { %v1446_v15 = vrot.slane %v7519_v23, %v7549_v53 }
 0x315   :  { %v1447_v14 = vsel %vm10372_vm12, %v1446_v15, %v1442_v30 }
 0x316   :  { %v7523_v38 = vpop.xlane.xlu1 %1126  ;;  %v7525_v0 = vpop.xlane.xlu0 %1123 }
 0x317   :  { %v1474_v22 = vrot.slane %v7525_v0, %v7539_v52  ;;  %v1460_v0 = vrot.slane %v7521_v46, %v7542_v43  ;;  %v1479_v40 = vrot.slane %v7523_v38, %v7542_v43  ;;  %v1456_v46 = vsel %vm1239_vm10, %v1455_v1, %v1451_v18 }
 0x319   :  { %v1475_v20 = vsel %vm1239_vm10, %v1474_v22, %v1470_v4  ;;  %v1461_v38 = vsel %vm10373_vm11, %v1460_v0, %v1456_v46 }
 0x31a   :  { %v7527_v57 = vpop.xlane.xlu1 %1135  ;;  %v7529_v19 = vpop.xlane.xlu0 %1117 }
 0x31b   :  { %v1493_v42 = vrot.slane %v7527_v57, %v7539_v52  ;;  %v1465_v7 = vrot.slane %v7529_v19, %v7549_v53 }
 0x31d   :  { %v1466_v61 = vsel %vm10372_vm12, %v1465_v7, %v1461_v38  ;;  %v10406_v7 = vmov 0.0  }
 0x31e   :  { %v7533_v50 = vpop.xlane.xlu1 %1138  ;;  %v7535_v16 = vpop.xlane.xlu0 %1132  ;;  %v1581_v60 = vsel %vm454_vm1, %v1466_v61, %v1447_v14 }
 0x31f   :  { %v1489_v33 = vrot.slane %v7535_v16, %v6939_v63  ;;  %v1498_v54 = vrot.slane %v7533_v50, %v7542_v43 }
 0x321   :  { %v1494_v57 = vsel %vm1239_vm10, %v1493_v42, %v1489_v33  ;;  %v2251_v33 = vsub.f32 %v2250_v62, %v7681_v27 }
 0x322   :  { %v7544_v11 = vpop.xlane.xlu1 %1147  ;;  %v7546_v3 = vpop.xlane.xlu0 %1129  ;;  %v1499_v9 = vsel %vm10373_vm11, %v1498_v54, %v1494_v57  ;;  %v6653_v54 = vmov 66  }
 0x323   :  { %v1512_v23 = vrot.slane %v7544_v11, %v7539_v52  ;;  %v1484_v21 = vrot.slane %v7546_v3, %v7549_v53 }
 0x326   :  { %v7569_v55 = vpop.xlane.xlu1 %1150  ;;  %v7571_v24 = vpop.xlane.xlu0 %1144 }
 0x327   :  { %v1508_v28 = vrot.slane %v7571_v24, %v6939_v63  ;;  %v1480_v24 = vsel %vm10373_vm11, %v1479_v40, %v1475_v20  ;;  %v1517_v19 = vrot.slane %v7569_v55, %v7542_v43 }
 0x328   :  { %v1485_v25 = vsel %vm10372_vm12, %v1484_v21, %v1480_v24 }
 0x329   :  { %v1513_v50 = vsel %vm1239_vm10, %v1512_v23, %v1508_v28 }
 0x32a   :  { %v7593_v17 = vpop.xlane.xlu1 %1159  ;;  %v7595_v45 = vpop.xlane.xlu0 %1141  ;;  %v1518_v51 = vsel %vm10373_vm11, %v1517_v19, %v1513_v50 }
 0x32b   :  { %v1503_v5 = vrot.slane %v7595_v45, %v7549_v53 }
 0x32e   :  { %v7623_v44 = vpop.xlane.xlu1 %1162  ;;  %v7625_v37 = vpop.xlane.xlu0 %1156 }
 0x32f   :  { %v1527_v16 = vrot.slane %v7625_v37, %v6939_v63  ;;  %v1531_v37 = vrot.slane %v7593_v17, %v7539_v52  ;;  %v1536_v11 = vrot.slane %v7623_v44, %v7542_v43 }
 0x331   :  { %v1532_v55 = vsel %vm1239_vm10, %v1531_v37, %v1527_v16  ;;  %v6648_v16 = vmov 65  }
 0x332   :  { %v7650_v36 = vpop.xlane.xlu1 %1171  ;;  %v7652_v39 = vpop.xlane.xlu0 %1153  ;;  %v1537_v48 = vsel %vm10373_vm11, %v1536_v11, %v1532_v55  ;;  %6443 = vset.pattern.permute.xlu0 %v6648_v16 }
 0x333   :  { %v1522_v2 = vrot.slane %v7652_v39, %v7549_v53  ;;  %v1550_v44 = vrot.slane %v7650_v36, %v7539_v52  ;;  %v1504_v39 = vsel %vm10372_vm12, %v1503_v5, %v1499_v9  ;;  %v1582_v36 = vsel %vm456_vm2, %v1485_v25, %v1581_v60 }
 0x334   :  { %v1583_v41 = vsel %vm458_vm3, %v1504_v39, %v1582_v36 }
 0x335   :  { %v1523_v8 = vsel %vm10372_vm12, %v1522_v2, %v1518_v51 }
 0x336   :  { %v1166_v13 = vpop.xlane.xlu1 %1165  ;;  %v1169_v26 = vpop.xlane.xlu0 %1168  ;;  %v1584_v56 = vsel %vm460_vm4, %v1523_v8, %v1583_v41 }
 0x337   :  { %v1546_v3 = vrot.slane %v1169_v26, %v6939_v63  ;;  %v1541_v34 = vrot.slane %v1166_v13, %v7549_v53  ;;  %v1197_v26 = vld [vmem:[#allocation3] sm:$0xff] }
 0x338   :  { %v1396_v15 = vsub.f32 %v1197_v26, %v7681_v27 }
 0x339   :  { %v1551_v6 = vsel %vm1239_vm10, %v1550_v44, %v1546_v3  ;;  %v1542_v22 = vsel %vm10372_vm12, %v1541_v34, %v1537_v48 }
 0x33a   :  { %v1181_v58 = vpop.xlane.xlu1 %1180  ;;  %v1175_v32 = vpop.xlane.xlu0 %1174  ;;  %v1585_v40 = vsel %vm462_vm5, %v1542_v22, %v1584_v56 }
 0x33b   :  { %v1555_v17 = vrot.slane %v1175_v32, %v7542_v43  ;;  %v1565_v10 = vrot.slane %v1181_v58, %v6939_v63  ;;  %v6649_v58 = vmov 64  }
 0x33c   :  { %6442 = vset.pattern.permute.xlu1 %v6649_v58 }
 0x33d   :  { %v1556_v31 = vsel %vm10373_vm11, %v1555_v17, %v1551_v6 }
 0x33e   :  { %v1178_v35 = vpop.xlane.xlu1 %1177  ;;  %v1184_v45 = vpop.xlane.xlu0 %1183 }
 0x33f   :  { %v1560_v49 = vrot.slane %v1178_v35, %v7549_v53  ;;  %v1569_v59 = vrot.slane %v1184_v45, %v7539_v52  ;;  %v7779_v45 = vld [vmem:[%s10352_s1] sm:$0xff] }
 0x341   :  { %v1561_v4 = vsel %vm10372_vm12, %v1560_v49, %v1556_v31  ;;  %v1570_v18 = vsel %vm1239_vm10, %v1569_v59, %v1565_v10 }
 0x342   :  { %v1190_v29 = vpop.xlane.xlu1 %1189  ;;  %v1187_v1 = vpop.xlane.xlu0 %1186  ;;  %v1586_v46 = vsel %vm464_vm6, %v1561_v4, %v1585_v40 }
 0x343   :  { %v1579_v0 = vrot.slane %v1190_v29, %v7549_v53  ;;  %v1574_v13 = vrot.slane %v1187_v1, %v7542_v43  ;;  %v8279_v43 = vld [vmem:[%s10358_s7 + $0x128] sm:$0xff] }
 0x345   :  { %v1575_v20 = vsel %vm10373_vm11, %v1574_v13, %v1570_v18 }
 0x346   :  { %v1580_v30 = vsel %vm10372_vm12, %v1579_v0, %v1575_v20 }
 0x347   :  { %v1587_v28 = vsel %vm466_vm7, %v1580_v30, %v1586_v46 }
 0x348   :  { %v1589_v38 = vmul.f32 %v1587_v28, %v1396_v15  ;;  %v7753_v42 = vmul.f32 %v2251_v33, %v1587_v28 }
 0x34a   :  { %6316 = vmatmul.mubr.msk.f32.vlgmr.msra.gmra.mxu0 %vm10371_vm0, %v1589_v38 }
 0x34b   :  { %6335 = vmatprep.mubr.msk.f32.mxu0 %vm10395_vm9, %v10406_v7 }
 0x40a   :  { %v7759_v32 = vpop.f32.mrf.mxu0 }
 0x40b   :  { %1809 = vrot.lane.b32.xlu1 %v7759_v32, %s6650_s4  ;;  %1664 = vrot.lane.b32.xlu0 %v7759_v32, %s6651_s22 }
 0x40c   :  { %6319 = vmatpush3.msra.mxu1 %v7759_v32  ;;  %v6317_v27 = vpop.f32.mrf.mxu0 }
 0x40d   :  { %6323 = vmatprep.subr.mxu1 %v10406_v7 }
 0x40f   :  { %1955 = vrot.lane.b32.xlu1 %v7759_v32, %s6652_s23  ;;  %1845 = vperm.xlu0 %6443, %v7759_v32  }
 0x413   :  { %1700 = vperm.xlu1 %6442, %v7759_v32  }
 0x417   :  { %6444 = vset.pattern.permute.xlu1 %v6653_v54 }
 0x418   :  { %1991 = vperm.xlu1 %6444, %v7759_v32  }
 0x47d   :  { %v1810_v23 = vpop.permute.xlu1 %1809  ;;  %v1665_v24 = vpop.permute.xlu0 %1664 }
 0x47e   :  { %1812 = vxpose.xlu0.b32.start.end [1/1] (short) (narrow) %v1810_v23, 8  ;;  %1667 = vxpose.xlu1.b32.start.end [1/1] (short) (narrow) %v1665_v24, 8 }
 0x481   :  { %v1956_v21 = vpop.permute.xlu1 %1955 }
 0x482   :  { %1958 = vxpose.xlu0.b32.start.end [1/1] (short) (narrow) %v1956_v21, 8  ;;  %v10407_v21 = vld [vmem:[#allocation19_spill] sm:$0xff] }
 0x48a   :  { %v1846_v19 = vpop.permute.xlu0 %1845 }
 0x48e   :  { %v1701_v57 = vpop.permute.xlu1 %1700 }
 0x493   :  { %v1992_v37 = vpop.permute.xlu1 %1991 }
 0x4ab   :  { %6446 = vset.pattern.permute.xlu0 %v6649_v58 }
 0x4fa   :  { %v1683_v5 = vpop.trf.xlu1  ;;  %v1828_v50 = vpop.trf.xlu0 }
 0x4fb   :  { %v1706_v11 = vrot.slane %v1683_v5, %v7146_v12  ;;  %v1851_v2 = vrot.slane %v1828_v50, %v7146_v12 }
 0x4fd   :  { %v1707_v3 = vadd.f32 %v1706_v11, %v1701_v57  ;;  %v1852_v61 = vadd.f32 %v1851_v2, %v1846_v19  ;;  %v10408_v57 = vld [vmem:[#allocation20_spill] sm:$0xff]  ;;  %v10409_v19 = vld [vmem:[#allocation21_spill] sm:$0xff] }
 0x4fe   :  { %v1974_v55 = vpop.trf.xlu0 }
 0x4ff   :  { %v1709_v34 = vmul.f32 0.2, %v1707_v3  ;;  %v1854_v17 = vmul.f32 0.2, %v1852_v61  ;;  %v1997_v35 = vrot.slane %v1974_v55, %v7146_v12  ;;  %vm1708_vm13 = vcmp.ge.f32.partialorder %v1707_v3, 0.0 }
 0x500   :  { %vm1853_vm14 = vcmp.ge.f32.partialorder %v1852_v61, 0.0 }
 0x501   :  { %v1998_v25 = vadd.f32 %v1997_v35, %v1992_v37  ;;  %v1710_v9 = vsel %vm1708_vm13, %v1707_v3, %v1709_v34  ;;  %v1855_v44 = vsel %vm1853_vm14, %v1852_v61, %v1854_v17  ;;  %vm1807_vm14 = vcmask 130048  }
 0x502   :  { %v1711_v49 = vmul.f32 %v1710_v9, %v7779_v45  ;;  %v1856_v14 = vmul.f32 %v1855_v44, %v7779_v45 }
 0x503   :  { %v2000_v39 = vmul.f32 0.2, %v1998_v25  ;;  %vm1999_vm15 = vcmp.ge.f32.partialorder %v1998_v25, 0.0 }
 0x504   :  { %v1712_v51 = vsel %vm10394_vm8, %v1711_v49, -inf  ;;  %v1857_v59 = vsel %vm10394_vm8, %v1856_v14, -inf }
 0x505   :  { %1713 = vmax.xlane.f32.xlu0 %v1712_v51  ;;  %1858 = vmax.xlane.f32.xlu1 %v1857_v59  ;;  %v2001_v60 = vsel %vm1999_vm15, %v1998_v25, %v2000_v39 }
 0x506   :  { %v2002_v8 = vmul.f32 %v2001_v60, %v7779_v45 }
 0x508   :  { %v2003_v48 = vsel %vm10394_vm8, %v2002_v8, -inf }
 0x509   :  { %2004 = vmax.xlane.f32.xlu0 %v2003_v48 }
 0x58e   :  { %v1859_v6 = vpop.xlane.xlu1 %1858  ;;  %v1714_v36 = vpop.xlane.xlu0 %1713 }
 0x58f   :  { %v1860_v22 = vsub.f32 %v1856_v14, %v1859_v6  ;;  %v1715_v10 = vsub.f32 %v1711_v49, %v1714_v36 }
 0x591   :  { %v1861_v31 = vmul.f32 1.442695, %v1860_v22  ;;  %v1716_v29 = vmul.f32 1.442695, %v1715_v10 }
 0x592   :  { %v2005_v1 = vpop.xlane.xlu0 %2004 }
 0x593   :  { %6460 = vpow2.f32 %v1861_v31  ;;  %v2006_v62 = vsub.f32 %v2002_v8, %v2005_v1 }
 0x594   :  { %6462 = vpow2.f32 %v1716_v29 }
 0x595   :  { %v2007_v41 = vmul.f32 1.442695, %v2006_v62 }
 0x597   :  { %6464 = vpow2.f32 %v2007_v41 }
 0x5a0   :  { %v6461_v4 = vpop.eup %6460 }
 0x5a1   :  { %v6463_v0 = vpop.eup %6462  ;;  %v1863_v13 = vsel %vm10394_vm8, %v6461_v4, 0.0 }
 0x5a2   :  { %1864 = vadd.xlane.f32.xlu0 %v1863_v13  ;;  %v1718_v26 = vsel %vm10394_vm8, %v6463_v0, 0.0 }
 0x5a3   :  { %1719 = vadd.xlane.f32.xlu1 %v1718_v26 }
 0x5a4   :  { %v6465_v56 = vpop.eup %6464 }
 0x5a5   :  { %v2009_v18 = vsel %vm10394_vm8, %v6465_v56, 0.0 }
 0x5a7   :  { %2010 = vadd.xlane.f32.xlu1 %v2009_v18 }
 0x5b8   :  { %2014 = vrot.lane.b32.xlu1 %v7759_v32, %s6654_s26  ;;  %1868 = vrot.lane.b32.xlu0 %v7759_v32, %s6655_s27 }
 0x5bc   :  { %2101 = vrot.lane.b32.xlu1 %v7759_v32, %s6656_s28 }
 0x62b   :  { %v1865_v20 = vpop.xlane.xlu0 %1864 }
 0x62c   :  { %v1720_v40 = vpop.xlane.xlu1 %1719 }
 0x62d   :  { %6466 = vrcp.f32 %v1720_v40 }
 0x62e   :  { %6468 = vrcp.f32 %v1865_v20 }
 0x62f   :  { %v1869_v58 = vpop.permute.xlu0 %1868 }
 0x630   :  { %v2011_v33 = vpop.xlane.xlu1 %2010 }
 0x631   :  { %6470 = vrcp.f32 %v2011_v33 }
 0x634   :  { %v2015_v46 = vpop.permute.xlu1 %2014 }
 0x638   :  { %v2102_v30 = vpop.permute.xlu1 %2101 }
 0x639   :  { %2104 = vxpose.xlu1.b32.start.end [1/1] (short) (narrow) %v2102_v30, 8 }
 0x63a   :  { %v6467_v15 = vpop.eup %6466 }
 0x63b   :  { %v1722_v28 = vmul.f32 %v6467_v15, %v6463_v0  ;;  %v6469_v38 = vpop.eup %6468 }
 0x63c   :  { %v1867_v27 = vmul.f32 %v6469_v38, %v6461_v4 }
 0x63d   :  { %6321 = vmatmul.mubr.msk.f32.vlgmr.msra.gmra.mxu1 %vm10394_vm8, %v1722_v28 }
 0x63e   :  { %6324 = vmatpush3.msra.mxu1 %v1869_v58  ;;  %6325 = vmatprep.mubr.msk.f32.mxu1 %vm10395_vm9, %v10406_v7  ;;  %v6471_v23 = vpop.eup %6470 }
 0x63f   :  { %6328 = vmatprep.subr.mxu1 %v10406_v7  ;;  %v2013_v24 = vmul.f32 %v6471_v23, %v6465_v56 }
 0x641   :  { %6326 = vmatmul.mubr.msk.f32.vlgmr.msra.gmra.mxu1 %vm10394_vm8, %v1867_v27 }
 0x642   :  { %6329 = vmatpush3.msra.mxu1 %v2015_v46  ;;  %6330 = vmatprep.mubr.msk.f32.mxu1 %vm10395_vm9, %v10406_v7 }
 0x643   :  { %6338 = vmatprep.subr.mxu1 %v10406_v7 }
 0x645   :  { %6331 = vmatmul.mubr.msk.f32.vlgmr.msra.gmra.mxu1 %vm10394_vm8, %v2013_v24 }
 0x646   :  { %6339 = vmatpush3.msra.mxu1 %v7418_v47  ;;  %6346 = vmatprep.mubr.msk.f32.mxu1 %vm10395_vm9, %v10406_v7  ;;  %v6657_v47 = vmov 67  }
 0x647   :  { %6340 = vmatprep.subr.mxu1 %v10406_v7 }
 0x648   :  { %6341 = vmatpush3.msra.mxu1 %v10407_v21 }
 0x649   :  { %6342 = vmatprep.subr.mxu1 %v10406_v7 }
 0x64a   :  { %6343 = vmatpush3.msra.mxu1 %v10408_v57 }
 0x64b   :  { %6344 = vmatprep.subr.mxu1 %v10406_v7 }
 0x64c   :  { %6345 = vmatpush3.msra.mxu1 %v10409_v19 }
 0x64d   :  { %6347 = vmatmul.mubr.msk.f32.vlgmr.msra.gmra.mxu1 %vm10371_vm0, %v7753_v42  ;;  %6359 = vmatprep.subr.mxu1 %v10406_v7 }
 0x64e   :  { %6361 = vmatprep.mubr.msk.f32.mxu1 %vm10395_vm9, %v10406_v7 }
 0x657   :  { %6445 = vset.pattern.permute.xlu1 %v6657_v47 }
 0x658   :  { %2137 = vperm.xlu1 %6445, %v7759_v32  }
 0x65c   :  { %2160 = vrot.lane.b32.xlu1 %v7759_v32, %s6658_s2 }
 0x65d   :  { %6447 = vset.pattern.permute.xlu1 %v6648_v16  ;;  %v7831_v16 = vld [vmem:[%s10356_s5] ss:$0 sm:$0xff]  ;;  %s6659_s5 = smov 16  }
 0x6b5   :  { %v2120_v37 = vpop.trf.xlu1 }
 0x6b6   :  { %v2143_v5 = vrot.slane %v2120_v37, %v7146_v12  ;;  %v6243_v37 = vld [vmem:[%s10352_s1 + $0x8] sm:$0xff] }
 0x6d3   :  { %v2138_v42 = vpop.permute.xlu1 %2137 }
 0x6d4   :  { %v2144_v50 = vadd.f32 %v2143_v5, %v2138_v42 }
 0x6d6   :  { %vm2145_vm13 = vcmp.ge.f32.partialorder %v2144_v50, 0.0  ;;  %v2146_v11 = vmul.f32 0.2, %v2144_v50 }
 0x6d7   :  { %v2161_v2 = vpop.permute.xlu1 %2160 }
 0x6d8   :  { %6334 = vmatpush3.msra.mxu0 %v2161_v2  ;;  %v2147_v3 = vsel %vm2145_vm13, %v2144_v50, %v2146_v11 }
 0x6d9   :  { %v2148_v61 = vmul.f32 %v2147_v3, %v7779_v45  ;;  %6349 = vmatprep.subr.mxu0 %v10406_v7 }
 0x6db   :  { %v2149_v55 = vsel %vm10394_vm8, %v2148_v61, -inf }
 0x6dc   :  { %2150 = vmax.xlane.f32.xlu0 %v2149_v55 }
 0x6fd   :  { %v1798_v32 = vpop.f32.mrf.mxu1 }
 0x6fe   :  { %v1799_v34 = vadd.f32 %v7831_v16, %v1798_v32 }
 0x6ff   :  { %v6322_v17 = vpop.f32.mrf.mxu1 }
 0x700   :  { %v1803_v35 = vmul.f32 1.442695, %v1799_v34  ;;  %vm1802_vm15 = vcmp.gt.f32.partialorder %v1799_v34, 0.0 }
 0x701   :  { %v1940_v25 = vpop.f32.mrf.mxu1 }
 0x702   :  { %6472 = vpow2.f32 %v1803_v35  ;;  %v1941_v49 = vadd.f32 %v7831_v16, %v1940_v25 }
 0x703   :  { %v6327_v9 = vpop.f32.mrf.mxu1 }
 0x704   :  { %v1945_v39 = vmul.f32 1.442695, %v1941_v49  ;;  %vm1944_vm13 = vcmp.gt.f32.partialorder %v1941_v49, 0.0 }
 0x705   :  { %v2086_v44 = vpop.f32.mrf.mxu1 }
 0x706   :  { %v2087_v51 = vadd.f32 %v7831_v16, %v2086_v44  ;;  %6474 = vpow2.f32 %v1945_v39 }
 0x707   :  { %v6332_v45 = vpop.f32.mrf.mxu1 }
 0x708   :  { %v2091_v6 = vmul.f32 1.442695, %v2087_v51 }
 0x70a   :  { %6476 = vpow2.f32 %v2091_v6 }
 0x70d   :  { %v7835_v14 = vpop.f32.mrf.mxu1 }
 0x70e   :  { %2327 = vrot.lane.b32.xlu1 %v7835_v14, %s6651_s22 }
 0x70f   :  { %v6473_v59 = vpop.eup %6472  ;;  %v6348_v60 = vpop.f32.mrf.mxu1 }
 0x710   :  { %v6236_v8 = vadd.f32 -1.0, %v6473_v59 }
 0x712   :  { %v1806_v48 = vsel %vm1802_vm15, %v1799_v34, %v6236_v8  ;;  %2611 = vrot.lane.b32.xlu1 %v7835_v14, %s6652_s23  ;;  %vm2090_vm15 = vcmp.gt.f32.partialorder %v2087_v51, 0.0 }
 0x713   :  { %1808 = vst.msk [vmem:[#allocation2] sm:$0xff] %vm1807_vm14, %v1806_v48  ;;  %v6475_v36 = vpop.eup %6474 }
 0x714   :  { %v6238_v22 = vadd.f32 -1.0, %v6475_v36 }
 0x716   :  { %2502 = vperm.xlu1 %6447, %v7835_v14   ;;  %v1948_v31 = vsel %vm1944_vm13, %v1941_v49, %v6238_v22  ;;  %vm1953_vm13 = vcmask 261248  }
 0x717   :  { %v6477_v10 = vpop.eup %6476 }
 0x718   :  { %v6240_v29 = vadd.f32 -1.0, %v6477_v10 }
 0x71a   :  { %6448 = vset.pattern.permute.xlu1 %v6653_v54  ;;  %v2094_v1 = vsel %vm2090_vm15, %v2087_v51, %v6240_v29  ;;  %vm2099_vm15 = vcmask 392448  }
 0x71b   :  { %2647 = vperm.xlu1 %6448, %v7835_v14  }
 0x71f   :  { %2670 = vrot.lane.b32.xlu1 %v7835_v14, %s6654_s26 }
 0x723   :  { %2815 = vrot.lane.b32.xlu1 %v7835_v14, %s6658_s2 }
 0x727   :  { %1950 = vrot.lane.b32.xlu1 %v1948_v31, %s6659_s5 }
 0x72b   :  { %2096 = vrot.lane.b32.xlu1 %v2094_v1, %s6660_s0 }
 0x765   :  { %v2151_v54 = vpop.xlane.xlu0 %2150 }
 0x766   :  { %v2152_v62 = vsub.f32 %v2148_v61, %v2151_v54 }
 0x768   :  { %v2153_v41 = vmul.f32 1.442695, %v2152_v62 }
 0x76a   :  { %6478 = vpow2.f32 %v2153_v41 }
 0x777   :  { %v6479_v4 = vpop.eup %6478 }
 0x778   :  { %v2155_v0 = vsel %vm10394_vm8, %v6479_v4, 0.0 }
 0x779   :  { %2156 = vadd.xlane.f32.xlu0 %v2155_v0 }
 0x780   :  { %v2328_v13 = vpop.permute.xlu1 %2327 }
 0x784   :  { %v2612_v26 = vpop.permute.xlu1 %2611 }
 0x78f   :  { %2466 = vrot.lane.b32.xlu0 %v7835_v14, %s6650_s4 }
 0x791   :  { %v2503_v56 = vpop.permute.xlu1 %2502 }
 0x793   :  { %2756 = vrot.lane.b32.xlu0 %v7835_v14, %s6656_s28 }
 0x796   :  { %v2648_v18 = vpop.permute.xlu1 %2647 }
 0x797   :  { %2363 = vperm.xlu0 %6446, %v7835_v14  }
 0x79a   :  { %v2671_v40 = vpop.permute.xlu1 %2670 }
 0x79b   :  { %6360 = vmatpush3.msra.mxu1 %v2671_v40  ;;  %6449 = vset.pattern.permute.xlu0 %v6657_v47 }
 0x79c   :  { %2792 = vperm.xlu0 %6449, %v7835_v14   ;;  %6369 = vmatprep.subr.mxu1 %v10406_v7 }
 0x79e   :  { %v7861_v20 = vpop.permute.xlu1 %2815 }
 0x7a0   :  { %2525 = vrot.lane.b32.xlu0 %v7835_v14, %s6655_s27 }
 0x7a2   :  { %v1951_v33 = vpop.permute.xlu1 %1950 }
 0x7a3   :  { %1954 = vst.msk [vmem:[#allocation2] sm:$0xff] %vm1953_vm13, %v1951_v33 }
 0x7a6   :  { %v2097_v46 = vpop.permute.xlu1 %2096 }
 0x7a7   :  { %2100 = vst.msk [vmem:[#allocation2] sm:$0xff] %vm2099_vm15, %v2097_v46 }
 0x7be   :  { %2330 = vxpose.xlu0.b32.start.end [1/1] (short) (narrow) %v2328_v13, 8 }
 0x802   :  { %v2157_v30 = vpop.xlane.xlu0 %2156 }
 0x803   :  { %6480 = vrcp.f32 %v2157_v30 }
 0x806   :  { %v2467_v15 = vpop.permute.xlu0 %2466 }
 0x807   :  { %2469 = vxpose.xlu0.b32.start.end [1/1] (short) (narrow) %v2467_v15, 8 }
 0x80a   :  { %v2757_v28 = vpop.permute.xlu0 %2756 }
 0x80b   :  { %2759 = vxpose.xlu1.b32.start.end [1/1] (short) (narrow) %v2757_v28, 8  ;;  %2614 = vxpose.xlu0.b32.start.end [1/1] (short) (narrow) %v2612_v26, 8 }
 0x810   :  { %v6481_v38 = vpop.eup %6480 }
 0x811   :  { %v2159_v58 = vmul.f32 %v6481_v38, %v6479_v4 }
 0x812   :  { %v2364_v27 = vpop.permute.xlu0 %2363 }
 0x813   :  { %6336 = vmatmul.mubr.msk.f32.vlgmr.msra.gmra.mxu0 %vm10394_vm8, %v2159_v58 }
 0x814   :  { %6350 = vmatpush3.msra.mxu0 %v7835_v14  ;;  %6351 = vmatprep.mubr.msk.f32.mxu0 %vm10395_vm9, %v10406_v7 }
 0x815   :  { %6354 = vmatprep.subr.mxu0 %v10406_v7 }
 0x817   :  { %v2793_v23 = vpop.permute.xlu0 %2792 }
 0x81b   :  { %v7872_v24 = vpop.permute.xlu0 %2525 }
 0x83a   :  { %v2346_v21 = vpop.trf.xlu0 }
 0x83b   :  { %v2369_v57 = vrot.slane %v2346_v21, %v7146_v12 }
 0x83d   :  { %v2370_v19 = vadd.f32 %v2369_v57, %v2364_v27 }
 0x83f   :  { %v2372_v47 = vmul.f32 0.2, %v2370_v19  ;;  %vm2371_vm0 = vcmp.ge.f32.partialorder %v2370_v19, 0.0 }
 0x841   :  { %v2373_v5 = vsel %vm2371_vm0, %v2370_v19, %v2372_v47 }
 0x842   :  { %v2374_v42 = vmul.f32 %v6243_v37, %v2373_v5 }
 0x844   :  { %v2375_v50 = vsel %vm10394_vm8, %v2374_v42, -inf }
 0x845   :  { %2376 = vmax.xlane.f32.xlu1 %v2375_v50 }
 0x883   :  { %v2485_v11 = vpop.trf.xlu0 }
 0x884   :  { %v2508_v2 = vrot.slane %v2485_v11, %v7146_v12 }
 0x886   :  { %v2509_v3 = vadd.f32 %v2508_v2, %v2503_v56 }
 0x887   :  { %v2630_v61 = vpop.trf.xlu0  ;;  %v2775_v55 = vpop.trf.xlu1 }
 0x888   :  { %v2511_v32 = vmul.f32 0.2, %v2509_v3  ;;  %v2653_v34 = vrot.slane %v2630_v61, %v7146_v12  ;;  %v2798_v17 = vrot.slane %v2775_v55, %v7146_v12  ;;  %vm2510_vm12 = vcmp.ge.f32.partialorder %v2509_v3, 0.0  ;;  %v8288_v12 = vld [vmem:[%s10358_s7 + $0x180] sm:$0xff] }
 0x88a   :  { %v2654_v35 = vadd.f32 %v2653_v34, %v2648_v18  ;;  %v2799_v25 = vadd.f32 %v2798_v17, %v2793_v23  ;;  %v2512_v9 = vsel %vm2510_vm12, %v2509_v3, %v2511_v32 }
 0x88b   :  { %v2513_v44 = vmul.f32 %v6243_v37, %v2512_v9 }
 0x88c   :  { %v2656_v45 = vmul.f32 0.2, %v2654_v35  ;;  %v2801_v49 = vmul.f32 0.2, %v2799_v25  ;;  %vm2655_vm0 = vcmp.ge.f32.partialorder %v2654_v35, 0.0  ;;  %vm2800_vm11 = vcmp.ge.f32.partialorder %v2799_v25, 0.0 }
 0x88d   :  { %v2514_v14 = vsel %vm10394_vm8, %v2513_v44, -inf }
 0x88e   :  { %2515 = vmax.xlane.f32.xlu1 %v2514_v14  ;;  %v2657_v39 = vsel %vm2655_vm0, %v2654_v35, %v2656_v45  ;;  %v2802_v51 = vsel %vm2800_vm11, %v2799_v25, %v2801_v49  ;;  %vm2245_vm11 = vcmask 523648  }
 0x88f   :  { %v2658_v59 = vmul.f32 %v6243_v37, %v2657_v39  ;;  %v2803_v60 = vmul.f32 %v6243_v37, %v2802_v51 }
 0x891   :  { %v2659_v8 = vsel %vm10394_vm8, %v2658_v59, -inf  ;;  %v2804_v48 = vsel %vm10394_vm8, %v2803_v60, -inf }
 0x892   :  { %2660 = vmax.xlane.f32.xlu0 %v2659_v8  ;;  %2805 = vmax.xlane.f32.xlu1 %v2804_v48 }
 0x8ce   :  { %v2377_v54 = vpop.xlane.xlu1 %2376 }
 0x8cf   :  { %v2378_v62 = vsub.f32 %v2374_v42, %v2377_v54 }
 0x8d1   :  { %v2379_v41 = vmul.f32 1.442695, %v2378_v62 }
 0x8d3   :  { %v2232_v6 = vpop.f32.mrf.mxu0 }
 0x8d4   :  { %v2233_v36 = vadd.f32 %v7831_v16, %v2232_v6 }
 0x8d5   :  { %v6337_v22 = vpop.f32.mrf.mxu0 }
 0x8d6   :  { %v2237_v10 = vmul.f32 1.442695, %v2233_v36  ;;  %vm2236_vm12 = vcmp.gt.f32.partialorder %v2233_v36, 0.0 }
 0x8d8   :  { %6482 = vpow2.f32 %v2237_v10 }
 0x8d9   :  { %6484 = vpow2.f32 %v2379_v41 }
 0x8e5   :  { %v6483_v31 = vpop.eup %6482 }
 0x8e6   :  { %v6242_v29 = vadd.f32 -1.0, %v6483_v31  ;;  %v6485_v4 = vpop.eup %6484 }
 0x8e7   :  { %v2381_v0 = vsel %vm10394_vm8, %v6485_v4, 0.0 }
 0x8e8   :  { %v2240_v1 = vsel %vm2236_vm12, %v2233_v36, %v6242_v29 }
 0x8e9   :  { %2242 = vrot.lane.b32.xlu1 %v2240_v1, %s6661_s13 }
 0x90d   :  { %2382 = vadd.xlane.f32.xlu1 %v2381_v0 }
 0x917   :  { %v2516_v13 = vpop.xlane.xlu1 %2515 }
 0x918   :  { %v2517_v26 = vsub.f32 %v2513_v44, %v2516_v13 }
 0x91a   :  { %v2518_v56 = vmul.f32 1.442695, %v2517_v26 }
 0x91b   :  { %v2661_v18 = vpop.xlane.xlu0 %2660  ;;  %v2806_v40 = vpop.xlane.xlu1 %2805 }
 0x91c   :  { %6486 = vpow2.f32 %v2518_v56  ;;  %v2662_v33 = vsub.f32 %v2658_v59, %v2661_v18  ;;  %v2807_v46 = vsub.f32 %v2803_v60, %v2806_v40 }
 0x91e   :  { %v2663_v30 = vmul.f32 1.442695, %v2662_v33  ;;  %v2808_v15 = vmul.f32 1.442695, %v2807_v46 }
 0x920   :  { %6488 = vpow2.f32 %v2663_v30  ;;  %v7924_v30 = vld [vmem:[%s10358_s7 + $0x8] sm:$0xff] }
 0x921   :  { %6490 = vpow2.f32 %v2808_v15  ;;  %v7929_v15 = vld [vmem:[%s10358_s7] sm:$0xff] }
 0x929   :  { %v6487_v28 = vpop.eup %6486 }
 0x92a   :  { %v2520_v38 = vsel %vm10394_vm8, %v6487_v28, 0.0 }
 0x92b   :  { %2521 = vadd.xlane.f32.xlu0 %v2520_v38 }
 0x92d   :  { %v6489_v58 = vpop.eup %6488 }
 0x92e   :  { %v6491_v27 = vpop.eup %6490  ;;  %v2665_v23 = vsel %vm10394_vm8, %v6489_v58, 0.0 }
 0x92f   :  { %v2810_v21 = vsel %vm10394_vm8, %v6491_v27, 0.0  ;;  %2666 = vadd.xlane.f32.xlu1 %v2665_v23  ;;  %v7943_v23 = vld [vmem:[%s10358_s7 + $0x40] sm:$0xff] }
 0x930   :  { %2811 = vadd.xlane.f32.xlu0 %v2810_v21 }
 0x95b   :  { %v2243_v57 = vpop.permute.xlu1 %2242 }
 0x95c   :  { %2246 = vst.msk [vmem:[#allocation2] sm:$0xff] %vm2245_vm11, %v2243_v57 }
 0x963   :  { %v2901_v26 = vld [vmem:[#allocation2] sm:$0xff] }
 0x964   :  { %v2907_v56 = vmul.f32 %v2901_v26, %v2901_v26 }
 0x996   :  { %v2383_v19 = vpop.xlane.xlu1 %2382 }
 0x997   :  { %6492 = vrcp.f32 %v2383_v19 }
 0x9a4   :  { %v6493_v47 = vpop.eup %6492 }
 0x9a5   :  { %v2385_v37 = vmul.f32 %v6493_v47, %v6485_v4 }
 0x9a7   :  { %6352 = vmatmul.mubr.msk.f32.vlgmr.msra.gmra.mxu0 %vm10394_vm8, %v2385_v37 }
 0x9a8   :  { %6355 = vmatpush3.msra.mxu0 %v7872_v24  ;;  %6356 = vmatprep.mubr.msk.f32.mxu0 %vm10395_vm9, %v10406_v7 }
 0x9a9   :  { %6364 = vmatprep.subr.mxu0 %v10406_v7 }
 0x9b4   :  { %v2522_v5 = vpop.xlane.xlu0 %2521 }
 0x9b5   :  { %6494 = vrcp.f32 %v2522_v5 }
 0x9b8   :  { %v2667_v42 = vpop.xlane.xlu1 %2666 }
 0x9b9   :  { %v2812_v50 = vpop.xlane.xlu0 %2811  ;;  %6496 = vrcp.f32 %v2667_v42 }
 0x9ba   :  { %6498 = vrcp.f32 %v2812_v50  ;;  %v2979_v50 = vld [vmem:[%s10358_s7 + $0x18] sm:$0xff] }
 0x9c2   :  { %v6495_v11 = vpop.eup %6494 }
 0x9c3   :  { %v2524_v2 = vmul.f32 %v6495_v11, %v6487_v28  ;;  %v2980_v11 = vld [vmem:[%s10358_s7 + $0x20] sm:$0xff] }
 0x9c5   :  { %6357 = vmatmul.mubr.msk.f32.vlgmr.msra.gmra.mxu0 %vm10394_vm8, %v2524_v2 }
 0x9c6   :  { %v6497_v3 = vpop.eup %6496  ;;  %6365 = vmatpush3.msra.mxu0 %v7861_v20  ;;  %6366 = vmatprep.mubr.msk.f32.mxu0 %vm10395_vm9, %v10406_v7 }
 0x9c7   :  { %v6499_v24 = vpop.eup %6498  ;;  %v2669_v61 = vmul.f32 %v6497_v3, %v6489_v58  ;;  %6388 = vmatprep.subr.mxu0 %v10406_v7 }
 0x9c8   :  { %v2814_v55 = vmul.f32 %v6499_v24, %v6491_v27  ;;  %v7938_v27 = vld [vmem:[%s10358_s7 + $0x10] sm:$0xff] }
 0x9c9   :  { %6362 = vmatmul.mubr.msk.f32.vlgmr.msra.gmra.mxu1 %vm10394_vm8, %v2669_v61 }
 0x9ca   :  { %6367 = vmatmul.mubr.msk.f32.vlgmr.msra.gmra.mxu0 %vm10394_vm8, %v2814_v55  ;;  %6385 = vmatprep.mubr.msk.f32.mxu1 %vm10395_vm9, %v10406_v7  ;;  %v2985_v55 = vld [vmem:[%s10358_s7 + $0x48] sm:$0xff] }
 0x9cb   :  { %6390 = vmatprep.mubr.msk.f32.mxu0 %vm10395_vm9, %v10406_v7  ;;  %vm10536_vm9 = vcmask 261312  }
 0xa67   :  { %v2455_v32 = vpop.f32.mrf.mxu0 }
 0xa68   :  { %v2456_v20 = vadd.f32 %v7831_v16, %v2455_v32  ;;  %v2987_v32 = vld [vmem:[%s10358_s7 + $0x58] sm:$0xff] }
 0xa69   :  { %v6353_v34 = vpop.f32.mrf.mxu0 }
 0xa6a   :  { %v2460_v17 = vmul.f32 1.442695, %v2456_v20  ;;  %vm2459_vm0 = vcmp.gt.f32.partialorder %v2456_v20, 0.0 }
 0xa6c   :  { %6500 = vpow2.f32 %v2460_v17 }
 0xa79   :  { %v6501_v35 = vpop.eup %6500 }
 0xa7a   :  { %v6246_v25 = vadd.f32 -1.0, %v6501_v35 }
 0xa7c   :  { %v2463_v9 = vsel %vm2459_vm0, %v2456_v20, %v6246_v25  ;;  %v7980_v25 = vld [vmem:[%s10358_s7 + $0x50] sm:$0xff] }
 0xa7d   :  { %2465 = vst.msk [vmem:[#allocation2 + $0x8] sm:$0xff] %vm1807_vm14, %v2463_v9  ;;  %v2993_v9 = vld [vmem:[%s10358_s7 + $0x88] sm:$0xff] }
 0xa85   :  { %v2597_v44 = vpop.f32.mrf.mxu0 }
 0xa86   :  { %v2598_v45 = vadd.f32 %v7831_v16, %v2597_v44 }
 0xa87   :  { %v6358_v49 = vpop.f32.mrf.mxu0 }
 0xa88   :  { %v2602_v14 = vmul.f32 1.442695, %v2598_v45  ;;  %vm2601_vm12 = vcmp.gt.f32.partialorder %v2598_v45, 0.0 }
 0xa89   :  { %v2742_v39 = vpop.f32.mrf.mxu1 }
 0xa8a   :  { %v2743_v51 = vadd.f32 %v7831_v16, %v2742_v39  ;;  %v2887_v59 = vpop.f32.mrf.mxu0  ;;  %6502 = vpow2.f32 %v2602_v14  ;;  %v7993_v39 = vld [vmem:[%s10358_s7 + $0x28] sm:$0xff] }
 0xa8b   :  { %v2888_v60 = vadd.f32 %v7831_v16, %v2887_v59  ;;  %v6363_v8 = vpop.f32.mrf.mxu1 }
 0xa8c   :  { %v2747_v48 = vmul.f32 1.442695, %v2743_v51  ;;  %v6368_v6 = vpop.f32.mrf.mxu0  ;;  %vm2746_vm14 = vcmp.gt.f32.partialorder %v2743_v51, 0.0 }
 0xa8d   :  { %v2892_v36 = vmul.f32 1.442695, %v2888_v60  ;;  %vm2891_vm0 = vcmp.gt.f32.partialorder %v2888_v60, 0.0  ;;  %v8006_v6 = vld [vmem:[%s10358_s7 + $0x80] sm:$0xff] }
 0xa8e   :  { %6504 = vpow2.f32 %v2747_v48 }
 0xa8f   :  { %6506 = vpow2.f32 %v2892_v36  ;;  %v2994_v36 = vld [vmem:[%s10358_s7 + $0x90] sm:$0xff] }
 0xa97   :  { %v6503_v22 = vpop.eup %6502 }
 0xa98   :  { %v6248_v1 = vadd.f32 -1.0, %v6503_v22 }
 0xa9a   :  { %v2605_v62 = vsel %vm2601_vm12, %v2598_v45, %v6248_v1  ;;  %v2988_v1 = vld [vmem:[%s10358_s7 + $0x60] sm:$0xff] }
 0xa9b   :  { %v6505_v10 = vpop.eup %6504 }
 0xa9c   :  { %v6250_v31 = vadd.f32 -1.0, %v6505_v10  ;;  %v6507_v54 = vpop.eup %6506 }
 0xa9d   :  { %v6252_v41 = vadd.f32 -1.0, %v6507_v54  ;;  %v2989_v54 = vld [vmem:[%s10358_s7 + $0x68] sm:$0xff] }
 0xa9e   :  { %v2750_v29 = vsel %vm2746_vm14, %v2743_v51, %v6250_v31  ;;  %vm2903_vm14 = vcmask 523264   ;;  %v2982_v51 = vld [vmem:[%s10358_s7 + $0x30] sm:$0xff] }
 0xa9f   :  { %2752 = vrot.lane.b32.xlu0 %v2750_v29, %s6660_s0  ;;  %v2895_v16 = vsel %vm2891_vm0, %v2888_v60, %v6252_v41  ;;  %v2904_v40 = vsel %vm2903_vm14, %v2901_v26, 0.0  ;;  %v2909_v38 = vsel %vm2903_vm14, %v2907_v56, 0.0  ;;  %vm5098_vm0 = vcmask 326912  }
 0xaa3   :  { %2607 = vrot.lane.b32.xlu0 %v2605_v62, %s6659_s5 }
 0xaa7   :  { %2897 = vrot.lane.b32.xlu0 %v2895_v16, %s6661_s13 }
 0xb11   :  { %v2753_v4 = vpop.permute.xlu0 %2752 }
 0xb15   :  { %v2608_v0 = vpop.permute.xlu0 %2607 }
 0xb16   :  { %2610 = vst.msk [vmem:[#allocation2 + $0x8] sm:$0xff] %vm1953_vm13, %v2608_v0  ;;  %v2983_v0 = vld [vmem:[%s10358_s7 + $0x38] sm:$0xff]  ;;  %vm10510_vm13 = vcmask 195712  }
 0xb17   :  { %2755 = vst.msk [vmem:[#allocation2 + $0x8] sm:$0xff] %vm2099_vm15, %v2753_v4  ;;  %vm10511_vm15 = vcmask 261312  }
 0xb19   :  { %v2898_v13 = vpop.permute.xlu0 %2897 }
 0xb1a   :  { %2900 = vst.msk [vmem:[#allocation2 + $0x8] sm:$0xff] %vm2245_vm11, %v2898_v13  ;;  %v8032_v13 = vld [vmem:[%s10358_s7 + $0xc0] sm:$0xff]  ;;  %vm10513_vm11 = vmmov %vm10510_vm13 }
 0xb1b   :  { %vm10515_vm12 = vmmov %vm10513_vm11 }
 0xb21   :  { %v2902_v18 = vld [vmem:[#allocation2 + $0x8] sm:$0xff] }
 0xb22   :  { %v2905_v33 = vsel %vm2903_vm14, %v2902_v18, 0.0  ;;  %v2908_v46 = vmul.f32 %v2902_v18, %v2902_v18 }
 0xb23   :  { %v7931_v28 = vadd.f32 %v2905_v33, %v2904_v40 }
 0xb24   :  { %v2910_v58 = vsel %vm2903_vm14, %v2908_v46, 0.0 }
 0xb25   :  { %v7945_v21 = vadd.f32 %v2910_v58, %v2909_v38  ;;  %v3041_v57 = vmul.f32 %v7924_v30, %v7931_v28  ;;  %v3040_v19 = vmul.f32 %v7929_v15, %v7931_v28  ;;  %v3042_v5 = vmul.f32 %v7938_v27, %v7931_v28 }
 0xb26   :  { %v3048_v42 = vmul.f32 %v7943_v23, %v7931_v28  ;;  %v3043_v24 = vmul.f32 %v2979_v50, %v7931_v28  ;;  %v3044_v61 = vmul.f32 %v2980_v11, %v7931_v28  ;;  %v3049_v17 = vmul.f32 %v2985_v55, %v7931_v28 }
 0xb27   :  { %v3107_v47 = vsel %vm2903_vm14, %v3041_v57, 0.0  ;;  %v3104_v37 = vsel %vm2903_vm14, %v3040_v19, 0.0  ;;  %v3110_v2 = vsel %vm2903_vm14, %v3042_v5, 0.0  ;;  %v3051_v35 = vmul.f32 %v2987_v32, %v7931_v28  ;;  %v2990_v57 = vld [vmem:[%s10358_s7 + $0x70] sm:$0xff] }
 0xb28   :  { %3108 = vadd.xlane.f32.xlu0 %v3107_v47  ;;  %3105 = vadd.xlane.f32.xlu1 %v3104_v37  ;;  %v3128_v3 = vsel %vm2903_vm14, %v3048_v42, 0.0  ;;  %v3113_v20 = vsel %vm2903_vm14, %v3043_v24, 0.0  ;;  %v3116_v34 = vsel %vm2903_vm14, %v3044_v61, 0.0  ;;  %v3131_v44 = vsel %vm2903_vm14, %v3049_v17, 0.0  ;;  %v3001_v37 = vld [vmem:[%s10358_s7 + $0xc8] sm:$0xff]  ;;  %v3002_v24 = vld [vmem:[%s10358_s7 + $0xd0] sm:$0xff] }
 0xb29   :  { %v3137_v45 = vsel %vm2903_vm14, %v3051_v35, 0.0  ;;  %v3050_v49 = vmul.f32 %v7980_v25, %v7931_v28  ;;  %v3057_v14 = vmul.f32 %v2993_v9, %v7931_v28  ;;  %v3045_v8 = vmul.f32 %v7993_v39, %v7931_v28 }
 0xb2a   :  { %v3046_v48 = vmul.f32 %v2982_v51, %v7931_v28  ;;  %v3056_v31 = vmul.f32 %v8006_v6, %v7931_v28  ;;  %v3058_v29 = vmul.f32 %v2994_v36, %v7931_v28  ;;  %v3052_v16 = vmul.f32 %v2988_v1, %v7931_v28 }
 0xb2b   :  { %v3134_v59 = vsel %vm2903_vm14, %v3050_v49, 0.0  ;;  %v3155_v60 = vsel %vm2903_vm14, %v3057_v14, 0.0  ;;  %v3119_v22 = vsel %vm2903_vm14, %v3045_v8, 0.0  ;;  %v3053_v4 = vmul.f32 %v2989_v54, %v7931_v28 }
 0xb2c   :  { %3111 = vadd.xlane.f32.xlu0 %v3110_v2  ;;  %3129 = vadd.xlane.f32.xlu1 %v3128_v3  ;;  %v3122_v10 = vsel %vm2903_vm14, %v3046_v48, 0.0  ;;  %v3152_v62 = vsel %vm2903_vm14, %v3056_v31, 0.0  ;;  %v3158_v41 = vsel %vm2903_vm14, %v3058_v29, 0.0  ;;  %v8036_v26 = vmul.f32 %v7924_v30, %v7945_v21  ;;  %v2995_v30 = vld [vmem:[%s10358_s7 + $0x98] sm:$0xff] }
 0xb2d   :  { %v8039_v56 = vmul.f32 %v2979_v50, %v7945_v21  ;;  %v8042_v18 = vmul.f32 %v2985_v55, %v7945_v21  ;;  %v8045_v40 = vmul.f32 %v2980_v11, %v7945_v21  ;;  %v3140_v33 = vsel %vm2903_vm14, %v3052_v16, 0.0 }
 0xb2e   :  { %v3143_v46 = vsel %vm2903_vm14, %v3053_v4, 0.0  ;;  %v3047_v38 = vmul.f32 %v2983_v0, %v7931_v28  ;;  %v3064_v58 = vmul.f32 %v8032_v13, %v7931_v28  ;;  %v8059_v19 = vmul.f32 %v2987_v32, %v7945_v21  ;;  %v8174_v4 = vld [vmem:[%s10358_s7 + $0x118] sm:$0xff] }
 0xb2f   :  { %v8062_v47 = vmul.f32 %v2993_v9, %v7945_v21  ;;  %v8068_v5 = vmul.f32 %v2982_v51, %v7945_v21  ;;  %v8071_v42 = vmul.f32 %v2994_v36, %v7945_v21  ;;  %v3059_v2 = vmul.f32 %v2995_v30, %v7931_v28  ;;  %v3003_v51 = vld [vmem:[%s10358_s7 + $0xd8] sm:$0xff] }
 0xb30   :  { %3114 = vadd.xlane.f32.xlu0 %v3113_v20  ;;  %3117 = vadd.xlane.f32.xlu1 %v3116_v34  ;;  %v3125_v50 = vsel %vm2903_vm14, %v3047_v38, 0.0  ;;  %v3176_v11 = vsel %vm2903_vm14, %v3064_v58, 0.0  ;;  %v3054_v3 = vmul.f32 %v2990_v57, %v7931_v28  ;;  %v3065_v61 = vmul.f32 %v3001_v37, %v7931_v28  ;;  %v2996_v34 = vld [vmem:[%s10358_s7 + $0xa0] sm:$0xff] }
 0xb31   :  { %v8082_v55 = vmul.f32 %v2983_v0, %v7945_v21  ;;  %v8086_v32 = vmul.f32 %v7929_v15, %v7945_v21  ;;  %v8089_v20 = vmul.f32 %v2995_v30, %v7945_v21  ;;  %v8096_v17 = vmul.f32 %v7938_v27, %v7945_v21  ;;  %v3008_v38 = vld [vmem:[%s10358_s7 + $0x100] sm:$0xff] }
 0xb32   :  { %v8099_v35 = vmul.f32 %v3001_v37, %v7945_v21  ;;  %v8103_v9 = vmul.f32 %v7943_v23, %v7945_v21  ;;  %v8106_v15 = vmul.f32 %v2990_v57, %v7945_v21  ;;  %v3066_v49 = vmul.f32 %v3002_v24, %v7931_v28  ;;  %v2991_v23 = vld [vmem:[%s10358_s7 + $0x78] sm:$0xff] }
 0xb33   :  { %v8113_v27 = vmul.f32 %v7980_v25, %v7945_v21  ;;  %v3060_v14 = vmul.f32 %v2996_v34, %v7931_v28  ;;  %v8130_v25 = vmul.f32 %v7993_v39, %v7945_v21  ;;  %v8133_v8 = vmul.f32 %v2991_v23, %v7945_v21 }
 0xb34   :  { %3132 = vadd.xlane.f32.xlu0 %v3131_v44  ;;  %3138 = vadd.xlane.f32.xlu1 %v3137_v45  ;;  %v3161_v44 = vsel %vm2903_vm14, %v3059_v2, 0.0  ;;  %v3146_v45 = vsel %vm2903_vm14, %v3054_v3, 0.0  ;;  %v8137_v48 = vmul.f32 %v8006_v6, %v7945_v21  ;;  %v8140_v36 = vmul.f32 %v3003_v51, %v7945_v21  ;;  %v2997_v6 = vld [vmem:[%s10358_s7 + $0xa8] sm:$0xff]  ;;  %v3004_v2 = vld [vmem:[%s10358_s7 + $0xe0] sm:$0xff] }
 0xb35   :  { %v3179_v31 = vsel %vm2903_vm14, %v3065_v61, 0.0  ;;  %v3182_v39 = vsel %vm2903_vm14, %v3066_v49, 0.0  ;;  %v3055_v29 = vmul.f32 %v2991_v23, %v7931_v28  ;;  %v3164_v16 = vsel %vm2903_vm14, %v3060_v14, 0.0  ;;  %v8219_v61 = vld [vmem:[%s10358_s7 + $0x148] sm:$0xff]  ;;  %v8235_v49 = vld [vmem:[%s10358_s7 + $0x150] sm:$0xff]  ;;  %v8240_v23 = vld [vmem:[%s10358_s7 + $0xf8] sm:$0xff] }
 0xb36   :  { %10410 = vst [vmem:[#allocation19_spill] sm:$0xff] %v8140_v36  ;;  %v8191_v58 = vmul.f32 %v2996_v34, %v7945_v21  ;;  %v8198_v57 = vmul.f32 %v2997_v6, %v7945_v21  ;;  %v8211_v3 = vmul.f32 %v3008_v38, %v7945_v21  ;;  %v8224_v34 = vld [vmem:[%s10358_s7 + $0xf0] sm:$0xff]  ;;  %v8244_v14 = vmul.f32 %v8219_v61, %v7945_v21 }
 0xb37   :  { %v3149_v37 = vsel %vm2903_vm14, %v3055_v29, 0.0 }
 0xb38   :  { %3135 = vadd.xlane.f32.xlu0 %v3134_v59  ;;  %3156 = vadd.xlane.f32.xlu1 %v3155_v60  ;;  %v3009_v59 = vld [vmem:[%s10358_s7 + $0x108] sm:$0xff]  ;;  %v8126_v60 = vmul.f32 %v3002_v24, %v7945_v21  ;;  %10417 = vst [vmem:[#allocation29_spill] sm:$0xff] %v8191_v58  ;;  %10419 = vst [vmem:[#allocation31_spill] sm:$0xff] %v8198_v57 }
 0xb39   :  { %10421 = vst [vmem:[#allocation33_spill] sm:$0xff] %v8211_v3  ;;  %v3005_v24 = vld [vmem:[%s10358_s7 + $0xe8] sm:$0xff]  ;;  %10422 = vst [vmem:[#allocation34_spill] sm:$0xff] %v8244_v14  ;;  %v3073_v53 = vmul.f32 %v3009_v59, %v7931_v28 }
 0xb3a   :  { %v8259_v29 = vmul.f32 %v3005_v24, %v7945_v21 }
 0xb3c   :  { %3120 = vadd.xlane.f32.xlu0 %v3119_v22  ;;  %3123 = vadd.xlane.f32.xlu1 %v3122_v10  ;;  %v8143_v22 = vmul.f32 %v2988_v1, %v7945_v21  ;;  %v8146_v10 = vmul.f32 %v3009_v59, %v7945_v21  ;;  %v2998_v1 = vld [vmem:[%s10358_s7 + $0xb0] sm:$0xff]  ;;  %10425 = vst [vmem:[#allocation37_spill] sm:$0xff] %v8259_v29  ;;  %v8293_v59 = vld [vmem:[%s10358_s7 + $0x158] sm:$0xff] }
 0xb3d   :  { %v8177_v0 = vmul.f32 %v2998_v1, %v7945_v21  ;;  %v8335_v29 = vmul.f32 %v8288_v12, %v7945_v21  ;;  %v3062_v14 = vmul.f32 %v2998_v1, %v7931_v28  ;;  %v8374_v1 = vld [vmem:[%s10358_s7 + $0x198] sm:$0xff] }
 0xb3e   :  { %10411 = vst [vmem:[#allocation20_spill] sm:$0xff] %v8143_v22  ;;  %10412 = vst [vmem:[#allocation21_spill] sm:$0xff] %v8146_v10  ;;  %v8402_v3 = vmul.f32 %v8374_v1, %v7945_v21 }
 0xb3f   :  { %10414 = vst [vmem:[#allocation26_spill] sm:$0xff] %v8177_v0  ;;  %10433 = vst [vmem:[#allocation45_spill] sm:$0xff] %v8335_v29  ;;  %v8355_v29 = vld [vmem:[%s10358_s7 + $0x1c0] sm:$0xff]  ;;  %v3170_v58 = vsel %vm2903_vm14, %v3062_v14, 0.0  ;;  %v8451_v14 = vld [vmem:[%s10358_s7 + $0x1d8] sm:$0xff] }
 0xb40   :  { %3153 = vadd.xlane.f32.xlu0 %v3152_v62  ;;  %3159 = vadd.xlane.f32.xlu1 %v3158_v41  ;;  %v8152_v62 = vmul.f32 %v2989_v54, %v7945_v21  ;;  %v8163_v41 = vld [vmem:[%s10358_s7 + $0x110] sm:$0xff]  ;;  %v8169_v54 = vld [vmem:[%s10358_s7 + $0xb8] sm:$0xff]  ;;  %10440 = vst [vmem:[#allocation52_spill] sm:$0xff] %v8402_v3 }
 0xb41   :  { %v8195_v30 = vmul.f32 %v8169_v54, %v7945_v21  ;;  %v8484_v0 = vld [vmem:[%s10358_s7 + $0x1f8] sm:$0xff] }
 0xb42   :  { %10413 = vst [vmem:[#allocation25_spill] sm:$0xff] %v8152_v62  ;;  %v8509_v36 = vmul.f32 %v8484_v0, %v7945_v21 }
 0xb43   :  { %10418 = vst [vmem:[#allocation30_spill] sm:$0xff] %v8195_v30 }
 0xb44   :  { %3141 = vadd.xlane.f32.xlu0 %v3140_v33  ;;  %3144 = vadd.xlane.f32.xlu1 %v3143_v46  ;;  %v8181_v33 = vmul.f32 %v8032_v13, %v7945_v21  ;;  %v8185_v46 = vmul.f32 %v8163_v41, %v7945_v21  ;;  %v8202_v13 = vmul.f32 %v8174_v4, %v7945_v21 }
 0xb46   :  { %10415 = vst [vmem:[#allocation27_spill] sm:$0xff] %v8181_v33  ;;  %10416 = vst [vmem:[#allocation28_spill] sm:$0xff] %v8185_v46  ;;  %v3074_v46 = vmul.f32 %v8163_v41, %v7931_v28  ;;  %v8446_v41 = vld [vmem:[%s10358_s7 + $0x178] sm:$0xff]  ;;  %v8479_v33 = vmul.f32 %v8451_v14, %v7945_v21 }
 0xb47   :  { %10420 = vst [vmem:[#allocation32_spill] sm:$0xff] %v8202_v13  ;;  %v8407_v13 = vld [vmem:[%s10358_s7 + $0x1a8] sm:$0xff] }
 0xb48   :  { %3126 = vadd.xlane.f32.xlu0 %v3125_v50  ;;  %3177 = vadd.xlane.f32.xlu1 %v3176_v11  ;;  %v3061_v50 = vmul.f32 %v2997_v6, %v7931_v28  ;;  %v3067_v11 = vmul.f32 %v3003_v51, %v7931_v28  ;;  %v8247_v51 = vmul.f32 %v3004_v2, %v7945_v21  ;;  %v3206_v10 = vsel %vm2903_vm14, %v3074_v46, 0.0 }
 0xb49   :  { %v8263_v6 = vmul.f32 %v8235_v49, %v7945_v21  ;;  %10448 = vst [vmem:[#allocation60_spill] sm:$0xff] %v8479_v33  ;;  %v3075_v46 = vmul.f32 %v8174_v4, %v7931_v28  ;;  %v3088_v4 = vmul.f32 %v8288_v12, %v7931_v28 }
 0xb4a   :  { %10423 = vst [vmem:[#allocation35_spill] sm:$0xff] %v8247_v51  ;;  %v3185_v7 = vsel %vm2903_vm14, %v3067_v11, 0.0  ;;  %v3068_v11 = vmul.f32 %v3004_v2, %v7931_v28  ;;  %v8322_v2 = vmul.f32 %v8279_v43, %v7945_v21  ;;  %v3203_v51 = vsel %vm2903_vm14, %v3073_v53, 0.0  ;;  %v8369_v53 = vld [vmem:[%s10358_s7 + $0x138] sm:$0xff] }
 0xb4b   :  { %10426 = vst [vmem:[#allocation38_spill] sm:$0xff] %v8263_v6  ;;  %v8331_v6 = vld [vmem:[%s10358_s7 + $0x168] sm:$0xff] }
 0xb4c   :  { %3162 = vadd.xlane.f32.xlu0 %v3161_v44  ;;  %3147 = vadd.xlane.f32.xlu1 %v3146_v45  ;;  %v3072_v44 = vmul.f32 %v3008_v38, %v7931_v28  ;;  %v8230_v45 = vld [vmem:[%s10358_s7 + $0x140] sm:$0xff]  ;;  %v8271_v38 = vmul.f32 %v8240_v23, %v7945_v21  ;;  %10431 = vst [vmem:[#allocation43_spill] sm:$0xff] %v8322_v2  ;;  %v3188_v30 = vsel %vm2903_vm14, %v3068_v11, 0.0  ;;  %v8441_v11 = vld [vmem:[%s10358_s7 + $0x1b8] sm:$0xff] }
 0xb4d   :  { %v8488_v62 = vmul.f32 %v8441_v11, %v7945_v21  ;;  %v3080_v22 = vmul.f32 %v8230_v45, %v7931_v28 }
 0xb4e   :  { %10428 = vst [vmem:[#allocation40_spill] sm:$0xff] %v8271_v38  ;;  %v8318_v38 = vmul.f32 %v8293_v59, %v7945_v21 }
 0xb4f   :  { %10449 = vst [vmem:[#allocation61_spill] sm:$0xff] %v8488_v62  ;;  %v3063_v62 = vmul.f32 %v8169_v54, %v7931_v28 }
 0xb50   :  { %3180 = vadd.xlane.f32.xlu0 %v3179_v31  ;;  %3183 = vadd.xlane.f32.xlu1 %v3182_v39  ;;  %v8251_v31 = vmul.f32 %v8224_v34, %v7945_v21  ;;  %v8256_v39 = vld [vmem:[%s10358_s7 + $0x120] sm:$0xff]  ;;  %10430 = vst [vmem:[#allocation42_spill] sm:$0xff] %v8318_v38 }
 0xb51   :  { %v8283_v52 = vmul.f32 %v8256_v39, %v7945_v21 }
 0xb52   :  { %10424 = vst [vmem:[#allocation36_spill] sm:$0xff] %v8251_v31  ;;  %v3200_v31 = vsel %vm2903_vm14, %v3072_v44, 0.0  ;;  %v3069_v44 = vmul.f32 %v3005_v24, %v7931_v28  ;;  %v8398_v24 = vmul.f32 %v8355_v29, %v7945_v21 }
 0xb53   :  { %10429 = vst [vmem:[#allocation41_spill] sm:$0xff] %v8283_v52  ;;  %v8314_v52 = vld [vmem:[%s10358_s7 + $0x190] sm:$0xff] }
 0xb54   :  { %3165 = vadd.xlane.f32.xlu0 %v3164_v16  ;;  %3150 = vadd.xlane.f32.xlu1 %v3149_v37  ;;  %v8267_v16 = vmul.f32 %v8230_v45, %v7945_v21  ;;  %v3167_v37 = vsel %vm2903_vm14, %v3061_v50, 0.0  ;;  %v8298_v50 = vld [vmem:[%s10358_s7 + $0x188] sm:$0xff]  ;;  %10439 = vst [vmem:[#allocation51_spill] sm:$0xff] %v8398_v24  ;;  %v3209_v45 = vsel %vm2903_vm14, %v3075_v46, 0.0 }
 0xb56   :  { %10427 = vst [vmem:[#allocation39_spill] sm:$0xff] %v8267_v16  ;;  %v8326_v16 = vmul.f32 %v8298_v50, %v7945_v21 }
 0xb58   :  { %3168 = vadd.xlane.f32.xlu0 %v3167_v37  ;;  %3186 = vadd.xlane.f32.xlu1 %v3185_v7  ;;  %v8304_v7 = vld [vmem:[%s10358_s7 + $0x160] sm:$0xff]  ;;  %v8309_v37 = vld [vmem:[%s10358_s7 + $0x130] sm:$0xff]  ;;  %10432 = vst [vmem:[#allocation44_spill] sm:$0xff] %v8326_v16  ;;  %v8347_v16 = vmul.f32 %v8314_v52, %v7945_v21 }
 0xb59   :  { %v8339_v38 = vmul.f32 %v8309_v37, %v7945_v21  ;;  %v8343_v2 = vmul.f32 %v8304_v7, %v7945_v21 }
 0xb5a   :  { %10436 = vst [vmem:[#allocation48_spill] sm:$0xff] %v8347_v16  ;;  %v8364_v16 = vld [vmem:[%s10358_s7 + $0x1a0] sm:$0xff] }
 0xb5b   :  { %10434 = vst [vmem:[#allocation46_spill] sm:$0xff] %v8339_v38  ;;  %10435 = vst [vmem:[#allocation47_spill] sm:$0xff] %v8343_v2  ;;  %v8359_v38 = vmul.f32 %v8331_v6, %v7945_v21  ;;  %v8394_v2 = vmul.f32 %v8369_v53, %v7945_v21  ;;  %v8423_v3 = vmul.f32 %v8364_v16, %v7945_v21 }
 0xb5c   :  { %3201 = vadd.xlane.f32.xlu0 %v3200_v31  ;;  %3204 = vadd.xlane.f32.xlu1 %v3203_v51  ;;  %v8380_v51 = vld [vmem:[%s10358_s7 + $0x1c8] sm:$0xff]  ;;  %v8385_v31 = vld [vmem:[%s10358_s7 + $0x170] sm:$0xff] }
 0xb5d   :  { %10437 = vst [vmem:[#allocation49_spill] sm:$0xff] %v8359_v38  ;;  %v8390_v38 = vld [vmem:[%s10358_s7 + $0x1d0] sm:$0xff]  ;;  %10438 = vst [vmem:[#allocation50_spill] sm:$0xff] %v8394_v2  ;;  %v8411_v57 = vmul.f32 %v8385_v31, %v7945_v21  ;;  %v8415_v2 = vmul.f32 %v8380_v51, %v7945_v21 }
 0xb5e   :  { %v8419_v24 = vmul.f32 %v8390_v38, %v7945_v21  ;;  %10444 = vst [vmem:[#allocation56_spill] sm:$0xff] %v8423_v3  ;;  %v3191_v3 = vsel %vm2903_vm14, %v3069_v44, 0.0 }
 0xb5f   :  { %10441 = vst [vmem:[#allocation53_spill] sm:$0xff] %v8411_v57  ;;  %10442 = vst [vmem:[#allocation54_spill] sm:$0xff] %v8415_v2  ;;  %v8432_v57 = vld [vmem:[%s10358_s7 + $0x1e0] sm:$0xff]  ;;  %v8436_v2 = vmul.f32 %v8407_v13, %v7945_v21 }
 0xb60   :  { %10443 = vst [vmem:[#allocation55_spill] sm:$0xff] %v8419_v24  ;;  %3189 = vadd.xlane.f32.xlu0 %v3188_v30  ;;  %3171 = vadd.xlane.f32.xlu1 %v3170_v58  ;;  %v8457_v58 = vld [vmem:[%s10358_s7 + $0x1b0] sm:$0xff]  ;;  %v8462_v30 = vld [vmem:[%s10358_s7 + $0x1e8] sm:$0xff]  ;;  %v8471_v24 = vmul.f32 %v8446_v41, %v7945_v21  ;;  %v8475_v44 = vmul.f32 %v8432_v57, %v7945_v21 }
 0xb61   :  { %10445 = vst [vmem:[#allocation57_spill] sm:$0xff] %v8436_v2  ;;  %v8467_v2 = vld [vmem:[%s10358_s7 + $0x1f0] sm:$0xff]  ;;  %v8500_v33 = vmul.f32 %v8462_v30, %v7945_v21 }
 0xb62   :  { %10446 = vst [vmem:[#allocation58_spill] sm:$0xff] %v8471_v24  ;;  %10447 = vst [vmem:[#allocation59_spill] sm:$0xff] %v8475_v44  ;;  %v8492_v24 = vmul.f32 %v8457_v58, %v7945_v21  ;;  %v8496_v44 = vmul.f32 %v8467_v2, %v7945_v21  ;;  %v3077_v21 = vmul.f32 %v8279_v43, %v7931_v28 }
 0xb63   :  { %10452 = vst [vmem:[#allocation64_spill] sm:$0xff] %v8500_v33  ;;  %v3076_v33 = vmul.f32 %v8256_v39, %v7931_v28  ;;  %v3082_v39 = vmul.f32 %v8235_v49, %v7931_v28  ;;  %v3096_v49 = vmul.f32 %v8355_v29, %v7931_v28 }
 0xb64   :  { %10450 = vst [vmem:[#allocation62_spill] sm:$0xff] %v8492_v24  ;;  %10451 = vst [vmem:[#allocation63_spill] sm:$0xff] %v8496_v44  ;;  %3192 = vadd.xlane.f32.xlu0 %v3191_v3  ;;  %3207 = vadd.xlane.f32.xlu1 %v3206_v10  ;;  %v3224_v44 = vsel %vm2903_vm14, %v3080_v22, 0.0  ;;  %v3173_v24 = vsel %vm2903_vm14, %v3063_v62, 0.0  ;;  %v3081_v22 = vmul.f32 %v8219_v61, %v7931_v28  ;;  %v3215_v10 = vsel %vm2903_vm14, %v3077_v21, 0.0 }
 0xb65   :  { %v3212_v54 = vsel %vm2903_vm14, %v3076_v33, 0.0  ;;  %v3070_v33 = vmul.f32 %v8224_v34, %v7931_v28  ;;  %v3248_v3 = vsel %vm2903_vm14, %v3088_v4, 0.0  ;;  %v3084_v61 = vmul.f32 %v8304_v7, %v7931_v28 }
 0xb66   :  { %v3227_v62 = vsel %vm2903_vm14, %v3081_v22, 0.0  ;;  %v3230_v12 = vsel %vm2903_vm14, %v3082_v39, 0.0  ;;  %v3085_v34 = vmul.f32 %v8331_v6, %v7931_v28  ;;  %v3089_v21 = vmul.f32 %v8298_v50, %v7931_v28 }
 0xb67   :  { %v3194_v43 = vsel %vm2903_vm14, %v3070_v33, 0.0  ;;  %v3100_v50 = vmul.f32 %v8432_v57, %v7931_v28  ;;  %v3090_v4 = vmul.f32 %v8314_v52, %v7931_v28  ;;  %v3103_v52 = vmul.f32 %v8484_v0, %v7931_v28 }
 0xb68   :  { %3225 = vadd.xlane.f32.xlu0 %v3224_v44  ;;  %3174 = vadd.xlane.f32.xlu1 %v3173_v24  ;;  %v3236_v24 = vsel %vm2903_vm14, %v3084_v61, 0.0  ;;  %v3071_v44 = vmul.f32 %v8240_v23, %v7931_v28  ;;  %v3239_v46 = vsel %vm2903_vm14, %v3085_v34, 0.0  ;;  %v3092_v23 = vmul.f32 %v8364_v16, %v7931_v28 }
 0xb69   :  { %v3251_v29 = vsel %vm2903_vm14, %v3089_v21, 0.0  ;;  %v3284_v33 = vsel %vm2903_vm14, %v3100_v50, 0.0  ;;  %v3091_v61 = vmul.f32 %v8374_v1, %v7931_v28  ;;  %v3293_v39 = vsel %vm2903_vm14, %v3103_v52, 0.0 }
 0xb6a   :  { %v3197_v7 = vsel %vm2903_vm14, %v3071_v44, 0.0  ;;  %v3260_v22 = vsel %vm2903_vm14, %v3092_v23, 0.0  ;;  %v3086_v0 = vmul.f32 %v8385_v31, %v7931_v28  ;;  %v3777_v1 = vsel %vm2903_vm14, %v8039_v56, 0.0 }
 0xb6b   :  { %v3087_v31 = vmul.f32 %v8446_v41, %v7931_v28  ;;  %v3780_v56 = vsel %vm2903_vm14, %v8045_v40, 0.0  ;;  %v3094_v41 = vmul.f32 %v8457_v58, %v7931_v28  ;;  %v3819_v40 = vsel %vm2903_vm14, %v8062_v47, 0.0 }
 0xb6c   :  { %3213 = vadd.xlane.f32.xlu0 %v3212_v54  ;;  %3210 = vadd.xlane.f32.xlu1 %v3209_v45  ;;  %v3083_v54 = vmul.f32 %v8293_v59, %v7931_v28  ;;  %v3272_v45 = vsel %vm2903_vm14, %v3096_v49, 0.0  ;;  %v3093_v59 = vmul.f32 %v8407_v13, %v7931_v28  ;;  %v3254_v13 = vsel %vm2903_vm14, %v3090_v4, 0.0 }
 0xb6d   :  { %v3242_v34 = vsel %vm2903_vm14, %v3086_v0, 0.0  ;;  %v3266_v49 = vsel %vm2903_vm14, %v3094_v41, 0.0  ;;  %v3102_v58 = vmul.f32 %v8467_v2, %v7931_v28  ;;  %v3789_v2 = vsel %vm2903_vm14, %v8082_v55, 0.0 }
 0xb6e   :  { %v3233_v6 = vsel %vm2903_vm14, %v3083_v54, 0.0  ;;  %v3825_v4 = vsel %vm2903_vm14, %v8089_v20, 0.0  ;;  %v3792_v20 = vsel %vm2903_vm14, %v8103_v9, 0.0 }
 0xb6f   :  { %v3290_v21 = vsel %vm2903_vm14, %v3102_v58, 0.0  ;;  %v10454_v58 = vld [vmem:[#allocation20_spill] sm:$0xff] }
 0xb70   :  { %3216 = vadd.xlane.f32.xlu0 %v3215_v10  ;;  %3228 = vadd.xlane.f32.xlu1 %v3227_v62  ;;  %v3078_v10 = vmul.f32 %v8309_v37, %v7931_v28  ;;  %v3263_v62 = vsel %vm2903_vm14, %v3093_v59, 0.0  ;;  %v3095_v37 = vmul.f32 %v8441_v11, %v7931_v28  ;;  %v3257_v11 = vsel %vm2903_vm14, %v3091_v61, 0.0 }
 0xb71   :  { %v3768_v59 = vsel %vm2903_vm14, %v8086_v32, 0.0 }
 0xb72   :  { %v3218_v16 = vsel %vm2903_vm14, %v3078_v10, 0.0 }
 0xb74   :  { %3249 = vadd.xlane.f32.xlu0 %v3248_v3  ;;  %3195 = vadd.xlane.f32.xlu1 %v3194_v43  ;;  %v3079_v3 = vmul.f32 %v8369_v53, %v7931_v28  ;;  %v3269_v43 = vsel %vm2903_vm14, %v3095_v37, 0.0  ;;  %v3097_v53 = vmul.f32 %v8380_v51, %v7931_v28  ;;  %v3098_v51 = vmul.f32 %v8390_v38, %v7931_v28 }
 0xb75   :  { %v3099_v38 = vmul.f32 %v8451_v14, %v7931_v28  ;;  %v3101_v14 = vmul.f32 %v8462_v30, %v7931_v28  ;;  %v3822_v30 = vsel %vm2903_vm14, %v8071_v42, 0.0 }
 0xb76   :  { %v3221_v57 = vsel %vm2903_vm14, %v3079_v3, 0.0  ;;  %v3278_v44 = vsel %vm2903_vm14, %v3098_v51, 0.0  ;;  %v3846_v51 = vsel %vm2903_vm14, %v8126_v60, 0.0  ;;  %v3813_v60 = vsel %vm2903_vm14, %v8133_v8, 0.0 }
 0xb77   :  { %v3287_v54 = vsel %vm2903_vm14, %v3101_v14, 0.0  ;;  %v3804_v8 = vsel %vm2903_vm14, %v10454_v58, 0.0 }
 0xb78   :  { %3237 = vadd.xlane.f32.xlu0 %v3236_v24  ;;  %3231 = vadd.xlane.f32.xlu1 %v3230_v12  ;;  %v3771_v24 = vsel %vm2903_vm14, %v8036_v26, 0.0  ;;  %v3275_v12 = vsel %vm2903_vm14, %v3097_v53, 0.0  ;;  %v3795_v26 = vsel %vm2903_vm14, %v8042_v18, 0.0  ;;  %v3801_v18 = vsel %vm2903_vm14, %v8059_v19, 0.0 }
 0xb79   :  { %v3786_v19 = vsel %vm2903_vm14, %v8068_v5, 0.0  ;;  %v3810_v53 = vsel %vm2903_vm14, %v8106_v15, 0.0  ;;  %v3783_v15 = vsel %vm2903_vm14, %v8130_v25, 0.0  ;;  %v3816_v25 = vsel %vm2903_vm14, %v8137_v48, 0.0 }
 0xb7c   :  { %3240 = vadd.xlane.f32.xlu0 %v3239_v46  ;;  %3198 = vadd.xlane.f32.xlu1 %v3197_v7  ;;  %v3245_v46 = vsel %vm2903_vm14, %v3087_v31, 0.0  ;;  %v3281_v7 = vsel %vm2903_vm14, %v3099_v38, 0.0 }
 0xb80   :  { %3273 = vadd.xlane.f32.xlu0 %v3272_v45  ;;  %3234 = vadd.xlane.f32.xlu1 %v3233_v6 }
 0xb84   :  { %3261 = vadd.xlane.f32.xlu0 %v3260_v22  ;;  %3252 = vadd.xlane.f32.xlu1 %v3251_v29 }
 0xb88   :  { %3264 = vadd.xlane.f32.xlu0 %v3263_v62  ;;  %3219 = vadd.xlane.f32.xlu1 %v3218_v16 }
 0xb8c   :  { %3285 = vadd.xlane.f32.xlu0 %v3284_v33  ;;  %3255 = vadd.xlane.f32.xlu1 %v3254_v13  ;;  %v3774_v33 = vsel %vm2903_vm14, %v8096_v17, 0.0 }
 0xb90   :  { %3270 = vadd.xlane.f32.xlu0 %v3269_v43  ;;  %3222 = vadd.xlane.f32.xlu1 %v3221_v57  ;;  %v3843_v57 = vsel %vm2903_vm14, %v8099_v35, 0.0 }
 0xb94   :  { %3294 = vadd.xlane.f32.xlu0 %v3293_v39  ;;  %3258 = vadd.xlane.f32.xlu1 %v3257_v11 }
 0xb98   :  { %3772 = vadd.xlane.f32.xlu0 %v3771_v24  ;;  %3276 = vadd.xlane.f32.xlu1 %v3275_v12  ;;  %v3798_v24 = vsel %vm2903_vm14, %v8113_v27, 0.0 }
 0xb9c   :  { %3778 = vadd.xlane.f32.xlu0 %v3777_v1  ;;  %3243 = vadd.xlane.f32.xlu1 %v3242_v34 }
 0xba0   :  { %3796 = vadd.xlane.f32.xlu0 %v3795_v26  ;;  %3279 = vadd.xlane.f32.xlu1 %v3278_v44 }
 0xba4   :  { %3781 = vadd.xlane.f32.xlu0 %v3780_v56  ;;  %3246 = vadd.xlane.f32.xlu1 %v3245_v46 }
 0xba8   :  { %3802 = vadd.xlane.f32.xlu0 %v3801_v18  ;;  %3282 = vadd.xlane.f32.xlu1 %v3281_v7 }
 0xbac   :  { %3820 = vadd.xlane.f32.xlu0 %v3819_v40  ;;  %3267 = vadd.xlane.f32.xlu1 %v3266_v49 }
 0xbb0   :  { %3787 = vadd.xlane.f32.xlu0 %v3786_v19  ;;  %3288 = vadd.xlane.f32.xlu1 %v3287_v54  ;;  %v10453_v19 = vld [vmem:[#allocation19_spill] sm:$0xff] }
 0xbb1   :  { %v3109_v45 = vpop.xlane.xlu0 %3108  ;;  %v3106_v6 = vpop.xlane.xlu1 %3105  ;;  %v3849_v54 = vsel %vm2903_vm14, %v10453_v19, 0.0 }
 0xbb2   :  { %v3367_v47 = vrot.slane %v3109_v45, %v6939_v63  ;;  %v3363_v23 = vrot.slane %v3106_v6, %v6939_v63 }
 0xbb4   :  { %v3616_v5 = vsel %vm454_vm1, %v3367_v47, %v3363_v23  ;;  %3823 = vadd.xlane.f32.xlu0 %v3822_v30  ;;  %3291 = vadd.xlane.f32.xlu1 %v3290_v21  ;;  %v10455_v30 = vld [vmem:[#allocation21_spill] sm:$0xff] }
 0xbb5   :  { %v3112_v22 = vpop.xlane.xlu0 %3111  ;;  %v3130_v29 = vpop.xlane.xlu1 %3129  ;;  %v3867_v21 = vsel %vm2903_vm14, %v10455_v30, 0.0 }
 0xbb6   :  { %v3371_v28 = vrot.slane %v3112_v22, %v6939_v63  ;;  %v3395_v3 = vrot.slane %v3130_v29, %v6939_v63 }
 0xbb8   :  { %v3617_v10 = vsel %vm456_vm2, %v3371_v28, %v3616_v5  ;;  %3790 = vadd.xlane.f32.xlu0 %v3789_v2  ;;  %3769 = vadd.xlane.f32.xlu1 %v3768_v59  ;;  %v10456_v5 = vld [vmem:[#allocation25_spill] sm:$0xff] }
 0xbb9   :  { %v3115_v42 = vpop.xlane.xlu0 %3114  ;;  %v3118_v62 = vpop.xlane.xlu1 %3117  ;;  %v3807_v22 = vsel %vm2903_vm14, %v10456_v5, 0.0 }
 0xbba   :  { %v3375_v16 = vrot.slane %v3115_v42, %v6939_v63  ;;  %v3379_v50 = vrot.slane %v3118_v62, %v6939_v63  ;;  %v10457_v42 = vld [vmem:[#allocation26_spill] sm:$0xff] }
 0xbbb   :  { %v3834_v62 = vsel %vm2903_vm14, %v10457_v42, 0.0  ;;  %v10470_v42 = vld [vmem:[#allocation39_spill] sm:$0xff] }
 0xbbc   :  { %v3618_v55 = vsel %vm458_vm3, %v3375_v16, %v3617_v10  ;;  %3826 = vadd.xlane.f32.xlu0 %v3825_v4  ;;  %3775 = vadd.xlane.f32.xlu1 %v3774_v33  ;;  %v10458_v16 = vld [vmem:[#allocation27_spill] sm:$0xff] }
 0xbbd   :  { %v3619_v32 = vsel %vm460_vm4, %v3379_v50, %v3618_v55  ;;  %v3133_v13 = vpop.xlane.xlu0 %3132  ;;  %v3139_v37 = vpop.xlane.xlu1 %3138  ;;  %v3840_v50 = vsel %vm2903_vm14, %v10458_v16, 0.0 }
 0xbbe   :  { %v3399_v43 = vrot.slane %v3133_v13, %v6939_v63  ;;  %v3407_v11 = vrot.slane %v3139_v37, %v6939_v63 }
 0xbc0   :  { %v3623_v17 = vsel %vm454_vm1, %v3399_v43, %v3395_v3  ;;  %3844 = vadd.xlane.f32.xlu0 %v3843_v57  ;;  %3793 = vadd.xlane.f32.xlu1 %v3792_v20  ;;  %v10459_v43 = vld [vmem:[#allocation28_spill] sm:$0xff]  ;;  %v10460_v20 = vld [vmem:[#allocation29_spill] sm:$0xff] }
 0xbc1   :  { %v3136_v52 = vpop.xlane.xlu0 %3135  ;;  %v3157_v61 = vpop.xlane.xlu1 %3156  ;;  %v3870_v57 = vsel %vm2903_vm14, %v10459_v43, 0.0  ;;  %v10473_v43 = vld [vmem:[#allocation42_spill] sm:$0xff] }
 0xbc2   :  { %v3403_v39 = vrot.slane %v3136_v52, %v6939_v63  ;;  %v3431_v56 = vrot.slane %v3157_v61, %v6939_v63 }
 0xbc4   :  { %v3624_v35 = vsel %vm456_vm2, %v3403_v39, %v3623_v17  ;;  %3811 = vadd.xlane.f32.xlu0 %v3810_v53  ;;  %3799 = vadd.xlane.f32.xlu1 %v3798_v24  ;;  %v3828_v17 = vsel %vm2903_vm14, %v10460_v20, 0.0  ;;  %v10474_v20 = vld [vmem:[#allocation43_spill] sm:$0xff] }
 0xbc5   :  { %v3121_v9 = vpop.xlane.xlu0 %3120  ;;  %v3124_v12 = vpop.xlane.xlu1 %3123  ;;  %v3625_v0 = vsel %vm458_vm3, %v3407_v11, %v3624_v35  ;;  %v10461_v35 = vld [vmem:[#allocation30_spill] sm:$0xff] }
 0xbc6   :  { %v3383_v1 = vrot.slane %v3121_v9, %v6939_v63  ;;  %v3387_v34 = vrot.slane %v3124_v12, %v6939_v63  ;;  %v3837_v9 = vsel %vm2903_vm14, %v10461_v35, 0.0  ;;  %v10462_v12 = vld [vmem:[#allocation31_spill] sm:$0xff] }
 0xbc8   :  { %v3620_v27 = vsel %vm462_vm5, %v3383_v1, %v3619_v32  ;;  %3847 = vadd.xlane.f32.xlu0 %v3846_v51  ;;  %3784 = vadd.xlane.f32.xlu1 %v3783_v15 }
 0xbc9   :  { %v3154_v26 = vpop.xlane.xlu0 %3153  ;;  %v3160_v44 = vpop.xlane.xlu1 %3159  ;;  %v3621_v31 = vsel %vm464_vm6, %v3387_v34, %v3620_v27 }
 0xbca   :  { %v3427_v46 = vrot.slane %v3154_v26, %v6939_v63  ;;  %v3435_v38 = vrot.slane %v3160_v44, %v6939_v63  ;;  %v10463_v44 = vld [vmem:[#allocation32_spill] sm:$0xff] }
 0xbcc   :  { %v3630_v18 = vsel %vm454_vm1, %v3431_v56, %v3427_v46  ;;  %3814 = vadd.xlane.f32.xlu0 %v3813_v60  ;;  %3817 = vadd.xlane.f32.xlu1 %v3816_v25  ;;  %v10464_v56 = vld [vmem:[#allocation33_spill] sm:$0xff] }
 0xbcd   :  { %v3631_v7 = vsel %vm456_vm2, %v3435_v38, %v3630_v18  ;;  %v3142_v41 = vpop.xlane.xlu0 %3141  ;;  %v3145_v40 = vpop.xlane.xlu1 %3144  ;;  %v3864_v46 = vsel %vm2903_vm14, %v10464_v56, 0.0 }
 0xbce   :  { %v3411_v49 = vrot.slane %v3142_v41, %v6939_v63  ;;  %v3415_v14 = vrot.slane %v3145_v40, %v6939_v63  ;;  %v10465_v40 = vld [vmem:[#allocation34_spill] sm:$0xff] }
 0xbd0   :  { %v3626_v48 = vsel %vm460_vm4, %v3411_v49, %v3625_v0  ;;  %3850 = vadd.xlane.f32.xlu0 %v3849_v54  ;;  %3805 = vadd.xlane.f32.xlu1 %v3804_v8  ;;  %v3831_v0 = vsel %vm2903_vm14, %v10462_v12, 0.0  ;;  %v3891_v49 = vsel %vm2903_vm14, %v10465_v40, 0.0  ;;  %v10477_v12 = vld [vmem:[#allocation46_spill] sm:$0xff] }
 0xbd1   :  { %v3627_v45 = vsel %vm462_vm5, %v3415_v14, %v3626_v48  ;;  %v3127_v6 = vpop.xlane.xlu0 %3126  ;;  %v3178_v47 = vpop.xlane.xlu1 %3177  ;;  %v10466_v14 = vld [vmem:[#allocation35_spill] sm:$0xff] }
 0xbd2   :  { %v3391_v23 = vrot.slane %v3127_v6, %v6939_v63  ;;  %v3459_v13 = vrot.slane %v3178_v47, %v6939_v63  ;;  %v3852_v19 = vsel %vm2903_vm14, %v10466_v14, 0.0  ;;  %v10467_v6 = vld [vmem:[#allocation36_spill] sm:$0xff] }
 0xbd3   :  { %v3858_v47 = vsel %vm2903_vm14, %v10467_v6, 0.0 }
 0xbd4   :  { %3868 = vadd.xlane.f32.xlu0 %v3867_v21  ;;  %3808 = vadd.xlane.f32.xlu1 %v3807_v22  ;;  %v8682_v29 = vsel %vm466_vm7, %v3391_v23, %v3621_v31  ;;  %v3873_v31 = vsel %vm2903_vm14, %v10463_v44, 0.0  ;;  %v10468_v23 = vld [vmem:[#allocation37_spill] sm:$0xff] }
 0xbd5   :  { %v3163_v28 = vpop.xlane.xlu0 %3162  ;;  %v3148_v2 = vpop.xlane.xlu1 %3147  ;;  %v3855_v30 = vsel %vm2903_vm14, %v10468_v23, 0.0 }
 0xbd6   :  { %v3439_v59 = vrot.slane %v3163_v28, %v6939_v63  ;;  %v3419_v10 = vrot.slane %v3148_v2, %v6939_v63 }
 0xbd8   :  { %v3632_v4 = vsel %vm458_vm3, %v3439_v59, %v3631_v7  ;;  %3835 = vadd.xlane.f32.xlu0 %v3834_v62  ;;  %3841 = vadd.xlane.f32.xlu1 %v3840_v50  ;;  %v3628_v33 = vsel %vm464_vm6, %v3419_v10, %v3627_v45  ;;  %v10469_v59 = vld [vmem:[#allocation38_spill] sm:$0xff]  ;;  %v3888_v62 = vsel %vm2903_vm14, %v10470_v42, 0.0 }
 0xbd9   :  { %v3181_v55 = vpop.xlane.xlu0 %3180  ;;  %v3184_v32 = vpop.xlane.xlu1 %3183  ;;  %v3894_v10 = vsel %vm2903_vm14, %v10469_v59, 0.0  ;;  %v10488_v59 = vld [vmem:[#allocation57_spill] sm:$0xff] }
 0xbda   :  { %v3463_v37 = vrot.slane %v3181_v55, %v6939_v63  ;;  %v3467_v3 = vrot.slane %v3184_v32, %v6939_v63  ;;  %v10472_v32 = vld [vmem:[#allocation41_spill] sm:$0xff] }
 0xbdc   :  { %v3637_v52 = vsel %vm454_vm1, %v3463_v37, %v3459_v13  ;;  %3871 = vadd.xlane.f32.xlu0 %v3870_v57  ;;  %3829 = vadd.xlane.f32.xlu1 %v3828_v17  ;;  %v3876_v13 = vsel %vm2903_vm14, %v10472_v32, 0.0  ;;  %v3897_v57 = vsel %vm2903_vm14, %v10473_v43, 0.0  ;;  %v3879_v17 = vsel %vm2903_vm14, %v10474_v20, 0.0  ;;  %v10490_v32 = vld [vmem:[#allocation59_spill] sm:$0xff]  ;;  %v10491_v20 = vld [vmem:[#allocation60_spill] sm:$0xff] }
 0xbdd   :  { %v3638_v61 = vsel %vm456_vm2, %v3467_v3, %v3637_v52  ;;  %v3166_v39 = vpop.xlane.xlu0 %3165  ;;  %v3151_v11 = vpop.xlane.xlu1 %3150 }
 0xbde   :  { %v3443_v53 = vrot.slane %v3166_v39, %v6939_v63  ;;  %v3423_v24 = vrot.slane %v3151_v11, %v6939_v63  ;;  %v10475_v39 = vld [vmem:[#allocation44_spill] sm:$0xff] }
 0xbdf   :  { %v3915_v11 = vsel %vm2903_vm14, %v10475_v39, 0.0  ;;  %v10492_v39 = vld [vmem:[#allocation61_spill] sm:$0xff] }
 0xbe0   :  { %v3633_v1 = vsel %vm460_vm4, %v3443_v53, %v3632_v4  ;;  %3838 = vadd.xlane.f32.xlu0 %v3837_v9  ;;  %3832 = vadd.xlane.f32.xlu1 %v3831_v0  ;;  %v8709_v34 = vsel %vm466_vm7, %v3423_v24, %v3628_v33  ;;  %v10471_v33 = vld [vmem:[#allocation40_spill] sm:$0xff]  ;;  %v10476_v53 = vld [vmem:[#allocation45_spill] sm:$0xff]  ;;  %v3882_v0 = vsel %vm2903_vm14, %v10477_v12, 0.0  ;;  %v10493_v12 = vld [vmem:[#allocation62_spill] sm:$0xff] }
 0xbe1   :  { %v3169_v51 = vpop.xlane.xlu0 %3168  ;;  %v3187_v15 = vpop.xlane.xlu1 %3186  ;;  %v3861_v55 = vsel %vm2903_vm14, %v10471_v33, 0.0  ;;  %v3912_v24 = vsel %vm2903_vm14, %v10476_v53, 0.0  ;;  %v10489_v33 = vld [vmem:[#allocation58_spill] sm:$0xff] }
 0xbe2   :  { %v3447_v27 = vrot.slane %v3169_v51, %v6939_v63  ;;  %v3471_v26 = vrot.slane %v3187_v15, %v6939_v63 }
 0xbe4   :  { %v3634_v38 = vsel %vm462_vm5, %v3447_v27, %v3633_v1  ;;  %v3639_v60 = vsel %vm458_vm3, %v3471_v26, %v3638_v61  ;;  %3874 = vadd.xlane.f32.xlu0 %v3873_v31  ;;  %3865 = vadd.xlane.f32.xlu1 %v3864_v46  ;;  %v10478_v1 = vld [vmem:[#allocation47_spill] sm:$0xff]  ;;  %v10479_v26 = vld [vmem:[#allocation48_spill] sm:$0xff]  ;;  %v10480_v31 = vld [vmem:[#allocation49_spill] sm:$0xff] }
 0xbe5   :  { %v3202_v25 = vpop.xlane.xlu0 %3201  ;;  %v3205_v18 = vpop.xlane.xlu1 %3204  ;;  %v3900_v51 = vsel %vm2903_vm14, %v10478_v1, 0.0  ;;  %v3918_v44 = vsel %vm2903_vm14, %v10479_v26, 0.0  ;;  %v3903_v56 = vsel %vm2903_vm14, %v10480_v31, 0.0  ;;  %v10494_v1 = vld [vmem:[#allocation63_spill] sm:$0xff]  ;;  %v10495_v31 = vld [vmem:[#allocation64_spill] sm:$0xff] }
 0xbe6   :  { %v3491_v7 = vrot.slane %v3202_v25, %v6939_v63  ;;  %v3495_v41 = vrot.slane %v3205_v18, %v6939_v63  ;;  %v10482_v18 = vld [vmem:[#allocation51_spill] sm:$0xff] }
 0xbe8   :  { %v8726_v54 = vsel %vm454_vm1, %v3495_v41, %v3491_v7  ;;  %3892 = vadd.xlane.f32.xlu0 %v3891_v49  ;;  %3853 = vadd.xlane.f32.xlu1 %v3852_v19  ;;  %v3936_v7 = vsel %vm2903_vm14, %v10482_v18, 0.0  ;;  %v10483_v49 = vld [vmem:[#allocation52_spill] sm:$0xff]  ;;  %v10484_v19 = vld [vmem:[#allocation53_spill] sm:$0xff] }
 0xbe9   :  { %v3190_v58 = vpop.xlane.xlu0 %3189  ;;  %v3172_v8 = vpop.xlane.xlu1 %3171  ;;  %v3921_v14 = vsel %vm2903_vm14, %v10483_v49, 0.0  ;;  %v3957_v49 = vsel %vm2903_vm14, %v8509_v36, 0.0 }
 0xbea   :  { %v3475_v48 = vrot.slane %v3190_v58, %v6939_v63  ;;  %v3451_v45 = vrot.slane %v3172_v8, %v6939_v63  ;;  %v3906_v58 = vsel %vm2903_vm14, %v10484_v19, 0.0 }
 0xbec   :  { %v3640_v21 = vsel %vm460_vm4, %v3475_v48, %v3639_v60  ;;  %3859 = vadd.xlane.f32.xlu0 %v3858_v47  ;;  %3856 = vadd.xlane.f32.xlu1 %v3855_v30  ;;  %v8736_v5 = vsel %vm464_vm6, %v3451_v45, %v3634_v38  ;;  %v10481_v60 = vld [vmem:[#allocation50_spill] sm:$0xff]  ;;  %v10486_v47 = vld [vmem:[#allocation55_spill] sm:$0xff] }
 0xbed   :  { %v3193_v22 = vpop.xlane.xlu0 %3192  ;;  %v8738_v28 = vpop.xlane.xlu1 %3207  ;;  %v3885_v25 = vsel %vm2903_vm14, %v10481_v60, 0.0  ;;  %v10485_v45 = vld [vmem:[#allocation54_spill] sm:$0xff]  ;;  %v3942_v23 = vsel %vm2903_vm14, %v10486_v47, 0.0  ;;  %v3680_v60 = vsel %vm10394_vm8, %v8682_v29, 0.0 }
 0xbee   :  { %v3479_v2 = vrot.slane %v3193_v22, %v6939_v63  ;;  %v3939_v6 = vsel %vm2903_vm14, %v10485_v45, 0.0  ;;  %v10487_v22 = vld [vmem:[#allocation56_spill] sm:$0xff] }
 0xbf0   :  { %v8746_v16 = vsel %vm462_vm5, %v3479_v2, %v3640_v21  ;;  %3895 = vadd.xlane.f32.xlu0 %v3894_v10  ;;  %3889 = vadd.xlane.f32.xlu1 %v3888_v62  ;;  %v3924_v2 = vsel %vm2903_vm14, %v10487_v22, 0.0  ;;  %v3927_v10 = vsel %vm2903_vm14, %v10488_v59, 0.0 }
 0xbf1   :  { %v8748_v50 = vpop.xlane.xlu0 %3225  ;;  %v8750_v4 = vpop.xlane.xlu1 %3174 }
 0xbf2   :  { %v3523_v47 = vrot.slane %v8748_v50, %v6939_v63 }
 0xbf4   :  { %3862 = vadd.xlane.f32.xlu0 %v3861_v55  ;;  %3877 = vadd.xlane.f32.xlu1 %v3876_v13  ;;  %v3909_v55 = vsel %vm2903_vm14, %v10489_v33, 0.0  ;;  %v3948_v13 = vsel %vm2903_vm14, %v10490_v32, 0.0 }
 0xbf5   :  { %v8756_v37 = vpop.xlane.xlu0 %3213  ;;  %v8758_v3 = vpop.xlane.xlu1 %3210 }
 0xbf6   :  { %v3503_v19 = vrot.slane %v8758_v3, %v6939_v63  ;;  %v3683_v3 = vsel %vm10394_vm8, %v8709_v34, 0.0 }
 0xbf8   :  { %3898 = vadd.xlane.f32.xlu0 %v3897_v57  ;;  %3880 = vadd.xlane.f32.xlu1 %v3879_v17  ;;  %v3945_v17 = vsel %vm2903_vm14, %v10491_v20, 0.0 }
 0xbf9   :  { %v8764_v52 = vpop.xlane.xlu0 %3216  ;;  %v8766_v61 = vpop.xlane.xlu1 %3228 }
 0xbfa   :  { %v3527_v45 = vrot.slane %v8766_v61, %v6939_v63  ;;  %v3511_v34 = vrot.slane %v8764_v52, %v6939_v63 }
 0xbfc   :  { %3916 = vadd.xlane.f32.xlu0 %v3915_v11  ;;  %3913 = vadd.xlane.f32.xlu1 %v3912_v24  ;;  %v3933_v11 = vsel %vm2903_vm14, %v10492_v39, 0.0 }
 0xbfd   :  { %v8772_v35 = vpop.xlane.xlu0 %3249  ;;  %v8774_v9 = vpop.xlane.xlu1 %3195 }
 0xbfe   :  { %v3555_v22 = vrot.slane %v8772_v35, %v6939_v63 }
 0xc00   :  { %3883 = vadd.xlane.f32.xlu0 %v3882_v0  ;;  %3901 = vadd.xlane.f32.xlu1 %v3900_v51  ;;  %v3930_v0 = vsel %vm2903_vm14, %v10493_v12, 0.0  ;;  %v3954_v51 = vsel %vm2903_vm14, %v10494_v1, 0.0 }
 0xc01   :  { %v8780_v15 = vpop.xlane.xlu0 %3237  ;;  %v8782_v27 = vpop.xlane.xlu1 %3231 }
 0xc04   :  { %3919 = vadd.xlane.f32.xlu0 %v3918_v44  ;;  %3904 = vadd.xlane.f32.xlu1 %v3903_v56  ;;  %v3951_v56 = vsel %vm2903_vm14, %v10495_v31, 0.0 }
 0xc05   :  { %v8788_v46 = vpop.xlane.xlu0 %3240  ;;  %v8790_v38 = vpop.xlane.xlu1 %3198 }
 0xc06   :  { %v3543_v12 = vrot.slane %v8788_v46, %v6939_v63 }
 0xc08   :  { %3886 = vadd.xlane.f32.xlu0 %v3885_v25  ;;  %3937 = vadd.xlane.f32.xlu1 %v3936_v7  ;;  %v3499_v7 = vrot.slane %v8738_v28, %v6939_v63  ;;  %v3483_v28 = vrot.slane %v8774_v9, %v6939_v63 }
 0xc09   :  { %v8796_v41 = vpop.xlane.xlu0 %3273  ;;  %v8798_v40 = vpop.xlane.xlu1 %3234 }
 0xc0a   :  { %v3645_v36 = vsel %vm456_vm2, %v3499_v7, %v8726_v54  ;;  %v3535_v61 = vrot.slane %v8798_v40, %v6939_v63 }
 0xc0c   :  { %3922 = vadd.xlane.f32.xlu0 %v3921_v14  ;;  %3907 = vadd.xlane.f32.xlu1 %v3906_v58  ;;  %v3455_v14 = vrot.slane %v8750_v4, %v6939_v63  ;;  %v3531_v4 = vrot.slane %v8782_v27, %v6939_v63  ;;  %v3507_v27 = vrot.slane %v8756_v37, %v6939_v63 }
 0xc0d   :  { %v8804_v8 = vpop.xlane.xlu0 %3261  ;;  %v8806_v48 = vpop.xlane.xlu1 %3252  ;;  %v3642_v37 = vsel %vm464_vm6, %v3483_v28, %v8746_v16  ;;  %v3539_v16 = vrot.slane %v8780_v15, %v6939_v63 }
 0xc0e   :  { %v3559_v9 = vrot.slane %v8806_v48, %v6939_v63  ;;  %v3636_v54 = vsel %vm466_vm7, %v3455_v14, %v8736_v5  ;;  %v3651_v48 = vsel %vm454_vm1, %v3527_v45, %v3523_v47 }
 0xc0f   :  { %v3686_v59 = vsel %vm10394_vm8, %v3636_v54, 0.0 }
 0xc10   :  { %3940 = vadd.xlane.f32.xlu0 %v3939_v6  ;;  %3943 = vadd.xlane.f32.xlu1 %v3942_v23  ;;  %v3487_v6 = vrot.slane %v8790_v38, %v6939_v63  ;;  %v3646_v38 = vsel %vm458_vm3, %v3503_v19, %v3645_v36  ;;  %v3658_v33 = vsel %vm454_vm1, %v3559_v9, %v3555_v22 }
 0xc11   :  { %v8812_v30 = vpop.xlane.xlu0 %3264  ;;  %v8814_v21 = vpop.xlane.xlu1 %3219 }
 0xc12   :  { %v3515_v52 = vrot.slane %v8814_v21, %v6939_v63 }
 0xc14   :  { %3925 = vadd.xlane.f32.xlu0 %v3924_v2  ;;  %3928 = vadd.xlane.f32.xlu1 %v3927_v10  ;;  %v3652_v2 = vsel %vm456_vm2, %v3531_v4, %v3651_v48  ;;  %v3643_v10 = vsel %vm466_vm7, %v3487_v6, %v3642_v37 }
 0xc15   :  { %v8820_v42 = vpop.xlane.xlu0 %3285  ;;  %v8822_v62 = vpop.xlane.xlu1 %3255  ;;  %v3689_v39 = vsel %vm10394_vm8, %v3643_v10, 0.0 }
 0xc16   :  { %v3563_v50 = vrot.slane %v8822_v62, %v6939_v63  ;;  %v3653_v62 = vsel %vm458_vm3, %v3535_v61, %v3652_v2  ;;  %v3603_v9 = vrot.slane %v8820_v42, %v6939_v63 }
 0xc18   :  { %3910 = vadd.xlane.f32.xlu0 %v3909_v55  ;;  %3949 = vadd.xlane.f32.xlu1 %v3948_v13  ;;  %v3647_v55 = vsel %vm460_vm4, %v3507_v27, %v3646_v38  ;;  %v3659_v32 = vsel %vm456_vm2, %v3563_v50, %v3658_v33 }
 0xc19   :  { %v8828_v43 = vpop.xlane.xlu0 %3270  ;;  %v8830_v57 = vpop.xlane.xlu1 %3222  ;;  %v3648_v20 = vsel %vm462_vm5, %v3511_v34, %v3647_v55 }
 0xc1a   :  { %v3519_v35 = vrot.slane %v8830_v57, %v6939_v63  ;;  %v3571_v57 = vrot.slane %v8804_v8, %v6939_v63  ;;  %v3649_v15 = vsel %vm464_vm6, %v3515_v52, %v3648_v20 }
 0xc1c   :  { %3946 = vadd.xlane.f32.xlu0 %v3945_v17  ;;  %3934 = vadd.xlane.f32.xlu1 %v3933_v11  ;;  %v3654_v11 = vsel %vm460_vm4, %v3539_v16, %v3653_v62  ;;  %v3650_v1 = vsel %vm466_vm7, %v3519_v35, %v3649_v15 }
 0xc1d   :  { %v8836_v53 = vpop.xlane.xlu0 %3294  ;;  %v3259_v24 = vpop.xlane.xlu1 %3258  ;;  %v3655_v7 = vsel %vm462_vm5, %v3543_v12, %v3654_v11 }
 0xc1e   :  { %v3567_v5 = vrot.slane %v3259_v24, %v6939_v63  ;;  %v3615_v50 = vrot.slane %v8836_v53, %v6939_v63 }
 0xc20   :  { %3931 = vadd.xlane.f32.xlu0 %v3930_v0  ;;  %3955 = vadd.xlane.f32.xlu1 %v3954_v51  ;;  %v3660_v17 = vsel %vm458_vm3, %v3567_v5, %v3659_v32 }
 0xc21   :  { %v8842_v26 = vpop.xlane.xlu0 %3772  ;;  %v8844_v44 = vpop.xlane.xlu1 %3276  ;;  %v3661_v51 = vsel %vm460_vm4, %v3571_v57, %v3660_v17 }
 0xc22   :  { %v3591_v31 = vrot.slane %v8844_v44, %v6939_v63  ;;  %v3692_v44 = vsel %vm10394_vm8, %v3650_v1, 0.0  ;;  %v4031_v35 = vrot.slane %v8842_v26, %v6939_v63 }
 0xc24   :  { %3952 = vadd.xlane.f32.xlu0 %v3951_v56  ;;  %3681 = vadd.xlane.f32.xlu1 %v3680_v60  ;;  %v3575_v60 = vrot.slane %v8812_v30, %v6939_v63 }
 0xc25   :  { %v8850_v25 = vpop.xlane.xlu0 %3778  ;;  %v8852_v18 = vpop.xlane.xlu1 %3243 }
 0xc26   :  { %v3547_v24 = vrot.slane %v8852_v18, %v6939_v63  ;;  %v3662_v30 = vsel %vm462_vm5, %v3575_v60, %v3661_v51  ;;  %v4039_v20 = vrot.slane %v8850_v25, %v6939_v63 }
 0xc28   :  { %3958 = vadd.xlane.f32.xlu0 %v3957_v49  ;;  %v3587_v49 = vrot.slane %v8796_v41, %v6939_v63  ;;  %v3656_v19 = vsel %vm464_vm6, %v3547_v24, %v3655_v7  ;;  %v3583_v41 = vrot.slane %v8828_v43, %v6939_v63 }
 0xc29   :  { %v8862_v29 = vpop.xlane.xlu0 %3796  ;;  %v8864_v58 = vpop.xlane.xlu1 %3279 }
 0xc2a   :  { %v3595_v18 = vrot.slane %v8864_v58, %v6939_v63  ;;  %v3665_v58 = vsel %vm454_vm1, %v3591_v31, %v3587_v49 }
 0xc2c   :  { %3684 = vadd.xlane.f32.xlu0 %v3683_v3  ;;  %v3666_v6 = vsel %vm456_vm2, %v3595_v18, %v3665_v58  ;;  %v4063_v18 = vrot.slane %v8862_v29, %v6939_v63 }
 0xc2d   :  { %v8893_v23 = vpop.xlane.xlu0 %3781  ;;  %v3247_v40 = vpop.xlane.xlu1 %3246 }
 0xc2e   :  { %v3551_v0 = vrot.slane %v3247_v40, %v6939_v63 }
 0xc30   :  { %3687 = vadd.xlane.f32.xlu0 %v3686_v59  ;;  %v3657_v45 = vsel %vm466_vm7, %v3551_v0, %v3656_v19 }
 0xc31   :  { %v8914_v21 = vpop.xlane.xlu0 %3802  ;;  %v3283_v13 = vpop.xlane.xlu1 %3282  ;;  %v3695_v61 = vsel %vm10394_vm8, %v3657_v45, 0.0 }
 0xc32   :  { %v3599_v14 = vrot.slane %v3283_v13, %v6939_v63  ;;  %v4071_v19 = vrot.slane %v8914_v21, %v6939_v63 }
 0xc34   :  { %3690 = vadd.xlane.f32.xlu0 %v3689_v39  ;;  %v3667_v3 = vsel %vm458_vm3, %v3599_v14, %v3666_v6  ;;  %v4043_v39 = vrot.slane %v8893_v23, %v6939_v63 }
 0xc35   :  { %v8932_v56 = vpop.xlane.xlu0 %3820  ;;  %v3268_v8 = vpop.xlane.xlu1 %3267  ;;  %v3668_v34 = vsel %vm460_vm4, %v3603_v9, %v3667_v3 }
 0xc36   :  { %v3579_v46 = vrot.slane %v3268_v8, %v6939_v63 }
 0xc38   :  { %3693 = vadd.xlane.f32.xlu0 %v3692_v44  ;;  %v3663_v4 = vsel %vm464_vm6, %v3579_v46, %v3662_v30 }
 0xc39   :  { %v3788_v28 = vpop.xlane.xlu0 %3787  ;;  %v3289_v36 = vpop.xlane.xlu1 %3288  ;;  %v3664_v54 = vsel %vm466_vm7, %v3583_v41, %v3663_v4 }
 0xc3a   :  { %v3607_v47 = vrot.slane %v3289_v36, %v6939_v63  ;;  %v3698_v48 = vsel %vm10394_vm8, %v3664_v54, 0.0  ;;  %v4051_v26 = vrot.slane %v3788_v28, %v6939_v63 }
 0xc3c   :  { %3696 = vadd.xlane.f32.xlu0 %v3695_v61  ;;  %v3669_v40 = vsel %vm462_vm5, %v3607_v47, %v3668_v34  ;;  %v4095_v61 = vrot.slane %v8932_v56, %v6939_v63 }
 0xc3d   :  { %v8958_v27 = vpop.xlane.xlu0 %3823  ;;  %v3292_v38 = vpop.xlane.xlu1 %3291 }
 0xc3e   :  { %v3611_v43 = vrot.slane %v3292_v38, %v6939_v63  ;;  %v4099_v34 = vrot.slane %v8958_v27, %v6939_v63 }
 0xc40   :  { %3699 = vadd.xlane.f32.xlu0 %v3698_v48  ;;  %v3670_v42 = vsel %vm464_vm6, %v3611_v43, %v3669_v40 }
 0xc41   :  { %v3791_v22 = vpop.xlane.xlu0 %3790  ;;  %v3770_v5 = vpop.xlane.xlu1 %3769  ;;  %v3671_v37 = vsel %vm466_vm7, %v3615_v50, %v3670_v42 }
 0xc42   :  { %v3701_v2 = vsel %vm10394_vm8, %v3671_v37, 0.0  ;;  %v4027_v10 = vrot.slane %v3770_v5, %v6939_v63  ;;  %v4055_v12 = vrot.slane %v3791_v22, %v6939_v63 }
 0xc44   :  { %3702 = vadd.xlane.f32.xlu0 %v3701_v2  ;;  %v4280_v55 = vsel %vm454_vm1, %v4031_v35, %v4027_v10 }
 0xc45   :  { %v8969_v52 = vpop.xlane.xlu0 %3826  ;;  %v3776_v59 = vpop.xlane.xlu1 %3775 }
 0xc46   :  { %v4035_v53 = vrot.slane %v3776_v59, %v6939_v63  ;;  %v4103_v42 = vrot.slane %v8969_v52, %v6939_v63 }
 0xc48   :  { %v4281_v16 = vsel %vm456_vm2, %v4035_v53, %v4280_v55 }
 0xc49   :  { %v8973_v62 = vpop.xlane.xlu0 %3844  ;;  %v3794_v33 = vpop.xlane.xlu1 %3793  ;;  %v4282_v17 = vsel %vm458_vm3, %v4039_v20, %v4281_v16 }
 0xc4a   :  { %v4283_v15 = vsel %vm460_vm4, %v4043_v39, %v4282_v17  ;;  %v4059_v31 = vrot.slane %v3794_v33, %v6939_v63  ;;  %v4127_v20 = vrot.slane %v8973_v62, %v6939_v63 }
 0xc4c   :  { %v4287_v49 = vsel %vm454_vm1, %v4063_v18, %v4059_v31 }
 0xc4d   :  { %v3812_v32 = vpop.xlane.xlu0 %3811  ;;  %v3800_v13 = vpop.xlane.xlu1 %3799 }
 0xc4e   :  { %v4067_v8 = vrot.slane %v3800_v13, %v6939_v63  ;;  %v4083_v29 = vrot.slane %v3812_v32, %v6939_v63 }
 0xc50   :  { %v4288_v14 = vsel %vm456_vm2, %v4067_v8, %v4287_v49 }
 0xc51   :  { %v8984_v11 = vpop.xlane.xlu0 %3847  ;;  %v3785_v57 = vpop.xlane.xlu1 %3784  ;;  %v4289_v58 = vsel %vm458_vm3, %v4071_v19, %v4288_v14 }
 0xc52   :  { %v4047_v24 = vrot.slane %v3785_v57, %v6939_v63  ;;  %v4131_v39 = vrot.slane %v8984_v11, %v6939_v63 }
 0xc54   :  { %v4284_v0 = vsel %vm462_vm5, %v4047_v24, %v4283_v15 }
 0xc55   :  { %v3815_v1 = vpop.xlane.xlu0 %3814  ;;  %v3818_v25 = vpop.xlane.xlu1 %3817  ;;  %v4285_v51 = vsel %vm464_vm6, %v4051_v26, %v4284_v0 }
 0xc56   :  { %v4286_v23 = vsel %vm466_vm7, %v4055_v12, %v4285_v51  ;;  %v4087_v4 = vrot.slane %v3815_v1, %v6939_v63  ;;  %v4091_v41 = vrot.slane %v3818_v25, %v6939_v63 }
 0xc57   :  { %v4344_v60 = vsel %vm10394_vm8, %v4286_v23, 0.0 }
 0xc58   :  { %4345 = vadd.xlane.f32.xlu1 %v4344_v60  ;;  %v4294_v38 = vsel %vm454_vm1, %v4095_v61, %v4091_v41 }
 0xc59   :  { %v3851_v46 = vpop.xlane.xlu0 %3850  ;;  %v3806_v7 = vpop.xlane.xlu1 %3805  ;;  %v4295_v40 = vsel %vm456_vm2, %v4099_v34, %v4294_v38 }
 0xc5a   :  { %v4075_v44 = vrot.slane %v3806_v7, %v6939_v63  ;;  %v4296_v5 = vsel %vm458_vm3, %v4103_v42, %v4295_v40  ;;  %v4135_v12 = vrot.slane %v3851_v46, %v6939_v63 }
 0xc5c   :  { %v4290_v36 = vsel %vm460_vm4, %v4075_v44, %v4289_v58 }
 0xc5d   :  { %v9003_v45 = vpop.xlane.xlu0 %3868  ;;  %v3809_v30 = vpop.xlane.xlu1 %3808 }
 0xc5e   :  { %v4079_v28 = vrot.slane %v3809_v30, %v6939_v63  ;;  %v4159_v58 = vrot.slane %v9003_v45, %v6939_v63 }
 0xc60   :  { %v4291_v6 = vsel %vm462_vm5, %v4079_v28, %v4290_v36 }
 0xc61   :  { %v3836_v3 = vpop.xlane.xlu0 %3835  ;;  %v3842_v47 = vpop.xlane.xlu1 %3841  ;;  %v4292_v21 = vsel %vm464_vm6, %v4083_v29, %v4291_v6 }
 0xc62   :  { %v4293_v9 = vsel %vm466_vm7, %v4087_v4, %v4292_v21  ;;  %v4115_v2 = vrot.slane %v3836_v3, %v6939_v63  ;;  %v4123_v16 = vrot.slane %v3842_v47, %v6939_v63 }
 0xc63   :  { %v4347_v54 = vsel %vm10394_vm8, %v4293_v9, 0.0 }
 0xc64   :  { %4348 = vadd.xlane.f32.xlu1 %v4347_v54  ;;  %v4301_v17 = vsel %vm454_vm1, %v4127_v20, %v4123_v16 }
 0xc65   :  { %v3872_v43 = vpop.xlane.xlu0 %3871  ;;  %v3830_v50 = vpop.xlane.xlu1 %3829  ;;  %v4302_v26 = vsel %vm456_vm2, %v4131_v39, %v4301_v17 }
 0xc66   :  { %v4107_v48 = vrot.slane %v3830_v50, %v6939_v63  ;;  %v4303_v51 = vsel %vm458_vm3, %v4135_v12, %v4302_v26  ;;  %v4163_v4 = vrot.slane %v3872_v43, %v6939_v63 }
 0xc68   :  { %v4297_v59 = vsel %vm460_vm4, %v4107_v48, %v4296_v5 }
 0xc69   :  { %v3839_v56 = vpop.xlane.xlu0 %3838  ;;  %v3833_v22 = vpop.xlane.xlu1 %3832 }
 0xc6a   :  { %v4111_v37 = vrot.slane %v3833_v22, %v6939_v63  ;;  %v4119_v27 = vrot.slane %v3839_v56, %v6939_v63 }
 0xc6c   :  { %v4298_v10 = vsel %vm462_vm5, %v4111_v37, %v4297_v59 }
 0xc6d   :  { %v3875_v53 = vpop.xlane.xlu0 %3874  ;;  %v3866_v33 = vpop.xlane.xlu1 %3865  ;;  %v4299_v35 = vsel %vm464_vm6, %v4115_v2, %v4298_v10 }
 0xc6e   :  { %v4300_v52 = vsel %vm466_vm7, %v4119_v27, %v4299_v35  ;;  %v4155_v30 = vrot.slane %v3866_v33, %v6939_v63  ;;  %v4167_v21 = vrot.slane %v3875_v53, %v6939_v63 }
 0xc6f   :  { %v4350_v55 = vsel %vm10394_vm8, %v4300_v52, 0.0 }
 0xc70   :  { %4351 = vadd.xlane.f32.xlu1 %v4350_v55  ;;  %v4308_v36 = vsel %vm454_vm1, %v4159_v58, %v4155_v30 }
 0xc71   :  { %v3893_v32 = vpop.xlane.xlu0 %3892  ;;  %v3854_v13 = vpop.xlane.xlu1 %3853  ;;  %v4309_v41 = vsel %vm456_vm2, %v4163_v4, %v4308_v36 }
 0xc72   :  { %v4139_v15 = vrot.slane %v3854_v13, %v6939_v63  ;;  %v4310_v45 = vsel %vm458_vm3, %v4167_v21, %v4309_v41  ;;  %v4191_v59 = vrot.slane %v3893_v32, %v6939_v63 }
 0xc74   :  { %v4304_v62 = vsel %vm460_vm4, %v4139_v15, %v4303_v51 }
 0xc75   :  { %v3860_v57 = vpop.xlane.xlu0 %3859  ;;  %v3857_v24 = vpop.xlane.xlu1 %3856 }
 0xc76   :  { %v4143_v0 = vrot.slane %v3857_v24, %v6939_v63  ;;  %v4147_v31 = vrot.slane %v3860_v57, %v6939_v63 }
 0xc78   :  { %v4305_v11 = vsel %vm462_vm5, %v4143_v0, %v4304_v62 }
 0xc79   :  { %v3896_v1 = vpop.xlane.xlu0 %3895  ;;  %v3890_v25 = vpop.xlane.xlu1 %3889  ;;  %v4306_v18 = vsel %vm464_vm6, %v4147_v31, %v4305_v11 }
 0xc7a   :  { %v4187_v5 = vrot.slane %v3890_v25, %v6939_v63  ;;  %v4195_v27 = vrot.slane %v3896_v1, %v6939_v63 }
 0xc7c   :  { %v4315_v10 = vsel %vm454_vm1, %v4191_v59, %v4187_v5 }
 0xc7d   :  { %v3863_v23 = vpop.xlane.xlu0 %3862  ;;  %v3878_v8 = vpop.xlane.xlu1 %3877  ;;  %v4316_v16 = vsel %vm456_vm2, %v4195_v27, %v4315_v10 }
 0xc7e   :  { %v4151_v60 = vrot.slane %v3863_v23, %v6939_v63  ;;  %v4171_v6 = vrot.slane %v3878_v8, %v6939_v63 }
 0xc80   :  { %v4307_v46 = vsel %vm466_vm7, %v4151_v60, %v4306_v18  ;;  %v4311_v54 = vsel %vm460_vm4, %v4171_v6, %v4310_v45 }
 0xc81   :  { %v3899_v7 = vpop.xlane.xlu0 %3898  ;;  %v3881_v49 = vpop.xlane.xlu1 %3880  ;;  %v4353_v14 = vsel %vm10394_vm8, %v4307_v46, 0.0 }
 0xc82   :  { %4354 = vadd.xlane.f32.xlu1 %v4353_v14  ;;  %v4175_v61 = vrot.slane %v3881_v49, %v6939_v63  ;;  %v4199_v53 = vrot.slane %v3899_v7, %v6939_v63 }
 0xc84   :  { %v4312_v43 = vsel %vm462_vm5, %v4175_v61, %v4311_v54  ;;  %v4317_v20 = vsel %vm458_vm3, %v4199_v53, %v4316_v16 }
 0xc85   :  { %v3917_v44 = vpop.xlane.xlu0 %3916  ;;  %v3914_v19 = vpop.xlane.xlu1 %3913 }
 0xc86   :  { %v4223_v32 = vrot.slane %v3917_v44, %v6939_v63  ;;  %v4219_v17 = vrot.slane %v3914_v19, %v6939_v63 }
 0xc88   :  { %v4322_v31 = vsel %vm454_vm1, %v4223_v32, %v4219_v17 }
 0xc89   :  { %v3884_v28 = vpop.xlane.xlu0 %3883  ;;  %v3902_v29 = vpop.xlane.xlu1 %3901 }
 0xc8a   :  { %v4179_v9 = vrot.slane %v3884_v28, %v6939_v63  ;;  %v4203_v33 = vrot.slane %v3902_v29, %v6939_v63 }
 0xc8c   :  { %v4313_v40 = vsel %vm464_vm6, %v4179_v9, %v4312_v43  ;;  %v4318_v39 = vsel %vm460_vm4, %v4203_v33, %v4317_v20 }
 0xc8d   :  { %v3920_v3 = vpop.xlane.xlu0 %3919  ;;  %v3905_v47 = vpop.xlane.xlu1 %3904 }
 0xc8e   :  { %v4207_v55 = vrot.slane %v3905_v47, %v6939_v63  ;;  %v4227_v24 = vrot.slane %v3920_v3, %v6939_v63 }
 0xc90   :  { %v4319_v26 = vsel %vm462_vm5, %v4207_v55, %v4318_v39  ;;  %v4323_v8 = vsel %vm456_vm2, %v4227_v24, %v4322_v31 }
 0xc91   :  { %v3887_v38 = vpop.xlane.xlu0 %3886  ;;  %v3938_v34 = vpop.xlane.xlu1 %3937 }
 0xc92   :  { %v4183_v50 = vrot.slane %v3887_v38, %v6939_v63  ;;  %v4251_v60 = vrot.slane %v3938_v34, %v6939_v63 }
 0xc94   :  { %v4314_v48 = vsel %vm466_vm7, %v4183_v50, %v4313_v40 }
 0xc95   :  { %v3923_v42 = vpop.xlane.xlu0 %3922  ;;  %v3908_v56 = vpop.xlane.xlu1 %3907  ;;  %v4356_v22 = vsel %vm10394_vm8, %v4314_v48, 0.0 }
 0xc96   :  { %4357 = vadd.xlane.f32.xlu1 %v4356_v22  ;;  %v4211_v13 = vrot.slane %v3908_v56, %v6939_v63  ;;  %v4231_v0 = vrot.slane %v3923_v42, %v6939_v63 }
 0xc98   :  { %v4320_v1 = vsel %vm464_vm6, %v4211_v13, %v4319_v26  ;;  %v4324_v18 = vsel %vm458_vm3, %v4231_v0, %v4323_v8 }
 0xc99   :  { %v3941_v37 = vpop.xlane.xlu0 %3940  ;;  %v3944_v2 = vpop.xlane.xlu1 %3943 }
 0xc9a   :  { %v4255_v25 = vrot.slane %v3941_v37, %v6939_v63  ;;  %v4259_v46 = vrot.slane %v3944_v2, %v6939_v63 }
 0xc9c   :  { %v4329_v49 = vsel %vm454_vm1, %v4255_v25, %v4251_v60 }
 0xc9d   :  { %v3926_v35 = vpop.xlane.xlu0 %3925  ;;  %v3929_v52 = vpop.xlane.xlu1 %3928  ;;  %v4330_v28 = vsel %vm456_vm2, %v4259_v46, %v4329_v49 }
 0xc9e   :  { %v4235_v51 = vrot.slane %v3926_v35, %v6939_v63  ;;  %v4239_v7 = vrot.slane %v3929_v52, %v6939_v63 }
 0xca0   :  { %v4325_v14 = vsel %vm460_vm4, %v4235_v51, %v4324_v18 }
 0xca1   :  { %v3911_v57 = vpop.xlane.xlu0 %3910  ;;  %v3950_v12 = vpop.xlane.xlu1 %3949  ;;  %v4326_v29 = vsel %vm462_vm5, %v4239_v7, %v4325_v14 }
 0xca2   :  { %v4215_v15 = vrot.slane %v3911_v57, %v6939_v63  ;;  %v4267_v6 = vrot.slane %v3950_v12, %v6939_v63 }
 0xca4   :  { %v4321_v62 = vsel %vm466_vm7, %v4215_v15, %v4320_v1 }
 0xca5   :  { %v3947_v11 = vpop.xlane.xlu0 %3946  ;;  %v4359_v23 = vsel %vm10394_vm8, %v4321_v62, 0.0  ;;  %v3935_v19 = vpop.xlane.xlu1 %3934 }
 0xca6   :  { %4360 = vadd.xlane.f32.xlu1 %v4359_v23  ;;  %v4263_v44 = vrot.slane %v3947_v11, %v6939_v63  ;;  %v4247_v36 = vrot.slane %v3935_v19, %v6939_v63 }
 0xca8   :  { %v4331_v4 = vsel %vm458_vm3, %v4263_v44, %v4330_v28 }
 0xca9   :  { %v3932_v30 = vpop.xlane.xlu0 %3931  ;;  %v3956_v21 = vpop.xlane.xlu1 %3955  ;;  %v4332_v45 = vsel %vm460_vm4, %v4267_v6, %v4331_v4 }
 0xcaa   :  { %v4243_v58 = vrot.slane %v3932_v30, %v6939_v63  ;;  %v4275_v38 = vrot.slane %v3956_v21, %v6939_v63 }
 0xcac   :  { %v4327_v41 = vsel %vm464_vm6, %v4243_v58, %v4326_v29 }
 0xcad   :  { %v3953_v3 = vpop.xlane.xlu0 %3952  ;;  %v4328_v47 = vsel %vm466_vm7, %v4247_v36, %v4327_v41  ;;  %v3682_v56 = vpop.xlane.xlu1 %3681 }
 0xcae   :  { %v4271_v61 = vrot.slane %v3953_v3, %v6939_v63  ;;  %v4362_v9 = vsel %vm10394_vm8, %v4328_v47, 0.0  ;;  %v4368_v5 = vmul.f32 0.0625, %v3682_v56 }
 0xcaf   :  { %4363 = vadd.xlane.f32.xlu1 %v4362_v9 }
 0xcb0   :  { %v4333_v54 = vsel %vm462_vm5, %v4271_v61, %v4332_v45  ;;  %v4384_v59 = vmul.f32 %v4368_v5, %v4368_v5 }
 0xcb1   :  { %v3959_v34 = vpop.xlane.xlu0 %3958  ;;  %v4334_v50 = vsel %vm464_vm6, %v4275_v38, %v4333_v54 }
 0xcb2   :  { %v4279_v43 = vrot.slane %v3959_v34, %v6939_v63 }
 0xcb4   :  { %v4335_v40 = vsel %vm466_vm7, %v4279_v43, %v4334_v50 }
 0xcb5   :  { %v4365_v48 = vsel %vm10394_vm8, %v4335_v40, 0.0  ;;  %v3685_v42 = vpop.xlane.xlu0 %3684  ;;  %vm10530_vm8 = vcmask 261312  }
 0xcb6   :  { %4366 = vadd.xlane.f32.xlu0 %v4365_v48  ;;  %v4369_v10 = vmul.f32 0.0625, %v3685_v42 }
 0xcb8   :  { %v4385_v20 = vmul.f32 %v4369_v10, %v4369_v10 }
 0xcb9   :  { %v3688_v22 = vpop.xlane.xlu0 %3687 }
 0xcba   :  { %v4370_v52 = vmul.f32 0.0625, %v3688_v22  ;;  %v9119_v22 = vld [vmem:[%s10357_s6 + $0x8] sm:$0xff] }
 0xcbc   :  { %v4386_v25 = vmul.f32 %v4370_v52, %v4370_v52 }
 0xcbd   :  { %v3691_v37 = vpop.xlane.xlu0 %3690 }
 0xcbe   :  { %v4371_v55 = vmul.f32 0.0625, %v3691_v37  ;;  %v10496_v37 = vld [vmem:[#allocation18_spill] sm:$0xff] }
 0xcc0   :  { %v4387_v60 = vmul.f32 %v4371_v55, %v4371_v55 }
 0xcc1   :  { %v3694_v35 = vpop.xlane.xlu0 %3693 }
 0xcc2   :  { %v4372_v17 = vmul.f32 0.0625, %v3694_v35 }
 0xcc4   :  { %v4388_v19 = vmul.f32 %v4372_v17, %v4372_v17 }
 0xcc5   :  { %v3697_v16 = vpop.xlane.xlu0 %3696 }
 0xcc6   :  { %v4373_v26 = vmul.f32 0.0625, %v3697_v16 }
 0xcc8   :  { %v4389_v36 = vmul.f32 %v4373_v26, %v4373_v26 }
 0xcc9   :  { %v3700_v24 = vpop.xlane.xlu0 %3699 }
 0xcca   :  { %v4374_v12 = vmul.f32 0.0625, %v3700_v24  ;;  %v9169_v24 = vld [vmem:[%s10357_s6 + $0xc8] sm:$0xff] }
 0xccc   :  { %v4390_v21 = vmul.f32 %v4374_v12, %v4374_v12 }
 0xccd   :  { %v3703_v0 = vpop.xlane.xlu0 %3702 }
 0xcce   :  { %v4375_v62 = vmul.f32 0.0625, %v3703_v0  ;;  %v9182_v0 = vld [vmem:[%s10357_s6] sm:$0xff] }
 0xcd0   :  { %v4391_v38 = vmul.f32 %v4375_v62, %v4375_v62 }
 0xce1   :  { %v4346_v2 = vpop.xlane.xlu1 %4345 }
 0xce2   :  { %v4376_v27 = vmul.f32 0.0625, %v4346_v2  ;;  %4416 = vxpose.xlu1.b32.start [1/8] (short) (narrow) %v4368_v5, 8  ;;  %v9124_v5 = vld [vmem:[%s10357_s6 + $0x40] sm:$0xff] }
 0xce4   :  { %v4392_v53 = vsub.f32 %v4376_v27, %v4384_v59 }
 0xce6   :  { %v4400_v33 = vadd.f32 1e-05, %v4392_v53  ;;  %4417 = vxpose.xlu1.b32.cont [2/8] (short) (narrow) %v4369_v10, 8  ;;  %v9136_v10 = vld [vmem:[%s10357_s6 + $0x10] sm:$0xff] }
 0xce8   :  { %6508 = vrsqrt.f32 %v4400_v33 }
 0xcea   :  { %4418 = vxpose.xlu1.b32.cont [3/8] (short) (narrow) %v4370_v52, 8  ;;  %v9145_v52 = vld [vmem:[%s10357_s6 + $0x80] sm:$0xff] }
 0xced   :  { %v4349_v13 = vpop.xlane.xlu1 %4348 }
 0xcee   :  { %v4377_v32 = vmul.f32 0.0625, %v4349_v13  ;;  %4419 = vxpose.xlu1.b32.cont [4/8] (short) (narrow) %v4371_v55, 8  ;;  %v9153_v13 = vld [vmem:[%s10357_s6 + $0x18] sm:$0xff] }
 0xcf0   :  { %v4393_v39 = vsub.f32 %v4377_v32, %v4385_v20 }
 0xcf2   :  { %v4401_v57 = vadd.f32 1e-05, %v4393_v39  ;;  %4420 = vxpose.xlu1.b32.cont [5/8] (short) (narrow) %v4372_v17, 8  ;;  %v9161_v17 = vld [vmem:[%s10357_s6 + $0x90] sm:$0xff] }
 0xcf4   :  { %6510 = vrsqrt.f32 %v4401_v57 }
 0xcf5   :  { %v6509_v15 = vpop.eup %6508 }
 0xcf6   :  { %4421 = vxpose.xlu1.b32.cont [6/8] (short) (narrow) %v4373_v26, 8  ;;  %4448 = vxpose.xlu0.b32.start [1/8] (short) (narrow) %v6509_v15, 8 }
 0xcf9   :  { %v4352_v1 = vpop.xlane.xlu1 %4351 }
 0xcfa   :  { %v4378_v51 = vmul.f32 0.0625, %v4352_v1  ;;  %4422 = vxpose.xlu1.b32.cont [7/8] (short) (narrow) %v4374_v12, 8  ;;  %v9177_v12 = vld [vmem:[%s10357_s6 + $0x60] sm:$0xff] }
 0xcfc   :  { %v4394_v31 = vsub.f32 %v4378_v51, %v4386_v25 }
 0xcfe   :  { %v4402_v11 = vadd.f32 1e-05, %v4394_v31  ;;  %4423 = vxpose.xlu1.b32.end [8/8] (short) (narrow) %v4375_v62, 8  ;;  %v9192_v62 = vld [vmem:[%s10357_s6 + $0xd0] sm:$0xff] }
 0xd00   :  { %6512 = vrsqrt.f32 %v4402_v11  ;;  %v9198_v11 = vld [vmem:[%s10357_s6 + $0x48] sm:$0xff] }
 0xd01   :  { %v6511_v23 = vpop.eup %6510 }
 0xd02   :  { %4449 = vxpose.xlu0.b32.cont [2/8] (short) (narrow) %v6511_v23, 8 }
 0xd0b   :  { %v4355_v8 = vpop.xlane.xlu1 %4354 }
 0xd0c   :  { %v4379_v18 = vmul.f32 0.0625, %v4355_v8 }
 0xd0d   :  { %v6513_v46 = vpop.eup %6512 }
 0xd0e   :  { %v4395_v7 = vsub.f32 %v4379_v18, %v4387_v60  ;;  %4450 = vxpose.xlu0.b32.cont [3/8] (short) (narrow) %v6513_v46, 8  ;;  %v9208_v18 = vld [vmem:[%s10357_s6 + $0x108] sm:$0xff]  ;;  %v9213_v46 = vld [vmem:[%s10357_s6 + $0x50] sm:$0xff] }
 0xd10   :  { %v4403_v49 = vadd.f32 1e-05, %v4395_v7 }
 0xd12   :  { %6514 = vrsqrt.f32 %v4403_v49 }
 0xd1f   :  { %v6515_v14 = vpop.eup %6514  ;;  %v4358_v44 = vpop.xlane.xlu1 %4357 }
 0xd20   :  { %v4380_v30 = vmul.f32 0.0625, %v4358_v44  ;;  %4451 = vxpose.xlu0.b32.cont [4/8] (short) (narrow) %v6515_v14, 8 }
 0xd22   :  { %v4396_v58 = vsub.f32 %v4380_v30, %v4388_v19  ;;  %v9224_v19 = vld [vmem:[%s10357_s6 + $0x68] sm:$0xff] }
 0xd23   :  { %v9229_v30 = vld [vmem:[%s10357_s6 + $0x88] sm:$0xff] }
 0xd24   :  { %v4404_v28 = vadd.f32 1e-05, %v4396_v58 }
 0xd26   :  { %6516 = vrsqrt.f32 %v4404_v28 }
 0xd2f   :  { %v4361_v29 = vpop.xlane.xlu1 %4360 }
 0xd30   :  { %v4381_v4 = vmul.f32 0.0625, %v4361_v29 }
 0xd32   :  { %v4397_v41 = vsub.f32 %v4381_v4, %v4389_v36  ;;  %v9240_v4 = vld [vmem:[%s10357_s6 + $0xd8] sm:$0xff] }
 0xd33   :  { %v6517_v6 = vpop.eup %6516 }
 0xd34   :  { %v4405_v3 = vadd.f32 1e-05, %v4397_v41  ;;  %4452 = vxpose.xlu0.b32.cont [5/8] (short) (narrow) %v6517_v6, 8  ;;  %v9245_v41 = vld [vmem:[%s10357_s6 + $0x58] sm:$0xff] }
 0xd36   :  { %6518 = vrsqrt.f32 %v4405_v3 }
 0xd38   :  { %v4364_v47 = vpop.xlane.xlu1 %4363 }
 0xd39   :  { %v4382_v61 = vmul.f32 0.0625, %v4364_v47 }
 0xd3b   :  { %v4398_v9 = vsub.f32 %v4382_v61, %v4390_v21  ;;  %v9256_v61 = vld [vmem:[%s10357_s6 + $0x140] sm:$0xff] }
 0xd3d   :  { %v4406_v45 = vadd.f32 1e-05, %v4398_v9  ;;  %v9261_v9 = vld [vmem:[%s10357_s6 + $0xc0] sm:$0xff] }
 0xd3f   :  { %6520 = vrsqrt.f32 %v4406_v45  ;;  %v4367_v54 = vpop.xlane.xlu0 %4366 }
 0xd40   :  { %v4383_v34 = vmul.f32 0.0625, %v4367_v54 }
 0xd42   :  { %v4399_v43 = vsub.f32 %v4383_v34, %v4391_v38 }
 0xd43   :  { %v6519_v50 = vpop.eup %6518 }
 0xd44   :  { %v4407_v40 = vadd.f32 1e-05, %v4399_v43  ;;  %4453 = vxpose.xlu0.b32.cont [6/8] (short) (narrow) %v6519_v50, 8  ;;  %v9272_v43 = vld [vmem:[%s10357_s6 + $0x70] sm:$0xff]  ;;  %v9277_v50 = vld [vmem:[%s10357_s6 + $0x20] sm:$0xff] }
 0xd46   :  { %6522 = vrsqrt.f32 %v4407_v40 }
 0xd4c   :  { %v6521_v48 = vpop.eup %6520 }
 0xd4d   :  { %4454 = vxpose.xlu0.b32.cont [7/8] (short) (narrow) %v6521_v48, 8 }
 0xd53   :  { %v6523_v42 = vpop.eup %6522 }
 0xd54   :  { %4455 = vxpose.xlu0.b32.end [8/8] (short) (narrow) %v6523_v42, 8 }
 0xd5e   :  { %v4432_v56 = vpop.trf.xlu1 }
 0xd5f   :  { %v9127_v2 = vrot.slane %v4432_v56, %v10496_v37 }
 0xd61   :  { %v4485_v59 = vmul.f32 %v9127_v2, %v9119_v22  ;;  %v4492_v27 = vmul.f32 %v9127_v2, %v9124_v5  ;;  %v4486_v35 = vmul.f32 %v9127_v2, %v9136_v10  ;;  %v4500_v16 = vmul.f32 %v9127_v2, %v9145_v52 }
 0xd62   :  { %v4487_v32 = vmul.f32 %v9127_v2, %v9153_v13  ;;  %v4502_v57 = vmul.f32 %v9127_v2, %v9161_v17  ;;  %v4509_v15 = vmul.f32 %v9127_v2, %v9169_v24  ;;  %v4496_v25 = vmul.f32 %v9127_v2, %v9177_v12 }
 0xd63   :  { %v4551_v53 = vsel %vm2903_vm14, %v4485_v59, 0.0  ;;  %v4572_v33 = vsel %vm2903_vm14, %v4492_v27, 0.0  ;;  %v4554_v55 = vsel %vm2903_vm14, %v4486_v35, 0.0  ;;  %v4596_v20 = vsel %vm2903_vm14, %v4500_v16, 0.0  ;;  %v9288_v59 = vld [vmem:[%s10357_s6 + $0xe0] sm:$0xff]  ;;  %v9293_v27 = vld [vmem:[%s10357_s6 + $0x98] sm:$0xff] }
 0xd64   :  { %4552 = vadd.xlane.f32.xlu1 %v4551_v53  ;;  %v4557_v39 = vsel %vm2903_vm14, %v4487_v32, 0.0  ;;  %v4602_v26 = vsel %vm2903_vm14, %v4502_v57, 0.0  ;;  %v4623_v1 = vsel %vm2903_vm14, %v4509_v15, 0.0  ;;  %v4484_v51 = vmul.f32 %v9127_v2, %v9182_v0  ;;  %v9304_v16 = vld [vmem:[%s10357_s6 + $0x150] sm:$0xff]  ;;  %v9320_v15 = vld [vmem:[%s10357_s6 + $0x188] sm:$0xff] }
 0xd65   :  { %v4584_v31 = vsel %vm2903_vm14, %v4496_v25, 0.0  ;;  %v4510_v8 = vmul.f32 %v9127_v2, %v9192_v62  ;;  %v4493_v60 = vmul.f32 %v9127_v2, %v9198_v11  ;;  %v4517_v49 = vmul.f32 %v9127_v2, %v9208_v18 }
 0xd66   :  { %v4548_v23 = vsel %vm2903_vm14, %v4484_v51, 0.0  ;;  %v4494_v44 = vmul.f32 %v9127_v2, %v9213_v46  ;;  %v4497_v28 = vmul.f32 %v9127_v2, %v9224_v19  ;;  %v4501_v36 = vmul.f32 %v9127_v2, %v9229_v30 }
 0xd67   :  { %v4626_v7 = vsel %vm2903_vm14, %v4510_v8, 0.0  ;;  %v4575_v14 = vsel %vm2903_vm14, %v4493_v60, 0.0  ;;  %v4647_v58 = vsel %vm2903_vm14, %v4517_v49, 0.0  ;;  %v4511_v3 = vmul.f32 %v9127_v2, %v9240_v4  ;;  %v9336_v8 = vld [vmem:[%s10357_s6 + $0x78] sm:$0xff]  ;;  %v9341_v60 = vld [vmem:[%s10357_s6 + $0xa0] sm:$0xff] }
 0xd68   :  { %4573 = vadd.xlane.f32.xlu1 %v4572_v33  ;;  %v4578_v29 = vsel %vm2903_vm14, %v4494_v44, 0.0  ;;  %v4587_v6 = vsel %vm2903_vm14, %v4497_v28, 0.0  ;;  %v4599_v47 = vsel %vm2903_vm14, %v4501_v36, 0.0  ;;  %v4495_v21 = vmul.f32 %v9127_v2, %v9245_v41  ;;  %v9357_v28 = vld [vmem:[%s10357_s6 + $0x110] sm:$0xff] }
 0xd69   :  { %v4629_v45 = vsel %vm2903_vm14, %v4511_v3, 0.0  ;;  %v4524_v54 = vmul.f32 %v9127_v2, %v9256_v61  ;;  %v4508_v34 = vmul.f32 %v9127_v2, %v9261_v9  ;;  %v4498_v48 = vmul.f32 %v9127_v2, %v9272_v43 }
 0xd6a   :  { %v4581_v38 = vsel %vm2903_vm14, %v4495_v21, 0.0  ;;  %v4488_v56 = vmul.f32 %v9127_v2, %v9277_v50  ;;  %v4512_v33 = vmul.f32 %v9127_v2, %v9288_v59  ;;  %v4533_v51 = vmul.f32 %v9127_v2, %v9320_v15  ;;  %v9373_v21 = vld [vmem:[%s10357_s6 + $0x148] sm:$0xff] }
 0xd6b   :  { %v4668_v40 = vsel %vm2903_vm14, %v4524_v54, 0.0  ;;  %v4620_v42 = vsel %vm2903_vm14, %v4508_v34, 0.0  ;;  %v4590_v53 = vsel %vm2903_vm14, %v4498_v48, 0.0  ;;  %v4499_v49 = vmul.f32 %v9127_v2, %v9336_v8  ;;  %v9389_v48 = vld [vmem:[%s10357_s6 + $0x30] sm:$0xff] }
 0xd6c   :  { %4555 = vadd.xlane.f32.xlu1 %v4554_v55  ;;  %v4560_v35 = vsel %vm2903_vm14, %v4488_v56, 0.0  ;;  %v4503_v55 = vmul.f32 %v9127_v2, %v9293_v27  ;;  %v4632_v32 = vsel %vm2903_vm14, %v4512_v33, 0.0  ;;  %v4504_v44 = vmul.f32 %v9127_v2, %v9341_v60 }
 0xd6d   :  { %v4518_v3 = vmul.f32 %v9127_v2, %v9357_v28  ;;  %v4525_v34 = vmul.f32 %v9127_v2, %v9373_v21  ;;  %v4490_v33 = vmul.f32 %v9127_v2, %v9389_v48 }
 0xd6e   :  { %v4605_v57 = vsel %vm2903_vm14, %v4503_v55, 0.0  ;;  %v9405_v55 = vld [vmem:[%s10357_s6 + $0xa8] sm:$0xff] }
 0xd70   :  { %4597 = vadd.xlane.f32.xlu1 %v4596_v20  ;;  %v9309_v20 = vld [vmem:[%s10357_s6 + $0x100] sm:$0xff] }
 0xd74   :  { %4558 = vadd.xlane.f32.xlu1 %v4557_v39  ;;  %v4526_v39 = vmul.f32 %v9127_v2, %v9304_v16 }
 0xd76   :  { %v4674_v25 = vsel %vm2903_vm14, %v4526_v39, 0.0 }
 0xd78   :  { %4603 = vadd.xlane.f32.xlu1 %v4602_v26  ;;  %v4516_v26 = vmul.f32 %v9127_v2, %v9309_v20 }
 0xd7c   :  { %4624 = vadd.xlane.f32.xlu1 %v4623_v1  ;;  %v9325_v1 = vld [vmem:[%s10357_s6 + $0x28] sm:$0xff] }
 0xd80   :  { %4585 = vadd.xlane.f32.xlu1 %v4584_v31  ;;  %v4644_v31 = vsel %vm2903_vm14, %v4516_v26, 0.0  ;;  %v4505_v26 = vmul.f32 %v9127_v2, %v9405_v55 }
 0xd81   :  { %4549 = vadd.xlane.f32.xlu0 %v4548_v23  ;;  %v4489_v23 = vmul.f32 %v9127_v2, %v9325_v1 }
 0xd84   :  { %4627 = vadd.xlane.f32.xlu1 %v4626_v7  ;;  %v4695_v7 = vsel %vm2903_vm14, %v4533_v51, 0.0  ;;  %v9421_v51 = vld [vmem:[%s10357_s6 + $0x118] sm:$0xff] }
 0xd85   :  { %4576 = vadd.xlane.f32.xlu0 %v4575_v14  ;;  %v4563_v14 = vsel %vm2903_vm14, %v4489_v23, 0.0 }
 0xd88   :  { %4648 = vadd.xlane.f32.xlu1 %v4647_v58  ;;  %v9352_v58 = vld [vmem:[%s10357_s6 + $0xe8] sm:$0xff] }
 0xd89   :  { %4579 = vadd.xlane.f32.xlu0 %v4578_v29  ;;  %v4593_v29 = vsel %vm2903_vm14, %v4499_v49, 0.0  ;;  %v4513_v36 = vmul.f32 %v9127_v2, %v9352_v58  ;;  %v4519_v49 = vmul.f32 %v9127_v2, %v9421_v51 }
 0xd8c   :  { %4588 = vadd.xlane.f32.xlu1 %v4587_v6  ;;  %v4608_v6 = vsel %vm2903_vm14, %v4504_v44, 0.0  ;;  %v9437_v44 = vld [vmem:[%s10357_s6 + $0x180] sm:$0xff] }
 0xd8d   :  { %4600 = vadd.xlane.f32.xlu0 %v4599_v47  ;;  %v9368_v47 = vld [vmem:[%s10357_s6 + $0x158] sm:$0xff] }
 0xd8e   :  { %v4527_v54 = vmul.f32 %v9127_v2, %v9368_v47 }
 0xd90   :  { %4630 = vadd.xlane.f32.xlu1 %v4629_v45  ;;  %v4635_v45 = vsel %vm2903_vm14, %v4513_v36, 0.0 }
 0xd91   :  { %4582 = vadd.xlane.f32.xlu0 %v4581_v38  ;;  %v4650_v38 = vsel %vm2903_vm14, %v4518_v3, 0.0  ;;  %v4532_v3 = vmul.f32 %v9127_v2, %v9437_v44 }
 0xd94   :  { %4669 = vadd.xlane.f32.xlu1 %v4668_v40  ;;  %v9384_v40 = vld [vmem:[%s10357_s6 + $0x1c0] sm:$0xff] }
 0xd95   :  { %4621 = vadd.xlane.f32.xlu0 %v4620_v42  ;;  %v4677_v42 = vsel %vm2903_vm14, %v4527_v54, 0.0  ;;  %v4540_v56 = vmul.f32 %v9127_v2, %v9384_v40  ;;  %v9453_v54 = vld [vmem:[%s10357_s6 + $0x38] sm:$0xff] }
 0xd98   :  { %4591 = vadd.xlane.f32.xlu1 %v4590_v53  ;;  %v4671_v53 = vsel %vm2903_vm14, %v4525_v34, 0.0 }
 0xd99   :  { %4561 = vadd.xlane.f32.xlu0 %v4560_v35  ;;  %v9400_v35 = vld [vmem:[%s10357_s6 + $0xf0] sm:$0xff] }
 0xd9a   :  { %v4514_v39 = vmul.f32 %v9127_v2, %v9400_v35 }
 0xd9c   :  { %4633 = vadd.xlane.f32.xlu1 %v4632_v32  ;;  %v4716_v32 = vsel %vm2903_vm14, %v4540_v56, 0.0  ;;  %v4491_v56 = vmul.f32 %v9127_v2, %v9453_v54 }
 0xd9d   :  { %4606 = vadd.xlane.f32.xlu0 %v4605_v57  ;;  %v4566_v57 = vsel %vm2903_vm14, %v4490_v33, 0.0  ;;  %v9469_v33 = vld [vmem:[%s10357_s6 + $0xb0] sm:$0xff] }
 0xda0   :  { %4675 = vadd.xlane.f32.xlu1 %v4674_v25  ;;  %v9416_v25 = vld [vmem:[%s10357_s6 + $0x160] sm:$0xff] }
 0xda1   :  { %4645 = vadd.xlane.f32.xlu0 %v4644_v31  ;;  %v4638_v31 = vsel %vm2903_vm14, %v4514_v39, 0.0  ;;  %v4528_v23 = vmul.f32 %v9127_v2, %v9416_v25 }
 0xda4   :  { %4696 = vadd.xlane.f32.xlu1 %v4695_v7  ;;  %v4611_v7 = vsel %vm2903_vm14, %v4505_v26, 0.0  ;;  %v4506_v26 = vmul.f32 %v9127_v2, %v9469_v33 }
 0xda5   :  { %4564 = vadd.xlane.f32.xlu0 %v4563_v14  ;;  %v9432_v14 = vld [vmem:[%s10357_s6 + $0x1d0] sm:$0xff] }
 0xda6   :  { %v4542_v36 = vmul.f32 %v9127_v2, %v9432_v14 }
 0xda8   :  { %4594 = vadd.xlane.f32.xlu1 %v4593_v29  ;;  %v4680_v29 = vsel %vm2903_vm14, %v4528_v23, 0.0  ;;  %v9485_v23 = vld [vmem:[%s10357_s6 + $0x120] sm:$0xff] }
 0xda9   :  { %4609 = vadd.xlane.f32.xlu0 %v4608_v6  ;;  %v4653_v6 = vsel %vm2903_vm14, %v4519_v49, 0.0 }
 0xdac   :  { %4636 = vadd.xlane.f32.xlu1 %v4635_v45  ;;  %v9448_v45 = vld [vmem:[%s10357_s6 + $0x130] sm:$0xff] }
 0xdad   :  { %4651 = vadd.xlane.f32.xlu0 %v4650_v38  ;;  %10497 = vst [vmem:[#allocation19_spill] sm:$0xff] %v9448_v45  ;;  %v4722_v38 = vsel %vm2903_vm14, %v4542_v36, 0.0  ;;  %v4522_v34 = vmul.f32 %v9127_v2, %v9448_v45  ;;  %v4520_v36 = vmul.f32 %v9127_v2, %v9485_v23 }
 0xdb0   :  { %4678 = vadd.xlane.f32.xlu1 %v4677_v42  ;;  %v4692_v42 = vsel %vm2903_vm14, %v4532_v3, 0.0  ;;  %v9501_v3 = vld [vmem:[%s10357_s6 + $0x190] sm:$0xff] }
 0xdb1   :  { %4672 = vadd.xlane.f32.xlu0 %v4671_v53  ;;  %v9464_v53 = vld [vmem:[%s10357_s6 + $0x1a0] sm:$0xff] }
 0xdb2   :  { %10498 = vst [vmem:[#allocation20_spill] sm:$0xff] %v9464_v53  ;;  %v4536_v39 = vmul.f32 %v9127_v2, %v9464_v53 }
 0xdb4   :  { %4717 = vadd.xlane.f32.xlu1 %v4716_v32  ;;  %v4662_v32 = vsel %vm2903_vm14, %v4522_v34, 0.0 }
 0xdb5   :  { %4567 = vadd.xlane.f32.xlu0 %v4566_v57  ;;  %v4569_v57 = vsel %vm2903_vm14, %v4491_v56, 0.0  ;;  %v4534_v56 = vmul.f32 %v9127_v2, %v9501_v3 }
 0xdb8   :  { %4639 = vadd.xlane.f32.xlu1 %v4638_v31  ;;  %v9480_v31 = vld [vmem:[%s10357_s6 + $0x170] sm:$0xff] }
 0xdb9   :  { %4612 = vadd.xlane.f32.xlu0 %v4611_v7  ;;  %v4704_v7 = vsel %vm2903_vm14, %v4536_v39, 0.0  ;;  %v4530_v49 = vmul.f32 %v9127_v2, %v9480_v31  ;;  %v9517_v39 = vld [vmem:[%s10357_s6 + $0x1c8] sm:$0xff] }
 0xdbc   :  { %4681 = vadd.xlane.f32.xlu1 %v4680_v29  ;;  %v4614_v29 = vsel %vm2903_vm14, %v4506_v26, 0.0 }
 0xdbd   :  { %4654 = vadd.xlane.f32.xlu0 %v4653_v6  ;;  %v9496_v6 = vld [vmem:[%s10357_s6 + $0x1e0] sm:$0xff] }
 0xdbe   :  { %v4544_v34 = vmul.f32 %v9127_v2, %v9496_v6 }
 0xdc0   :  { %4723 = vadd.xlane.f32.xlu1 %v4722_v38  ;;  %v4686_v38 = vsel %vm2903_vm14, %v4530_v49, 0.0  ;;  %v4728_v26 = vsel %vm2903_vm14, %v4544_v34, 0.0  ;;  %v4698_v49 = vsel %vm2903_vm14, %v4534_v56, 0.0  ;;  %v9536_v34 = vld [vmem:[%s10357_s6 + $0xb8] sm:$0xff] }
 0xdc1   :  { %4693 = vadd.xlane.f32.xlu0 %v4692_v42  ;;  %v4656_v42 = vsel %vm2903_vm14, %v4520_v36, 0.0  ;;  %v9528_v36 = vld [vmem:[%s10357_s6 + $0x1f0] sm:$0xff] }
 0xdc2   :  { %10500 = vst [vmem:[#allocation25_spill] sm:$0xff] %v9528_v36  ;;  %v4546_v56 = vmul.f32 %v9127_v2, %v9528_v36 }
 0xdc4   :  { %4663 = vadd.xlane.f32.xlu1 %v4662_v32  ;;  %v9512_v32 = vld [vmem:[%s10357_s6 + $0x1b0] sm:$0xff] }
 0xdc5   :  { %4570 = vadd.xlane.f32.xlu0 %v4569_v57  ;;  %10499 = vst [vmem:[#allocation21_spill] sm:$0xff] %v9512_v32  ;;  %v4464_v57 = vpop.trf.xlu0 }
 0xdc8   :  { %4705 = vadd.xlane.f32.xlu1 %v4704_v7  ;;  %v4538_v7 = vmul.f32 %v9127_v2, %v9512_v32  ;;  %v4507_v32 = vmul.f32 %v9127_v2, %v9536_v34 }
 0xdc9   :  { %4615 = vadd.xlane.f32.xlu0 %v4614_v29  ;;  %v4541_v29 = vmul.f32 %v9127_v2, %v9517_v39 }
 0xdcc   :  { %4687 = vadd.xlane.f32.xlu1 %v4686_v38  ;;  %v9531_v38 = vrot.slane %v4464_v57, %v10496_v37  ;;  %v4617_v37 = vsel %vm2903_vm14, %v4507_v32, 0.0 }
 0xdcd   :  { %4657 = vadd.xlane.f32.xlu0 %v4656_v42  ;;  %v4710_v42 = vsel %vm2903_vm14, %v4538_v7, 0.0  ;;  %v4734_v7 = vsel %vm2903_vm14, %v4546_v56, 0.0 }
 0xdce   :  { %v4745_v57 = vmul.f32 %v9531_v38, %v9119_v22  ;;  %v9561_v22 = vld [vmem:[%s10357_s6 + $0x198] sm:$0xff]  ;;  %v4777_v45 = vmul.f32 %v9531_v38, %v9208_v18 }
 0xdcf   :  { %10502 = vst [vmem:[#allocation27_spill] sm:$0xff] %v9561_v22  ;;  %v4535_v32 = vmul.f32 %v9127_v2, %v9561_v22 }
 0xdd0   :  { %4729 = vadd.xlane.f32.xlu1 %v4728_v26  ;;  %v4719_v26 = vsel %vm2903_vm14, %v4541_v29, 0.0  ;;  %v4907_v22 = vsel %vm2903_vm14, %v4777_v45, 0.0 }
 0xdd1   :  { %4699 = vadd.xlane.f32.xlu0 %v4698_v49  ;;  %v9549_v49 = vld [vmem:[%s10357_s6 + $0x128] sm:$0xff] }
 0xdd2   :  { %10501 = vst [vmem:[#allocation26_spill] sm:$0xff] %v9549_v49  ;;  %v4521_v29 = vmul.f32 %v9127_v2, %v9549_v49 }
 0xdd4   :  { %4711 = vadd.xlane.f32.xlu1 %v4710_v42  ;;  %v4811_v42 = vsel %vm2903_vm14, %v4745_v57, 0.0  ;;  %v4659_v56 = vsel %vm2903_vm14, %v4521_v29, 0.0  ;;  %v4701_v57 = vsel %vm2903_vm14, %v4535_v32, 0.0 }
 0xdd5   :  { %4720 = vadd.xlane.f32.xlu0 %v4719_v26  ;;  %v4753_v26 = vmul.f32 %v9531_v38, %v9198_v11  ;;  %v9572_v11 = vld [vmem:[%s10357_s6 + $0xf8] sm:$0xff] }
 0xdd6   :  { %v4515_v29 = vmul.f32 %v9127_v2, %v9572_v11 }
 0xdd8   :  { %4735 = vadd.xlane.f32.xlu1 %v4734_v7  ;;  %v4835_v7 = vsel %vm2903_vm14, %v4753_v26, 0.0  ;;  %v4761_v26 = vmul.f32 %v9531_v38, %v9229_v30  ;;  %v9594_v30 = vld [vmem:[%s10357_s6 + $0x1d8] sm:$0xff] }
 0xdd9   :  { %4618 = vadd.xlane.f32.xlu0 %v4617_v37  ;;  %v4754_v37 = vmul.f32 %v9531_v38, %v9213_v46  ;;  %v9583_v46 = vld [vmem:[%s10357_s6 + $0x168] sm:$0xff] }
 0xdda   :  { %v4529_v32 = vmul.f32 %v9127_v2, %v9583_v46 }
 0xddc   :  { %4812 = vadd.xlane.f32.xlu1 %v4811_v42  ;;  %v4838_v42 = vsel %vm2903_vm14, %v4754_v37, 0.0  ;;  %v4747_v37 = vmul.f32 %v9531_v38, %v9153_v13  ;;  %v9605_v13 = vld [vmem:[%s10357_s6 + $0x138] sm:$0xff] }
 0xddd   :  { %4660 = vadd.xlane.f32.xlu0 %v4659_v56  ;;  %v4641_v56 = vsel %vm2903_vm14, %v4515_v29, 0.0  ;;  %v4543_v29 = vmul.f32 %v9127_v2, %v9594_v30  ;;  %10503 = vst [vmem:[#allocation28_spill] sm:$0xff] %v9605_v13 }
 0xde0   :  { %4836 = vadd.xlane.f32.xlu1 %v4835_v7  ;;  %v4859_v7 = vsel %vm2903_vm14, %v4761_v26, 0.0  ;;  %v4762_v26 = vmul.f32 %v9531_v38, %v9161_v17  ;;  %v9618_v17 = vld [vmem:[%s10357_s6 + $0x1a8] sm:$0xff] }
 0xde1   :  { %4702 = vadd.xlane.f32.xlu0 %v4701_v57  ;;  %v4683_v57 = vsel %vm2903_vm14, %v4529_v32, 0.0  ;;  %v4523_v32 = vmul.f32 %v9127_v2, %v9605_v13  ;;  %10504 = vst [vmem:[#allocation29_spill] sm:$0xff] %v9618_v17 }
 0xde4   :  { %4839 = vadd.xlane.f32.xlu1 %v4838_v42  ;;  %v4817_v42 = vsel %vm2903_vm14, %v4747_v37, 0.0  ;;  %v4769_v37 = vmul.f32 %v9531_v38, %v9169_v24  ;;  %v9631_v24 = vld [vmem:[%s10357_s6 + $0x178] sm:$0xff] }
 0xde5   :  { %4642 = vadd.xlane.f32.xlu0 %v4641_v56  ;;  %v4725_v56 = vsel %vm2903_vm14, %v4543_v29, 0.0  ;;  %v4537_v29 = vmul.f32 %v9127_v2, %v9618_v17 }
 0xde8   :  { %4860 = vadd.xlane.f32.xlu1 %v4859_v7 }
 0xde9   :  { %4684 = vadd.xlane.f32.xlu0 %v4683_v57  ;;  %v4862_v57 = vsel %vm2903_vm14, %v4762_v26, 0.0  ;;  %v4756_v26 = vmul.f32 %v9531_v38, %v9177_v12  ;;  %v4770_v12 = vmul.f32 %v9531_v38, %v9192_v62 }
 0xdec   :  { %4818 = vadd.xlane.f32.xlu1 %v4817_v42  ;;  %v4665_v42 = vsel %vm2903_vm14, %v4523_v32, 0.0  ;;  %v4531_v32 = vmul.f32 %v9127_v2, %v9631_v24 }
 0xded   :  { %v9610_v7 = vpop.xlane.xlu1 %4552  ;;  %4726 = vadd.xlane.f32.xlu0 %v4725_v56  ;;  %v4883_v56 = vsel %vm2903_vm14, %v4769_v37, 0.0  ;;  %v9640_v37 = vld [vmem:[%s10357_s6 + $0x1e8] sm:$0xff] }
 0xdf0   :  { %4863 = vadd.xlane.f32.xlu1 %v4862_v57  ;;  %v4707_v57 = vsel %vm2903_vm14, %v4537_v29, 0.0  ;;  %v4545_v29 = vmul.f32 %v9127_v2, %v9640_v37 }
 0xdf1   :  { %v9623_v13 = vpop.xlane.xlu1 %4573  ;;  %4666 = vadd.xlane.f32.xlu0 %v4665_v42  ;;  %v4844_v42 = vsel %vm2903_vm14, %v4756_v26, 0.0  ;;  %v9652_v26 = vld [vmem:[%s10357_s6 + $0x1b8] sm:$0xff] }
 0xdf2   :  { %10505 = vst [vmem:[#allocation30_spill] sm:$0xff] %v9652_v26  ;;  %v4731_v62 = vsel %vm2903_vm14, %v4545_v29, 0.0 }
 0xdf4   :  { %4884 = vadd.xlane.f32.xlu1 %v4883_v56  ;;  %v4689_v56 = vsel %vm2903_vm14, %v4531_v32, 0.0  ;;  %v4539_v32 = vmul.f32 %v9127_v2, %v9652_v26  ;;  %v4764_v26 = vmul.f32 %v9531_v38, %v9341_v60  ;;  %v4752_v60 = vmul.f32 %v9531_v38, %v9124_v5 }
 0xdf5   :  { %v4556_v17 = vpop.xlane.xlu1 %4555  ;;  %4708 = vadd.xlane.f32.xlu0 %v4707_v57  ;;  %v4886_v57 = vsel %vm2903_vm14, %v4770_v12, 0.0  ;;  %v4749_v12 = vmul.f32 %v9531_v38, %v9325_v1  ;;  %v4744_v1 = vmul.f32 %v9531_v38, %v9182_v0  ;;  %v4746_v5 = vmul.f32 %v9531_v38, %v9136_v10 }
 0xdf6   :  { %v4713_v18 = vsel %vm2903_vm14, %v4539_v32, 0.0  ;;  %v4868_v32 = vsel %vm2903_vm14, %v4764_v26, 0.0  ;;  %v4758_v10 = vmul.f32 %v9531_v38, %v9272_v43  ;;  %v4772_v43 = vmul.f32 %v9531_v38, %v9288_v59 }
 0xdf8   :  { %4845 = vadd.xlane.f32.xlu1 %v4844_v42 }
 0xdf9   :  { %v9647_v53 = vpop.xlane.xlu1 %4597  ;;  %4690 = vadd.xlane.f32.xlu0 %v4689_v56  ;;  %v9663_v56 = vld [vmem:[%s10357_s6 + $0x1f8] sm:$0xff] }
 0xdfa   :  { %10506 = vst [vmem:[#allocation31_spill] sm:$0xff] %v9663_v56  ;;  %v4547_v29 = vmul.f32 %v9127_v2, %v9663_v56  ;;  %v4778_v2 = vmul.f32 %v9531_v38, %v9357_v28 }
 0xdfc   :  { %4887 = vadd.xlane.f32.xlu1 %v4886_v57  ;;  %v4737_v45 = vsel %vm2903_vm14, %v4547_v29, 0.0  ;;  %v4910_v28 = vsel %vm2903_vm14, %v4778_v2, 0.0 }
 0xdfd   :  { %v4559_v42 = vpop.xlane.xlu1 %4558  ;;  %4732 = vadd.xlane.f32.xlu0 %v4731_v62  ;;  %v4823_v62 = vsel %vm2903_vm14, %v4749_v12, 0.0  ;;  %v4808_v12 = vsel %vm2903_vm14, %v4744_v1, 0.0  ;;  %v4832_v1 = vsel %vm2903_vm14, %v4752_v60, 0.0 }
 0xe00   :  { %4908 = vadd.xlane.f32.xlu1 %v4907_v22 }
 0xe01   :  { %v9671_v57 = vpop.xlane.xlu1 %4603  ;;  %4714 = vadd.xlane.f32.xlu0 %v4713_v18  ;;  %v10507_v18 = vld [vmem:[#allocation22_spill] sm:$0xff] }
 0xe02   :  { %v5081_v29 = vrot.slane %v9610_v7, %v10507_v18  ;;  %v10509_v7 = vld [vmem:[#allocation24_spill] sm:$0xff] }
 0xe03   :  { %v5091_v36 = vrot.slane %v4559_v42, %v10509_v7 }
 0xe04   :  { %4824 = vadd.xlane.f32.xlu1 %v4823_v62 }
 0xe05   :  { %v9679_v22 = vpop.xlane.xlu1 %4624  ;;  %4738 = vadd.xlane.f32.xlu0 %v4737_v45  ;;  %v4785_v45 = vmul.f32 %v9531_v38, %v9373_v21 }
 0xe07   :  { %v4931_v2 = vsel %vm2903_vm14, %v4785_v45, 0.0 }
 0xe08   :  { %4869 = vadd.xlane.f32.xlu1 %v4868_v32  ;;  %v10508_v32 = vld [vmem:[#allocation23_spill] sm:$0xff] }
 0xe09   :  { %v9689_v62 = vpop.xlane.xlu1 %4585  ;;  %4809 = vadd.xlane.f32.xlu0 %v4808_v12  ;;  %v5086_v56 = vrot.slane %v4556_v17, %v10508_v32  ;;  %v5124_v17 = vrot.slane %v9623_v13, %v6939_v63 }
 0xe0a   :  { %v4550_v0 = vpop.xlane.xlu0 %4549 }
 0xe0b   :  { %v5077_v26 = vrot.slane %v4550_v0, %v6939_v63 }
 0xe0c   :  { %4911 = vadd.xlane.f32.xlu1 %v4910_v28 }
 0xe0d   :  { %v5082_v12 = vsel %vm1239_vm10, %v5081_v29, %v5077_v26  ;;  %v9701_v49 = vpop.xlane.xlu1 %4627  ;;  %4833 = vadd.xlane.f32.xlu0 %v4832_v1  ;;  %v4814_v29 = vsel %vm2903_vm14, %v4746_v5, 0.0  ;;  %v4850_v1 = vsel %vm2903_vm14, %v4758_v10, 0.0  ;;  %v4892_v10 = vsel %vm2903_vm14, %v4772_v43, 0.0 }
 0xe0e   :  { %v5087_v21 = vsel %vm10510_vm13, %v5086_v56, %v5082_v12  ;;  %v4577_v0 = vpop.xlane.xlu0 %4576  ;;  %v4760_v56 = vmul.f32 %v9531_v38, %v9145_v52  ;;  %v4755_v52 = vmul.f32 %v9531_v38, %v9245_v41  ;;  %v5172_v41 = vrot.slane %v9671_v57, %v10508_v32 }
 0xe0f   :  { %v5128_v60 = vrot.slane %v4577_v0, %v10507_v18  ;;  %v9711_v42 = vsel %vm10511_vm15, %v5091_v36, %v5087_v21  ;;  %v10512_v36 = vld [vmem:[#allocation16_spill] sm:$0xff]  ;;  %v4793_v57 = vmul.f32 %v9531_v38, %v9320_v15  ;;  %vm5105_vm13 = vcmask 392512  }
 0xe10   :  { %4932 = vadd.xlane.f32.xlu1 %v4931_v2  ;;  %v5093_v12 = vadd.s32 4294967264, %v10512_v36  ;;  %v4856_v5 = vsel %vm2903_vm14, %v4760_v56, 0.0  ;;  %v5100_v0 = vadd.s32 4294967256, %v10512_v36  ;;  %v10514_v56 = vld [vmem:[#allocation17_spill] sm:$0xff] }
 0xe11   :  { %v5129_v26 = vsel %vm1239_vm10, %v5128_v60, %v5124_v17  ;;  %v9717_v45 = vpop.xlane.xlu1 %4648  ;;  %4815 = vadd.xlane.f32.xlu0 %v4814_v29  ;;  %v5163_v60 = vrot.slane %v9647_v53, %v6939_v63  ;;  %v4786_v29 = vmul.f32 %v9531_v38, %v9304_v16 }
 0xe12   :  { %v4580_v13 = vpop.xlane.xlu0 %4579  ;;  %v9744_v53 = vsub.s32 %v5100_v0, %v10514_v56 }
 0xe13   :  { %v5133_v28 = vrot.slane %v4580_v13, %v10508_v32  ;;  %v4841_v13 = vsel %vm2903_vm14, %v4755_v52, 0.0 }
 0xe14   :  { %4851 = vadd.xlane.f32.xlu1 %v4850_v1 }
 0xe15   :  { %v5134_v21 = vsel %vm10513_vm11, %v5133_v28, %v5129_v26  ;;  %v4589_v2 = vpop.xlane.xlu1 %4588  ;;  %4857 = vadd.xlane.f32.xlu0 %v4856_v5  ;;  %v9738_v26 = vsub.s32 %v5093_v12, %v10514_v56  ;;  %v4768_v28 = vmul.f32 %v9531_v38, %v9261_v9  ;;  %v5107_v12 = vadd.s32 4294967248, %v10512_v36 }
 0xe16   :  { %v4601_v17 = vpop.xlane.xlu0 %4600  ;;  %v4934_v9 = vsel %vm2903_vm14, %v4786_v29, 0.0  ;;  %v5148_v15 = vrot.slane %v4589_v2, %v9744_v53  ;;  %vm5112_vm11 = vcmask 458112  }
 0xe17   :  { %v5167_v59 = vrot.slane %v4601_v17, %v10507_v18  ;;  %v5143_v0 = vrot.slane %v9689_v62, %v9738_v26  ;;  %v4880_v17 = vsel %vm2903_vm14, %v4768_v28, 0.0  ;;  %v9765_v62 = vsub.s32 %v5107_v12, %v10514_v56 }
 0xe18   :  { %4893 = vadd.xlane.f32.xlu1 %v4892_v10  ;;  %v5206_v28 = vrot.slane %v9679_v22, %v10507_v18 }
 0xe19   :  { %v5168_v1 = vsel %vm1239_vm10, %v5167_v59, %v5163_v60  ;;  %v4631_v43 = vpop.xlane.xlu1 %4630  ;;  %4842 = vadd.xlane.f32.xlu0 %v4841_v13  ;;  %v4748_v60 = vmul.f32 %v9531_v38, %v9277_v50  ;;  %v4955_v13 = vsel %vm2903_vm14, %v4793_v57, 0.0  ;;  %v4763_v57 = vmul.f32 %v9531_v38, %v9293_v27 }
 0xe1a   :  { %v4583_v16 = vpop.xlane.xlu0 %4582  ;;  %v5173_v5 = vsel %vm10515_vm12, %v5172_v41, %v5168_v1  ;;  %v5211_v1 = vrot.slane %v9701_v49, %v10508_v32  ;;  %v5216_v12 = vrot.slane %v4631_v43, %v10509_v7  ;;  %v4766_v27 = vmul.f32 %v9531_v38, %v9469_v33 }
 0xe1b   :  { %v5138_v52 = vrot.slane %v4583_v16, %v10509_v7  ;;  %v4820_v16 = vsel %vm2903_vm14, %v4748_v60, 0.0 }
 0xe1c   :  { %4935 = vadd.xlane.f32.xlu1 %v4934_v9  ;;  %v4874_v33 = vsel %vm2903_vm14, %v4766_v27, 0.0 }
 0xe1d   :  { %v5139_v59 = vsel %vm10511_vm15, %v5138_v52, %v5134_v21  ;;  %v9760_v10 = vpop.xlane.xlu1 %4669  ;;  %4881 = vadd.xlane.f32.xlu0 %v4880_v17  ;;  %v4751_v21 = vmul.f32 %v9531_v38, %v9453_v54 }
 0xe1e   :  { %v5144_v41 = vsel %vm5098_vm0, %v5143_v0, %v5139_v59  ;;  %v4622_v29 = vpop.xlane.xlu0 %4621  ;;  %v4776_v59 = vmul.f32 %v9531_v38, %v9309_v20 }
 0xe1f   :  { %v5202_v50 = vrot.slane %v4622_v29, %v6939_v63  ;;  %v5149_v2 = vsel %vm5105_vm13, %v5148_v15, %v5144_v41  ;;  %v4829_v17 = vsel %vm2903_vm14, %v4751_v21, 0.0  ;;  %v4865_v15 = vsel %vm2903_vm14, %v4763_v57, 0.0 }
 0xe20   :  { %4956 = vadd.xlane.f32.xlu1 %v4955_v13  ;;  %v4904_v20 = vsel %vm2903_vm14, %v4776_v59, 0.0 }
 0xe21   :  { %v5207_v22 = vsel %vm1239_vm10, %v5206_v28, %v5202_v50  ;;  %v4592_v52 = vpop.xlane.xlu1 %4591  ;;  %4821 = vadd.xlane.f32.xlu0 %v4820_v16 }
 0xe22   :  { %v5212_v9 = vsel %vm10515_vm12, %v5211_v1, %v5207_v22  ;;  %v5153_v54 = vrot.slane %v4592_v52, %v9765_v62  ;;  %v4562_v0 = vpop.xlane.xlu0 %4561  ;;  %vm10516_vm12 = vmmov %vm10511_vm15  ;;  %v4794_v52 = vmul.f32 %v9531_v38, %v9501_v3 }
 0xe23   :  { %v5097_v49 = vrot.slane %v4562_v0, %v9738_v26  ;;  %v5217_v60 = vsel %vm10511_vm15, %v5216_v12, %v5212_v9  ;;  %v5245_v12 = vrot.slane %v9717_v45, %v10507_v18  ;;  %vm10517_vm15 = vcmask 195712  }
 0xe24   :  { %v9788_v43 = vsel %vm5112_vm11, %v5153_v54, %v5149_v2  ;;  %4830 = vadd.xlane.f32.xlu1 %v4829_v17  ;;  %v4780_v2 = vmul.f32 %v9531_v38, %v9485_v23  ;;  %v4801_v17 = vmul.f32 %v9531_v38, %v9517_v39 }
 0xe25   :  { %v5099_v41 = vsel %vm5098_vm0, %v5097_v49, %v9711_v42  ;;  %v4634_v29 = vpop.xlane.xlu1 %4633  ;;  %4866 = vadd.xlane.f32.xlu0 %v4865_v15  ;;  %v4757_v42 = vmul.f32 %v9531_v38, %v9224_v19  ;;  %v4771_v19 = vmul.f32 %v9531_v38, %v9240_v4  ;;  %v4958_v49 = vsel %vm2903_vm14, %v4794_v52, 0.0 }
 0xe26   :  { %v5221_v13 = vrot.slane %v4634_v29, %v9738_v26  ;;  %v4607_v28 = vpop.xlane.xlu0 %4606  ;;  %v4916_v22 = vsel %vm2903_vm14, %v4780_v2, 0.0  ;;  %v4979_v29 = vsel %vm2903_vm14, %v4801_v17, 0.0 }
 0xe27   :  { %v5177_v50 = vrot.slane %v4607_v28, %v10509_v7  ;;  %v4847_v9 = vsel %vm2903_vm14, %v4757_v42, 0.0  ;;  %v4889_v3 = vsel %vm2903_vm14, %v4771_v19, 0.0  ;;  %v4750_v28 = vmul.f32 %v9531_v38, %v9389_v48 }
 0xe28   :  { %v9801_v21 = vsel %vm5098_vm0, %v5221_v13, %v5217_v60  ;;  %4875 = vadd.xlane.f32.xlu1 %v4874_v33  ;;  %v4784_v60 = vmul.f32 %v9531_v38, %v9256_v61  ;;  %v4774_v13 = vmul.f32 %v9531_v38, %v9400_v35  ;;  %v4765_v42 = vmul.f32 %v9531_v38, %v9405_v55 }
 0xe29   :  { %v5178_v1 = vsel %vm10516_vm12, %v5177_v50, %v5173_v5  ;;  %v9807_v16 = vpop.xlane.xlu1 %4675  ;;  %4905 = vadd.xlane.f32.xlu0 %v4904_v20  ;;  %v4788_v20 = vmul.f32 %v9531_v38, %v9416_v25  ;;  %v4826_v35 = vsel %vm2903_vm14, %v4750_v28, 0.0  ;;  %v4802_v25 = vmul.f32 %v9531_v38, %v9432_v14  ;;  %vm10518_vm12 = vmmov %vm10517_vm15 }
 0xe2a   :  { %v4646_v57 = vpop.xlane.xlu0 %4645  ;;  %v4928_v39 = vsel %vm2903_vm14, %v4784_v60, 0.0  ;;  %v4898_v2 = vsel %vm2903_vm14, %v4774_v13, 0.0  ;;  %v4871_v52 = vsel %vm2903_vm14, %v4765_v42, 0.0  ;;  %v4779_v55 = vmul.f32 %v9531_v38, %v9421_v51 }
 0xe2b   :  { %v5241_v23 = vrot.slane %v4646_v57, %v6939_v63  ;;  %v4775_v14 = vmul.f32 %v9531_v38, %v9572_v11  ;;  %v4792_v51 = vmul.f32 %v9531_v38, %v9437_v44  ;;  %v5289_v60 = vrot.slane %v9807_v16, %v10508_v32 }
 0xe2c   :  { %4917 = vadd.xlane.f32.xlu1 %v4916_v22  ;;  %v4940_v22 = vsel %vm2903_vm14, %v4788_v20, 0.0  ;;  %v4789_v44 = vmul.f32 %v9531_v38, %v9583_v46  ;;  %v4759_v28 = vmul.f32 %v9531_v38, %v9336_v8  ;;  %v4803_v8 = vmul.f32 %v9531_v38, %v9594_v30 }
 0xe2d   :  { %v5246_v5 = vsel %vm1239_vm10, %v5245_v12, %v5241_v23  ;;  %v9819_v54 = vpop.xlane.xlu1 %4696  ;;  %4848 = vadd.xlane.f32.xlu0 %v4847_v9  ;;  %v5280_v12 = vrot.slane %v9760_v10, %v6939_v63  ;;  %v4901_v13 = vsel %vm2903_vm14, %v4775_v14, 0.0  ;;  %v4952_v16 = vsel %vm2903_vm14, %v4792_v51, 0.0 }
 0xe2e   :  { %v4565_v0 = vpop.xlane.xlu0 %4564  ;;  %v4773_v42 = vmul.f32 %v9531_v38, %v9352_v58  ;;  %v4790_v30 = vmul.f32 %v9531_v38, %v9480_v31  ;;  %v4804_v31 = vmul.f32 %v9531_v38, %v9496_v6  ;;  %v4791_v6 = vmul.f32 %v9531_v38, %v9631_v24 }
 0xe2f   :  { %v5104_v45 = vrot.slane %v4565_v0, %v9744_v53 }
 0xe30   :  { %4959 = vadd.xlane.f32.xlu1 %v4958_v49  ;;  %v4913_v49 = vsel %vm2903_vm14, %v4779_v55, 0.0 }
 0xe31   :  { %v5106_v4 = vsel %vm5105_vm13, %v5104_v45, %v5099_v41  ;;  %v9829_v27 = vpop.xlane.xlu1 %4594  ;;  %4890 = vadd.xlane.f32.xlu0 %v4889_v3  ;;  %v4982_v45 = vsel %vm2903_vm14, %v4802_v25, 0.0  ;;  %v4787_v25 = vmul.f32 %v9531_v38, %v9368_v47  ;;  %v4800_v47 = vmul.f32 %v9531_v38, %v9384_v40 }
 0xe32   :  { %v4610_v15 = vpop.xlane.xlu0 %4609  ;;  %v4767_v40 = vmul.f32 %v9531_v38, %v9536_v34 }
 0xe33   :  { %v5182_v59 = vrot.slane %v4610_v15, %v9738_v26  ;;  %v4976_v51 = vsel %vm2903_vm14, %v4800_v47, 0.0 }
 0xe34   :  { %4980 = vadd.xlane.f32.xlu1 %v4979_v29 }
 0xe35   :  { %v5183_v61 = vsel %vm5098_vm0, %v5182_v59, %v5178_v1  ;;  %v4637_v41 = vpop.xlane.xlu1 %4636  ;;  %4929 = vadd.xlane.f32.xlu0 %v4928_v39 }
 0xe36   :  { %v4652_v50 = vpop.xlane.xlu0 %4651  ;;  %v5226_v10 = vrot.slane %v4637_v41, %v9744_v53 }
 0xe37   :  { %v5250_v33 = vrot.slane %v4652_v50, %v10508_v32 }
 0xe38   :  { %4899 = vadd.xlane.f32.xlu1 %v4898_v2  ;;  %v5227_v29 = vsel %vm5105_vm13, %v5226_v10, %v9801_v21  ;;  %v5114_v21 = vadd.s32 4294967240, %v10512_v36 }
 0xe39   :  { %v9847_v48 = vsel %vm10517_vm15, %v5250_v33, %v5246_v5  ;;  %v4679_v1 = vpop.xlane.xlu1 %4678  ;;  %4827 = vadd.xlane.f32.xlu0 %v4826_v35  ;;  %vm10519_vm15 = vcmask 261312   ;;  %v4943_v35 = vsel %vm2903_vm14, %v4789_v44, 0.0 }
 0xe3a   :  { %v4673_v57 = vpop.xlane.xlu0 %4672  ;;  %v5294_v41 = vrot.slane %v4679_v1, %v10509_v7  ;;  %v9905_v1 = vsub.s32 %v5114_v21, %v10514_v56 }
 0xe3b   :  { %v5284_v23 = vrot.slane %v4673_v57, %v10507_v18 }
 0xe3c   :  { %4941 = vadd.xlane.f32.xlu1 %v4940_v22  ;;  %v4895_v22 = vsel %vm2903_vm14, %v4773_v42, 0.0  ;;  %v5158_v58 = vrot.slane %v9829_v27, %v9905_v1 }
 0xe3d   :  { %v5285_v9 = vsel %vm1239_vm10, %v5284_v23, %v5280_v12  ;;  %v9859_v19 = vpop.xlane.xlu1 %4717  ;;  %4872 = vadd.xlane.f32.xlu0 %v4871_v52  ;;  %v4985_v23 = vsel %vm2903_vm14, %v4803_v8, 0.0 }
 0xe3e   :  { %v4568_v5 = vpop.xlane.xlu0 %4567 }
 0xe3f   :  { %v5111_v0 = vrot.slane %v4568_v5, %v9765_v62  ;;  %v4937_v5 = vsel %vm2903_vm14, %v4787_v25, 0.0 }
 0xe40   :  { %4983 = vadd.xlane.f32.xlu1 %v4982_v45 }
 0xe41   :  { %v5113_v17 = vsel %vm5112_vm11, %v5111_v0, %v5106_v4  ;;  %v4640_v3 = vpop.xlane.xlu1 %4639  ;;  %4914 = vadd.xlane.f32.xlu0 %v4913_v49  ;;  %v5290_v4 = vsel %vm10518_vm12, %v5289_v60, %v5285_v9  ;;  %vm5119_vm12 = vcmask 523712   ;;  %v4946_v9 = vsel %vm2903_vm14, %v4790_v30, 0.0 }
 0xe42   :  { %v5231_v15 = vrot.slane %v4640_v3, %v9765_v62  ;;  %v4613_v59 = vpop.xlane.xlu0 %4612  ;;  %v5295_v20 = vsel %vm10519_vm15, %v5294_v41, %v5290_v4  ;;  %v5159_v27 = vsel %vm5119_vm12, %v5158_v58, %v9788_v43  ;;  %v4988_v49 = vsel %vm2903_vm14, %v4804_v31, 0.0 }
 0xe43   :  { %v5187_v11 = vrot.slane %v4613_v59, %v9744_v53  ;;  %v4949_v3 = vsel %vm2903_vm14, %v4791_v6, 0.0  ;;  %v4805_v60 = vmul.f32 %v9531_v38, %v9640_v37  ;;  %v10520_v59 = vld [vmem:[#allocation26_spill] sm:$0xff]  ;;  %v5358_v41 = vrot.slane %v9859_v19, %v6939_v63 }
 0xe44   :  { %v9881_v39 = vsel %vm5112_vm11, %v5231_v15, %v5227_v29  ;;  %4902 = vadd.xlane.f32.xlu1 %v4901_v13  ;;  %v4877_v15 = vsel %vm2903_vm14, %v4767_v40, 0.0  ;;  %v4781_v24 = vmul.f32 %v9531_v38, %v10520_v59  ;;  %v10521_v13 = vld [vmem:[#allocation25_spill] sm:$0xff]  ;;  %vm10524_vm15 = vcmask 195712  }
 0xe45   :  { %v9889_v50 = vsel %vm5105_vm13, %v5187_v11, %v5183_v61  ;;  %v4682_v33 = vpop.xlane.xlu1 %4681  ;;  %4953 = vadd.xlane.f32.xlu0 %v4952_v16  ;;  %v4853_v61 = vsel %vm2903_vm14, %v4759_v28, 0.0  ;;  %v4991_v34 = vsel %vm2903_vm14, %v4805_v60, 0.0  ;;  %v4806_v44 = vmul.f32 %v9531_v38, %v10521_v13  ;;  %v10522_v16 = vld [vmem:[#allocation27_spill] sm:$0xff] }
 0xe46   :  { %v5299_v46 = vrot.slane %v4682_v33, %v9738_v26  ;;  %v9892_v2 = vpop.xlane.xlu0 %4654  ;;  %v4919_v4 = vsel %vm2903_vm14, %v4781_v24, 0.0  ;;  %v4795_v37 = vmul.f32 %v9531_v38, %v10522_v16 }
 0xe47   :  { %v5255_v25 = vrot.slane %v9892_v2, %v10509_v7 }
 0xe48   :  { %v9899_v36 = vsel %vm5098_vm0, %v5299_v46, %v5295_v20  ;;  %4944 = vadd.xlane.f32.xlu1 %v4943_v35  ;;  %v4994_v46 = vsel %vm2903_vm14, %v4806_v44, 0.0  ;;  %v4961_v8 = vsel %vm2903_vm14, %v4795_v37, 0.0 }
 0xe49   :  { %v9907_v57 = vpop.xlane.xlu1 %4723  ;;  %4854 = vadd.xlane.f32.xlu0 %v4853_v61  ;;  %v10523_v61 = vld [vmem:[#allocation19_spill] sm:$0xff] }
 0xe4a   :  { %v9909_v12 = vpop.xlane.xlu0 %4693  ;;  %v5367_v20 = vrot.slane %v9907_v57, %v10508_v32  ;;  %v4782_v42 = vmul.f32 %v9531_v38, %v10523_v61 }
 0xe4c   :  { %4986 = vadd.xlane.f32.xlu1 %v4985_v23 }
 0xe4d   :  { %v9919_v56 = vpop.xlane.xlu1 %4663  ;;  %4896 = vadd.xlane.f32.xlu0 %v4895_v22 }
 0xe4e   :  { %v4571_v52 = vpop.xlane.xlu0 %4570 }
 0xe4f   :  { %v5118_v55 = vrot.slane %v4571_v52, %v9905_v1 }
 0xe50   :  { %4947 = vadd.xlane.f32.xlu1 %v4946_v9  ;;  %v10525_v9 = vld [vmem:[#allocation20_spill] sm:$0xff] }
 0xe51   :  { %v5120_v10 = vsel %vm5119_vm12, %v5118_v55, %v5113_v17  ;;  %v9931_v0 = vpop.xlane.xlu1 %4705  ;;  %4938 = vadd.xlane.f32.xlu0 %v4937_v5  ;;  %v4922_v55 = vsel %vm2903_vm14, %v4782_v42, 0.0  ;;  %v4796_v31 = vmul.f32 %v9531_v38, %v10525_v9 }
 0xe52   :  { %v5394_v45 = vsel %vm454_vm1, %v5159_v27, %v5120_v10  ;;  %v4616_v14 = vpop.xlane.xlu0 %4615  ;;  %v5338_v24 = vrot.slane %v9931_v0, %v9738_v26  ;;  %v10531_v0 = vld [vmem:[#allocation21_spill] sm:$0xff] }
 0xe53   :  { %v5192_v35 = vrot.slane %v4616_v14, %v9765_v62 }
 0xe54   :  { %4989 = vadd.xlane.f32.xlu1 %v4988_v49  ;;  %v10527_v49 = vld [vmem:[#allocation28_spill] sm:$0xff] }
 0xe55   :  { %v9940_v43 = vpop.xlane.xlu1 %4687  ;;  %4977 = vadd.xlane.f32.xlu0 %v4976_v51  ;;  %v5193_v58 = vsel %vm5112_vm11, %v5192_v35, %v9889_v50  ;;  %v5319_v50 = vrot.slane %v9909_v12, %v6939_v63  ;;  %v4783_v6 = vmul.f32 %v9531_v38, %v10527_v49  ;;  %v5270_v51 = vrot.slane %v9919_v56, %v9765_v62 }
 0xe56   :  { %v4658_v17 = vpop.xlane.xlu0 %4657  ;;  %v5309_v42 = vrot.slane %v9940_v43, %v9765_v62 }
 0xe57   :  { %v5260_v52 = vrot.slane %v4658_v17, %v9738_v26 }
 0xe58   :  { %4950 = vadd.xlane.f32.xlu1 %v4949_v3 }
 0xe59   :  { %v9948_v29 = vpop.xlane.xlu1 %4729  ;;  %4878 = vadd.xlane.f32.xlu0 %v4877_v15 }
 0xe5a   :  { %v4700_v11 = vpop.xlane.xlu0 %4699  ;;  %v5377_v9 = vrot.slane %v9948_v29, %v9738_v26 }
 0xe5b   :  { %v5328_v17 = vrot.slane %v4700_v11, %v10508_v32 }
 0xe5c   :  { %4992 = vadd.xlane.f32.xlu1 %v4991_v34  ;;  %v4925_v34 = vsel %vm2903_vm14, %v4783_v6, 0.0 }
 0xe5d   :  { %v9956_v28 = vpop.xlane.xlu1 %4711  ;;  %4920 = vadd.xlane.f32.xlu0 %v4919_v4 }
 0xe5e   :  { %v4721_v21 = vpop.xlane.xlu0 %4720 }
 0xe5f   :  { %v5362_v33 = vrot.slane %v4721_v21, %v10507_v18 }
 0xe60   :  { %4995 = vadd.xlane.f32.xlu1 %v4994_v46 }
 0xe61   :  { %v5363_v23 = vsel %vm1239_vm10, %v5362_v33, %v5358_v41  ;;  %v9969_v30 = vpop.xlane.xlu1 %4735  ;;  %4962 = vadd.xlane.f32.xlu0 %v4961_v8  ;;  %v4798_v33 = vmul.f32 %v9531_v38, %v10531_v0 }
 0xe62   :  { %v4619_v19 = vpop.xlane.xlu0 %4618  ;;  %v5368_v22 = vsel %vm10524_vm15, %v5367_v20, %v5363_v23  ;;  %vm10526_vm15 = vcmask 261312  }
 0xe63   :  { %v5197_v57 = vrot.slane %v4619_v19, %v9905_v1  ;;  %v5256_v10 = vsel %vm10526_vm15, %v5255_v25, %v9847_v48  ;;  %v5323_v48 = vrot.slane %v9819_v54, %v10507_v18  ;;  %vm10528_vm15 = vcmask 195712   ;;  %v10529_v54 = vld [vmem:[#allocation29_spill] sm:$0xff]  ;;  %v10532_v19 = vld [vmem:[#allocation30_spill] sm:$0xff] }
 0xe64   :  { %v5261_v40 = vsel %vm5098_vm0, %v5260_v52, %v5256_v10  ;;  %v4797_v13 = vmul.f32 %v9531_v38, %v10529_v54  ;;  %v4970_v23 = vsel %vm2903_vm14, %v4798_v33, 0.0  ;;  %v4799_v25 = vmul.f32 %v9531_v38, %v10532_v19  ;;  %v10087_v54 = vld [vmem:[%s10359_s8 + $0x20] sm:$0xff] }
 0xe65   :  { %v5198_v5 = vsel %vm5119_vm12, %v5197_v57, %v5193_v58  ;;  %v9982_v47 = vpop.xlane.xlu1 %4812  ;;  %4923 = vadd.xlane.f32.xlu0 %v4922_v55  ;;  %v5324_v59 = vsel %vm1239_vm10, %v5323_v48, %v5319_v50  ;;  %v6662_v19 = vmov 32  }
 0xe66   :  { %v5395_v27 = vsel %vm456_vm2, %v5198_v5, %v5394_v45  ;;  %v4661_v2 = vpop.xlane.xlu0 %4660  ;;  %v4964_v45 = vsel %vm2903_vm14, %v4796_v31, 0.0  ;;  %v5329_v11 = vsel %vm10528_vm15, %v5328_v17, %v5324_v59  ;;  %v4967_v41 = vsel %vm2903_vm14, %v4797_v13, 0.0  ;;  %v10533_v31 = vld [vmem:[#allocation31_spill] sm:$0xff]  ;;  %v10092_v13 = vld [vmem:[%s10359_s8 + $0x18] sm:$0xff]  ;;  %6450 = vset.pattern.permute.xlu0 %v6662_v19 }
 0xe67   :  { %v5265_v14 = vrot.slane %v4661_v2, %v9744_v53  ;;  %v4973_v43 = vsel %vm2903_vm14, %v4799_v25, 0.0  ;;  %v4807_v5 = vmul.f32 %v9531_v38, %v10533_v31  ;;  %v10053_v38 = vld [vmem:[%s10359_s8 + $0x38] sm:$0xff]  ;;  %v5348_v17 = vrot.slane %v9956_v28, %v9765_v62 }
 0xe68   :  { %6370 = vmatpush3.msra.mxu1 %v10053_v38 }
 0xe69   :  { %v5266_v3 = vsel %vm5105_vm13, %v5265_v14, %v5261_v40  ;;  %v10000_v12 = vpop.xlane.xlu1 %4836  ;;  %4965 = vadd.xlane.f32.xlu0 %v4964_v45  ;;  %v4997_v14 = vsel %vm2903_vm14, %v4807_v5, 0.0  ;;  %v10534_v40 = vmov 0.0  }
 0xe6a   :  { %v4703_v60 = vpop.xlane.xlu0 %4702  ;;  %v5271_v15 = vsel %vm5112_vm11, %v5270_v51, %v5266_v3  ;;  %6371 = vmatprep.subr.mxu1 %v10534_v40  ;;  %v10067_v3 = vld [vmem:[%s10359_s8 + $0x30] sm:$0xff] }
 0xe6b   :  { %v5333_v56 = vrot.slane %v4703_v60, %v10509_v7  ;;  %v10072_v60 = vld [vmem:[%s10359_s8 + $0x28] sm:$0xff]  ;;  %6372 = vmatpush3.msra.mxu1 %v10067_v3 }
 0xe6c   :  { %6373 = vmatprep.subr.mxu1 %v10534_v40 }
 0xe6d   :  { %v5334_v44 = vsel %vm10530_vm8, %v5333_v56, %v5329_v11  ;;  %v10012_v4 = vpop.xlane.xlu1 %4839  ;;  %4926 = vadd.xlane.f32.xlu0 %v4925_v34  ;;  %6374 = vmatpush3.msra.mxu1 %v10072_v60 }
 0xe6e   :  { %v4643_v16 = vpop.xlane.xlu0 %4642  ;;  %v5339_v37 = vsel %vm5098_vm0, %v5338_v24, %v5334_v44  ;;  %6375 = vmatprep.subr.mxu1 %v10534_v40 }
 0xe6f   :  { %v5236_v21 = vrot.slane %v4643_v16, %v9905_v1  ;;  %6376 = vmatpush3.msra.mxu1 %v10087_v54  ;;  %v5387_v16 = vrot.slane %v9969_v30, %v9765_v62  ;;  %v10114_v30 = vld [vmem:[%s10359_s8 + $0x8] sm:$0xff] }
 0xe70   :  { %6377 = vmatprep.subr.mxu1 %v10534_v40 }
 0xe71   :  { %v5237_v46 = vsel %vm5119_vm12, %v5236_v21, %v9881_v39  ;;  %v10021_v20 = vpop.xlane.xlu1 %4860  ;;  %4968 = vadd.xlane.f32.xlu0 %v4967_v41  ;;  %6378 = vmatpush3.msra.mxu1 %v10092_v13 }
 0xe72   :  { %v5396_v35 = vsel %vm458_vm3, %v5237_v46, %v5395_v27  ;;  %v4685_v8 = vpop.xlane.xlu0 %4684  ;;  %6379 = vmatprep.subr.mxu1 %v10534_v40  ;;  %v10109_v46 = vld [vmem:[%s10359_s8 + $0x10] sm:$0xff] }
 0xe73   :  { %v5304_v61 = vrot.slane %v4685_v8, %v9744_v53  ;;  %6380 = vmatpush3.msra.mxu1 %v10109_v46 }
 0xe74   :  { %6381 = vmatprep.subr.mxu1 %v10534_v40 }
 0xe75   :  { %v5305_v57 = vsel %vm5105_vm13, %v5304_v61, %v9899_v36  ;;  %v10032_v39 = vpop.xlane.xlu1 %4818  ;;  %4971 = vadd.xlane.f32.xlu0 %v4970_v23  ;;  %v10122_v61 = vld [vmem:[%s10359_s8] sm:$0xff]  ;;  %6382 = vmatpush3.msra.mxu1 %v10114_v30  ;;  %s6663_s8 = smov 95  }
 0xe76   :  { %v4727_v58 = vpop.xlane.xlu0 %4726  ;;  %v5310_v52 = vsel %vm5112_vm11, %v5309_v42, %v5305_v57  ;;  %6383 = vmatprep.subr.mxu1 %v10534_v40 }
 0xe77   :  { %v5372_v55 = vrot.slane %v4727_v58, %v10509_v7  ;;  %6384 = vmatpush3.msra.mxu1 %v10122_v61 }
 0xe78   :  { %6412 = vmatprep.subr.mxu1 %v10534_v40 }
 0xe79   :  { %v5373_v27 = vsel %vm10530_vm8, %v5372_v55, %v5368_v22  ;;  %v10042_v2 = vpop.xlane.xlu1 %4863  ;;  %4974 = vadd.xlane.f32.xlu0 %v4973_v43  ;;  %vm10535_vm8 = vmmov %vm10528_vm15 }
 0xe7a   :  { %v4667_v36 = vpop.xlane.xlu0 %4666  ;;  %v5378_v10 = vsel %vm5098_vm0, %v5377_v9, %v5373_v27  ;;  %v5474_v9 = vrot.slane %v9982_v47, %v10507_v18 }
 0xe7b   :  { %v5275_v50 = vrot.slane %v4667_v36, %v9905_v1  ;;  %v5513_v36 = vrot.slane %v10000_v12, %v10507_v18 }
 0xe7d   :  { %v5276_v49 = vsel %vm5119_vm12, %v5275_v50, %v5271_v15  ;;  %v10048_v29 = vpop.xlane.xlu1 %4884  ;;  %4998 = vadd.xlane.f32.xlu0 %v4997_v14  ;;  %v5518_v50 = vrot.slane %v10012_v4, %v10508_v32  ;;  %v5552_v4 = vrot.slane %v10021_v20, %v10507_v18 }
 0xe7e   :  { %v5397_v22 = vsel %vm460_vm4, %v5276_v49, %v5396_v35  ;;  %v4709_v6 = vpop.xlane.xlu0 %4708 }
 0xe7f   :  { %v5343_v51 = vrot.slane %v4709_v6, %v9744_v53 }
 0xe81   :  { %v5344_v45 = vsel %vm5105_vm13, %v5343_v51, %v5339_v37  ;;  %v10062_v48 = vpop.xlane.xlu1 %4845  ;;  %v5484_v51 = vrot.slane %v10032_v39, %v10509_v7 }
 0xe82   :  { %v4691_v15 = vpop.xlane.xlu0 %4690  ;;  %v5349_v59 = vsel %vm5112_vm11, %v5348_v17, %v5344_v45 }
 0xe83   :  { %v5314_v28 = vrot.slane %v4691_v15, %v9905_v1 }
 0xe85   :  { %v5315_v56 = vsel %vm5119_vm12, %v5314_v28, %v5310_v52  ;;  %v10080_v24 = vpop.xlane.xlu1 %4887  ;;  %v5557_v28 = vrot.slane %v10042_v2, %v10508_v32  ;;  %v5591_v2 = vrot.slane %v10048_v29, %v10507_v18 }
 0xe86   :  { %v5398_v11 = vsel %vm462_vm5, %v5315_v56, %v5397_v22  ;;  %v4733_v34 = vpop.xlane.xlu0 %4732 }
 0xe87   :  { %v5382_v44 = vrot.slane %v4733_v34, %v9744_v53 }
 0xe89   :  { %v5383_v37 = vsel %vm5105_vm13, %v5382_v44, %v5378_v10  ;;  %v10100_v21 = vpop.xlane.xlu1 %4908 }
 0xe8a   :  { %v4715_v41 = vpop.xlane.xlu0 %4714  ;;  %v5388_v0 = vsel %vm5112_vm11, %v5387_v16, %v5383_v37  ;;  %v5528_v16 = vrot.slane %v10062_v48, %v9738_v26 }
 0xe8b   :  { %v5353_v33 = vrot.slane %v4715_v41, %v9905_v1 }
 0xe8d   :  { %v5354_v35 = vsel %vm5119_vm12, %v5353_v33, %v5349_v59  ;;  %v4825_v8 = vpop.xlane.xlu1 %4824 }
 0xe8e   :  { %v5399_v42 = vsel %vm464_vm6, %v5354_v35, %v5398_v11  ;;  %v4739_v23 = vpop.xlane.xlu0 %4738  ;;  %v5596_v35 = vrot.slane %v10080_v24, %v10508_v32 }
 0xe8f   :  { %v5392_v25 = vrot.slane %v4739_v23, %v9905_v1 }
 0xe91   :  { %v5393_v57 = vsel %vm5119_vm12, %v5392_v25, %v5388_v0  ;;  %v4870_v58 = vpop.xlane.xlu1 %4869 }
 0xe92   :  { %v10133_v52 = vsel %vm466_vm7, %v5393_v57, %v5399_v42  ;;  %v4810_v55 = vpop.xlane.xlu0 %4809  ;;  %v5567_v24 = vrot.slane %v4870_v58, %v9738_v26 }
 0xe93   :  { %v5470_v43 = vrot.slane %v4810_v55, %v6939_v63  ;;  %v5494_v55 = vrot.slane %v4825_v8, %v9744_v53 }
 0xe95   :  { %v5475_v31 = vsel %vm1239_vm10, %v5474_v9, %v5470_v43  ;;  %v4912_v5 = vpop.xlane.xlu1 %4911 }
 0xe96   :  { %v4834_v27 = vpop.xlane.xlu0 %4833 }
 0xe97   :  { %v5509_v10 = vrot.slane %v4834_v27, %v6939_v63 }
 0xe99   :  { %v5514_v14 = vsel %vm1239_vm10, %v5513_v36, %v5509_v10  ;;  %v10145_v49 = vpop.xlane.xlu1 %4932 }
 0xe9a   :  { %v4816_v22 = vpop.xlane.xlu0 %4815  ;;  %v5519_v47 = vsel %vm10528_vm15, %v5518_v50, %v5514_v14  ;;  %vm10537_vm15 = vmmov %vm10535_vm8 }
 0xe9b   :  { %v5479_v6 = vrot.slane %v4816_v22, %v10508_v32  ;;  %v5630_v22 = vrot.slane %v10100_v21, %v10507_v18 }
 0xe9d   :  { %v5480_v17 = vsel %vm10535_vm8, %v5479_v6, %v5475_v31  ;;  %v4852_v12 = vpop.xlane.xlu1 %4851 }
 0xe9e   :  { %v4858_v45 = vpop.xlane.xlu0 %4857  ;;  %v5485_v15 = vsel %vm10536_vm9, %v5484_v51, %v5480_v17 }
 0xe9f   :  { %v5548_v59 = vrot.slane %v4858_v45, %v6939_v63 }
 0xea1   :  { %v5553_v56 = vsel %vm1239_vm10, %v5552_v4, %v5548_v59  ;;  %v4894_v11 = vpop.xlane.xlu1 %4893 }
 0xea2   :  { %v4843_v34 = vpop.xlane.xlu0 %4842  ;;  %v5558_v39 = vsel %vm10537_vm15, %v5557_v28, %v5553_v56  ;;  %vm10538_vm15 = vmmov %vm10536_vm9  ;;  %v5606_v56 = vrot.slane %v4894_v11, %v9738_v26 }
 0xea3   :  { %v5523_v44 = vrot.slane %v4843_v34, %v10509_v7 }
 0xea5   :  { %v5524_v37 = vsel %vm10536_vm9, %v5523_v44, %v5519_v47  ;;  %v10164_v41 = vpop.xlane.xlu1 %4935  ;;  %v5635_v47 = vrot.slane %v4912_v5, %v10508_v32  ;;  %vm10539_vm9 = vmmov %vm10535_vm8 }
 0xea6   :  { %v4882_v20 = vpop.xlane.xlu0 %4881  ;;  %v5529_v0 = vsel %vm5098_vm0, %v5528_v16, %v5524_v37 }
 0xea7   :  { %v5587_v33 = vrot.slane %v4882_v20, %v6939_v63 }
 0xea9   :  { %v5592_v42 = vsel %vm1239_vm10, %v5591_v2, %v5587_v33  ;;  %v10173_v23 = vpop.xlane.xlu1 %4956 }
 0xeaa   :  { %v4822_v48 = vpop.xlane.xlu0 %4821  ;;  %v5597_v25 = vsel %vm10535_vm8, %v5596_v35, %v5592_v42  ;;  %vm10540_vm8 = vmmov %vm10538_vm15 }
 0xeab   :  { %v5489_v57 = vrot.slane %v4822_v48, %v9738_v26 }
 0xead   :  { %v5490_v9 = vsel %vm5098_vm0, %v5489_v57, %v5485_v15  ;;  %v4831_v43 = vpop.xlane.xlu1 %4830  ;;  %v5538_v15 = vrot.slane %v4852_v12, %v9765_v62  ;;  %v5669_v12 = vrot.slane %v10145_v49, %v10507_v18 }
 0xeae   :  { %v4867_v29 = vpop.xlane.xlu0 %4866  ;;  %v5495_v31 = vsel %vm5105_vm13, %v5494_v55, %v5490_v9  ;;  %v5504_v49 = vrot.slane %v4831_v43, %v9905_v1 }
 0xeaf   :  { %v5562_v27 = vrot.slane %v4867_v29, %v10509_v7 }
 0xeb1   :  { %v5563_v36 = vsel %vm10538_vm15, %v5562_v27, %v5558_v39  ;;  %v4876_v10 = vpop.xlane.xlu1 %4875  ;;  %vm10542_vm15 = vmmov %vm10540_vm8 }
 0xeb2   :  { %v4906_v50 = vpop.xlane.xlu0 %4905  ;;  %v5568_v14 = vsel %vm5098_vm0, %v5567_v24, %v5563_v36 }
 0xeb3   :  { %v5626_v8 = vrot.slane %v4906_v50, %v6939_v63 }
 0xeb5   :  { %v5631_v6 = vsel %vm1239_vm10, %v5630_v22, %v5626_v8  ;;  %v10189_v51 = vpop.xlane.xlu1 %4917 }
 0xeb6   :  { %v4849_v17 = vpop.xlane.xlu0 %4848  ;;  %v10192_v58 = vsel %vm10539_vm9, %v5635_v47, %v5631_v6 }
 0xeb7   :  { %v5533_v45 = vrot.slane %v4849_v17, %v9744_v53 }
 0xeb9   :  { %v5534_v4 = vsel %vm5105_vm13, %v5533_v45, %v5529_v0  ;;  %v10197_v59 = vpop.xlane.xlu1 %4959 }
 0xeba   :  { %v4891_v21 = vpop.xlane.xlu0 %4890  ;;  %v5539_v28 = vsel %vm5112_vm11, %v5538_v15, %v5534_v4  ;;  %v5577_v4 = vrot.slane %v4876_v10, %v9765_v62 }
 0xebb   :  { %v5601_v5 = vrot.slane %v4891_v21, %v10509_v7 }
 0xebd   :  { %v5602_v34 = vsel %vm10540_vm8, %v5601_v5, %v5597_v25  ;;  %v10203_v39 = vpop.xlane.xlu1 %4980 }
 0xebe   :  { %v4930_v44 = vpop.xlane.xlu0 %4929  ;;  %v5607_v16 = vsel %vm5098_vm0, %v5606_v56, %v5602_v34 }
 0xebf   :  { %v5665_v37 = vrot.slane %v4930_v44, %v6939_v63 }
 0xec1   :  { %v5670_v20 = vsel %vm1239_vm10, %v5669_v12, %v5665_v37  ;;  %v4900_v2 = vpop.xlane.xlu1 %4899 }
 0xec2   :  { %v4828_v0 = vpop.xlane.xlu0 %4827  ;;  %v5616_v43 = vrot.slane %v4900_v2, %v9765_v62 }
 0xec3   :  { %v5499_v11 = vrot.slane %v4828_v0, %v9765_v62 }
 0xec5   :  { %v4942_v35 = vpop.xlane.xlu1 %4941  ;;  %v5500_v57 = vsel %vm5112_vm11, %v5499_v11, %v5495_v31 }
 0xec6   :  { %v4873_v33 = vpop.xlane.xlu0 %4872  ;;  %v5505_v29 = vsel %vm5119_vm12, %v5504_v49, %v5500_v57 }
 0xec7   :  { %v5572_v6 = vrot.slane %v4873_v33, %v9744_v53  ;;  %v5674_v33 = vrot.slane %v10164_v41, %v10508_v32  ;;  %v5645_v41 = vrot.slane %v10189_v51, %v9738_v26 }
 0xec9   :  { %v10213_v25 = vpop.xlane.xlu1 %4983  ;;  %v5573_v45 = vsel %vm5105_vm13, %v5572_v6, %v5568_v14 }
 0xeca   :  { %v4915_v42 = vpop.xlane.xlu0 %4914  ;;  %v5578_v34 = vsel %vm5112_vm11, %v5577_v4, %v5573_v45 }
 0xecd   :  { %v4903_v27 = vpop.xlane.xlu1 %4902 }
 0xece   :  { %v10211_v48 = vpop.xlane.xlu0 %4953  ;;  %v5621_v56 = vrot.slane %v4903_v27, %v9905_v1 }
 0xed1   :  { %v4945_v8 = vpop.xlane.xlu1 %4944 }
 0xed2   :  { %v4855_v55 = vpop.xlane.xlu0 %4854 }
 0xed3   :  { %v5543_v9 = vrot.slane %v4855_v55, %v9905_v1  ;;  %v5640_v55 = vrot.slane %v4915_v42, %v10509_v7  ;;  %v5689_v42 = vrot.slane %v4945_v8, %v9744_v53 }
 0xed5   :  { %v5544_v24 = vsel %vm5119_vm12, %v5543_v9, %v5539_v28  ;;  %v10226_v15 = vpop.xlane.xlu1 %4986 }
 0xed6   :  { %v5779_v36 = vsel %vm454_vm1, %v5544_v24, %v5505_v29  ;;  %v4897_v50 = vpop.xlane.xlu0 %4896  ;;  %vm10541_vm1 = vmmov %vm10539_vm9  ;;  %v5684_v29 = vrot.slane %v4942_v35, %v9738_v26 }
 0xed7   :  { %v5611_v47 = vrot.slane %v4897_v50, %v9744_v53  ;;  %v5675_v49 = vsel %vm10541_vm1, %v5674_v33, %v5670_v20 }
 0xed9   :  { %v5612_v17 = vsel %vm5105_vm13, %v5611_v47, %v5607_v16  ;;  %v4948_v37 = vpop.xlane.xlu1 %4947 }
 0xeda   :  { %v4939_v22 = vpop.xlane.xlu0 %4938  ;;  %v5617_v28 = vsel %vm5112_vm11, %v5616_v43, %v5612_v17 }
 0xedb   :  { %v5622_v16 = vsel %vm5119_vm12, %v5621_v56, %v5617_v28  ;;  %v5679_v2 = vrot.slane %v4939_v22, %v10509_v7  ;;  %v5704_v28 = vrot.slane %v10211_v48, %v6939_v63 }
 0xedd   :  { %v4990_v11 = vpop.xlane.xlu1 %4989  ;;  %v5680_v9 = vsel %vm10542_vm15, %v5679_v2, %v5675_v49  ;;  %v5713_v2 = vrot.slane %v10197_v59, %v10508_v32 }
 0xede   :  { %v4978_v31 = vpop.xlane.xlu0 %4977 }
 0xedf   :  { %v5743_v51 = vrot.slane %v4978_v31, %v6939_v63  ;;  %v5708_v31 = vrot.slane %v10173_v23, %v10507_v18 }
 0xee1   :  { %v4951_v50 = vpop.xlane.xlu1 %4950  ;;  %v5709_v63 = vsel %vm1239_vm10, %v5708_v31, %v5704_v28 }
 0xee2   :  { %v4879_v21 = vpop.xlane.xlu0 %4878  ;;  %v5699_v35 = vrot.slane %v4951_v50, %v9905_v1 }
 0xee3   :  { %v5582_v5 = vrot.slane %v4879_v21, %v9905_v1 }
 0xee5   :  { %v5583_v44 = vsel %vm5119_vm12, %v5582_v5, %v5578_v34 }
 0xee6   :  { %v5780_v12 = vsel %vm456_vm2, %v5583_v44, %v5779_v36  ;;  %v4921_v14 = vpop.xlane.xlu0 %4920  ;;  %vm10543_vm2 = vmmov %vm10540_vm8  ;;  %v5685_v36 = vsel %vm5098_vm0, %v5684_v29, %v5680_v9  ;;  %v5747_v44 = vrot.slane %v10203_v39, %v10507_v18  ;;  %v5757_v18 = vrot.slane %v10226_v15, %v10509_v7 }
 0xee7   :  { %v5781_v0 = vsel %vm458_vm3, %v5622_v16, %v5780_v12  ;;  %v5641_v24 = vsel %vm10543_vm2, %v5640_v55, %v10192_v58  ;;  %v5650_v22 = vrot.slane %v4921_v14, %v9744_v53  ;;  %v5690_v47 = vsel %vm5105_vm13, %v5689_v42, %v5685_v36  ;;  %v4993_v16 = vpop.xlane.xlu1 %4992  ;;  %vm10544_vm3 = vmmov %vm10541_vm1  ;;  %v5009_v42 = vld [vmem:[#allocation2] sm:$0xff] }
 0xee8   :  { %v5646_v6 = vsel %vm5098_vm0, %v5645_v41, %v5641_v24  ;;  %v5694_v58 = vrot.slane %v4948_v37, %v9765_v62  ;;  %v5748_v14 = vsel %vm1239_vm10, %v5747_v44, %v5743_v51  ;;  %v5752_v37 = vrot.slane %v10213_v25, %v10508_v32  ;;  %vm10547_vm10 = vmmov %vm10543_vm2 }
 0xee9   :  { %v5651_v43 = vsel %vm5105_vm13, %v5650_v22, %v5646_v6  ;;  %v5767_v32 = vrot.slane %v4993_v16, %v9744_v53 }
 0xeea   :  { %v4963_v10 = vpop.xlane.xlu0 %4962  ;;  %v5695_v8 = vsel %vm5112_vm11, %v5694_v58, %v5690_v47  ;;  %v5753_v33 = vsel %vm10544_vm3, %v5752_v37, %v5748_v14 }
 0xeeb   :  { %v5700_v5 = vsel %vm5119_vm12, %v5699_v35, %v5695_v8  ;;  %v5718_v48 = vrot.slane %v4963_v10, %v10509_v7  ;;  %v4996_v23 = vpop.xlane.xlu1 %4995  ;;  %v5758_v9 = vsel %vm10547_vm10, %v5757_v18, %v5753_v33  ;;  %v6257_v33 = vld [vmem:[%s10352_s1 + $0x8] sm:$0xff] }
 0xeec   :  { %v5772_v7 = vrot.slane %v4996_v23, %v9765_v62 }
 0xeee   :  { %v4924_v57 = vpop.xlane.xlu0 %4923 }
 0xeef   :  { %v5655_v20 = vrot.slane %v4924_v57, %v9765_v62 }
 0xef1   :  { %v5656_v4 = vsel %vm5112_vm11, %v5655_v20, %v5651_v43  ;;  %v6002_v20 = vld [vmem:[#allocation2 + $0x8] sm:$0xff] }
 0xef2   :  { %v4966_v27 = vpop.xlane.xlu0 %4965 }
 0xef3   :  { %v5723_v39 = vrot.slane %v4966_v27, %v9738_v26  ;;  %v5762_v27 = vrot.slane %v4990_v11, %v9738_v26  ;;  %v5402_v26 = vsub.f32 %v5009_v42, %v10133_v52 }
 0xef5   :  { %v5763_v36 = vsel %vm5098_vm0, %v5762_v27, %v5758_v9 }
 0xef6   :  { %v4927_v17 = vpop.xlane.xlu0 %4926  ;;  %v5768_v41 = vsel %vm5105_vm13, %v5767_v32, %v5763_v36 }
 0xef7   :  { %v5660_v45 = vrot.slane %v4927_v17, %v9905_v1  ;;  %v5773_v47 = vsel %vm5112_vm11, %v5772_v7, %v5768_v41 }
 0xef9   :  { %v5661_v21 = vsel %vm5119_vm12, %v5660_v45, %v5656_v4  ;;  %v10549_v4 = vld [vmem:[#allocation18_spill] sm:$0xff] }
 0xefa   :  { %v5782_v56 = vsel %vm460_vm4, %v5661_v21, %v5781_v0  ;;  %v4969_v34 = vpop.xlane.xlu0 %4968  ;;  %vm10545_vm4 = vmmov %vm10541_vm1 }
 0xefb   :  { %v5783_v12 = vsel %vm462_vm5, %v5700_v5, %v5782_v56  ;;  %v5728_v57 = vrot.slane %v4969_v34, %v9744_v53  ;;  %v5714_v25 = vsel %vm10545_vm4, %v5713_v2, %v5709_v63  ;;  %vm10546_vm5 = vmmov %vm10543_vm2  ;;  %v5861_v5 = vld [vmem:[%s10352_s1] sm:$0xff]  ;;  %s6664_s1 = smov [#allocation11]  }
 0xefc   :  { %v5719_v10 = vsel %vm10546_vm5, %v5718_v48, %v5714_v25  ;;  %s6219_s17 = sshll.u32 %s6664_s1, 4  ;;  %s6220_s17 = int_to_ptr.vmem [resolvable:$true] %s6219_s17 }
 0xefd   :  { %v5724_v59 = vsel %vm5098_vm0, %v5723_v39, %v5719_v10  ;;  %vm10548_vm0 = vmmov 0   ;;  %s6612_s20 = scalar_lea.vmem %s6220_s17, 256  ;;  %p6617_p7 = scmp.lt.s32.totalorder %s6220_s17, %s6220_s17 }
 0xefe   :  { %v4972_v0 = vpop.xlane.xlu0 %4971  ;;  %v5729_v15 = vsel %vm5105_vm13, %v5728_v57, %v5724_v59  ;;  %p6613_p6 = scmp.ne.s32.totalorder %s6220_s17, %s6612_s20  ;;  %p6618_p8 = scmp.lt.s32.totalorder %s6612_s20, %s6612_s20 }
 0xeff   :  { %v5733_v55 = vrot.slane %v4972_v0, %v9765_v62  ;;  %v6003_v62 = vsub.f32 %v6002_v20, %v10133_v52 }
 0xf00   :  { %p6619_p9 = por %p6618_p8, %p6617_p7 }
 0xf01   :  { %v5734_v24 = vsel %vm5112_vm11, %v5733_v55, %v5729_v15 }
 0xf02   :  { %v4975_v49 = vpop.xlane.xlu0 %4974  ;;  %p6620_p10 = pnand %p6619_p9, %p6613_p6 }
 0xf03   :  { %v5738_v29 = vrot.slane %v4975_v49, %v9905_v1 }
 0xf05   :  { %v5739_v50 = vsel %vm5119_vm12, %v5738_v29, %v5734_v24 }
 0xf06   :  { %v4999_v22 = vpop.xlane.xlu0 %4998  ;;  %v5784_v11 = vsel %vm464_vm6, %v5739_v50, %v5783_v12 }
 0xf07   :  { %v5777_v53 = vrot.slane %v4999_v22, %v9905_v1 }
 0xf09   :  { %v5778_v35 = vsel %vm5119_vm12, %v5777_v53, %v5773_v47  ;;  %vm10553_vm12 = vcmask 261120  }
 0xf0a   :  { %v5785_v6 = vsel %vm466_vm7, %v5778_v35, %v5784_v11  ;;  %vm10550_vm7 = vcmask 64512   ;;  %vm10557_vm15 = vmmov %vm10553_vm12 }
 0xf0b   :  { %v5787_v17 = vmul.f32 %v5785_v6, %v5402_v26  ;;  %v6004_v58 = vmul.f32 %v6003_v62, %v5785_v6  ;;  %vm10551_vm13 = vmmov %vm10550_vm7 }
 0xf0c   :  { %vm10552_vm11 = vmmov %vm10550_vm7 }
 0xf0d   :  { %6386 = vmatmul.mubr.msk.f32.vlgmr.msra.gmra.mxu1 %vm2903_vm14, %v5787_v17  ;;  %vm10554_vm9 = vmmov %vm10550_vm7 }
 0xf0e   :  { %6414 = vmatprep.mubr.msk.f32.mxu1 %vm10548_vm0, %v10534_v40  ;;  %vm10555_vm8 = vmmov %vm10550_vm7 }
 0xf0f   :  { %vm10556_vm1 = vmmov %vm10550_vm7 }
 0xfcd   :  { %v5857_v1 = vpop.f32.mrf.mxu1 }
 0xfce   :  { %5899 = vperm.xlu0 %6450, %v5857_v1   ;;  %5863 = vrot.lane.b32.xlu1 %v5857_v1, %s6663_s8 }
 0xfcf   :  { %6389 = vmatpush3.msra.mxu0 %v5857_v1  ;;  %v6387_v52 = vpop.f32.mrf.mxu1 }
 0xfd0   :  { %6393 = vmatprep.subr.mxu0 %v10534_v40 }
0x1040   :  { %v5864_v43 = vpop.permute.xlu1 %5863 }
0x1041   :  { %5866 = vxpose.xlu1.b32.start.end [1/1] (short) (narrow) %v5864_v43, 8 }
0x1049   :  { %v5900_v8 = vpop.permute.xlu0 %5899 }
0x105f   :  { %6451 = vset.pattern.permute.xlu1 %v6662_v19 }
0x10bd   :  { %v5882_v45 = vpop.trf.xlu1 }
0x10be   :  { %v5905_v51 = vrot.slane %v5882_v45, %v10549_v4 }
0x10c0   :  { %v5906_v21 = vadd.f32 %v5905_v51, %v5900_v8 }
0x10c2   :  { %v5908_v28 = vmul.f32 0.2, %v5906_v21  ;;  %vm5907_vm6 = vcmp.ge.f32.partialorder %v5906_v21, 0.0 }
0x10c4   :  { %v5909_v56 = vsel %vm5907_vm6, %v5906_v21, %v5908_v28 }
0x10c5   :  { %v5910_v34 = vmul.f32 %v5909_v56, %v5861_v5 }
0x10c7   :  { %v5911_v44 = vsel %vm10550_vm7, %v5910_v34, -inf }
0x10c8   :  { %5912 = vmax.xlane.f32.xlu0 %v5911_v44 }
0x1151   :  { %v5913_v16 = vpop.xlane.xlu0 %5912 }
0x1152   :  { %v5914_v12 = vsub.f32 %v5910_v34, %v5913_v16 }
0x1154   :  { %v5915_v31 = vmul.f32 1.442695, %v5914_v12 }
0x1156   :  { %6524 = vpow2.f32 %v5915_v31 }
0x1163   :  { %v6525_v19 = vpop.eup %6524 }
0x1164   :  { %v5917_v14 = vsel %vm10551_vm13, %v6525_v19, 0.0 }
0x1165   :  { %5918 = vadd.xlane.f32.xlu1 %v5917_v14 }
0x11ee   :  { %v5919_v37 = vpop.xlane.xlu1 %5918 }
0x11ef   :  { %6526 = vrcp.f32 %v5919_v37 }
0x11fc   :  { %v6527_v63 = vpop.eup %6526 }
0x11fd   :  { %v5921_v48 = vmul.f32 %v6527_v63, %v6525_v19 }
0x11ff   :  { %6391 = vmatmul.mubr.msk.f32.vlgmr.msra.gmra.mxu0 %vm10552_vm11, %v5921_v48 }
0x1200   :  { %6394 = vmatpush3.msra.mxu0 %v10053_v38  ;;  %6409 = vmatprep.mubr.msk.f32.mxu0 %vm10548_vm0, %v10534_v40  ;;  %v6254_v38 = vld [vmem:[#allocation9] ss:$0 sm:$0xff] }
0x1201   :  { %6395 = vmatprep.subr.mxu0 %v10534_v40 }
0x1202   :  { %6396 = vmatpush3.msra.mxu0 %v10067_v3 }
0x1203   :  { %6397 = vmatprep.subr.mxu0 %v10534_v40 }
0x1204   :  { %6398 = vmatpush3.msra.mxu0 %v10072_v60 }
0x1205   :  { %6399 = vmatprep.subr.mxu0 %v10534_v40 }
0x1206   :  { %6400 = vmatpush3.msra.mxu0 %v10087_v54 }
0x1207   :  { %6401 = vmatprep.subr.mxu0 %v10534_v40 }
0x1208   :  { %6402 = vmatpush3.msra.mxu0 %v10092_v13 }
0x1209   :  { %6403 = vmatprep.subr.mxu0 %v10534_v40 }
0x120a   :  { %6404 = vmatpush3.msra.mxu0 %v10109_v46 }
0x120b   :  { %6405 = vmatprep.subr.mxu0 %v10534_v40 }
0x120c   :  { %6406 = vmatpush3.msra.mxu0 %v10114_v30 }
0x120d   :  { %6407 = vmatprep.subr.mxu0 %v10534_v40 }
0x120e   :  { %6408 = vmatpush3.msra.mxu0 %v10122_v61 }
0x120f   :  { %6410 = vmatmul.mubr.msk.f32.vlgmr.msra.gmra.mxu0 %vm2903_vm14, %v6004_v58 }
0x12bf   :  { %v5997_v3 = vpop.f32.mrf.mxu0 }
0x12c0   :  { %v5998_v60 = vadd.f32 %v6254_v38, %v5997_v3 }
0x12c1   :  { %v6392_v54 = vpop.f32.mrf.mxu0 }
0x12c2   :  { %6001 = vst.msk [vmem:[#allocation11] sm:$0xff] %vm10553_vm12, %v5998_v60 }
0x12cf   :  { %v6074_v13 = vpop.f32.mrf.mxu0 }
0x12d0   :  { %6116 = vperm.xlu1 %6451, %v6074_v13   ;;  %6080 = vrot.lane.b32.xlu0 %v6074_v13, %s6663_s8 }
0x12d1   :  { %6413 = vmatpush3.msra.mxu1 %v6074_v13  ;;  %v6411_v46 = vpop.f32.mrf.mxu0 }
0x1342   :  { %v6081_v0 = vpop.permute.xlu0 %6080 }
0x1343   :  { %6083 = vxpose.xlu0.b32.start.end [1/1] (short) (narrow) %v6081_v0, 8 }
0x134b   :  { %v6117_v61 = vpop.permute.xlu1 %6116 }
0x13bf   :  { %v6099_v30 = vpop.trf.xlu0 }
0x13c0   :  { %v6122_v40 = vrot.slane %v6099_v30, %v10549_v4 }
0x13c2   :  { %v6123_v2 = vadd.f32 %v6122_v40, %v6117_v61 }
0x13c4   :  { %v6125_v39 = vmul.f32 0.2, %v6123_v2  ;;  %vm6124_vm14 = vcmp.ge.f32.partialorder %v6123_v2, 0.0 }
0x13c6   :  { %v6126_v57 = vsel %vm6124_vm14, %v6123_v2, %v6125_v39 }
0x13c7   :  { %v6127_v18 = vmul.f32 %v6257_v33, %v6126_v57 }
0x13c9   :  { %v6128_v23 = vsel %vm10554_vm9, %v6127_v18, -inf }
0x13ca   :  { %6129 = vmax.xlane.f32.xlu1 %v6128_v23 }
0x1453   :  { %v6130_v25 = vpop.xlane.xlu1 %6129 }
0x1454   :  { %v6131_v55 = vsub.f32 %v6127_v18, %v6130_v25 }
0x1456   :  { %v6132_v10 = vmul.f32 1.442695, %v6131_v55 }
0x1458   :  { %6528 = vpow2.f32 %v6132_v10 }
0x1465   :  { %v6529_v49 = vpop.eup %6528 }
0x1466   :  { %v6134_v9 = vsel %vm10555_vm8, %v6529_v49, 0.0 }
0x1467   :  { %6135 = vadd.xlane.f32.xlu0 %v6134_v9 }
0x14f0   :  { %v6136_v32 = vpop.xlane.xlu0 %6135 }
0x14f1   :  { %6530 = vrcp.f32 %v6136_v32 }
0x14fe   :  { %v6531_v59 = vpop.eup %6530 }
0x14ff   :  { %v6138_v29 = vmul.f32 %v6531_v59, %v6529_v49 }
0x1501   :  { %6415 = vmatmul.mubr.msk.f32.vlgmr.msra.gmra.mxu1 %vm10556_vm1, %v6138_v29 }
0x15c1   :  { %v6208_v27 = vpop.f32.mrf.mxu1 }
0x15c2   :  { %v6209_v7 = vadd.f32 %v6254_v38, %v6208_v27 }
0x15c3   :  { %v6416_v15 = vpop.f32.mrf.mxu1 }
0x15c4   :  { %6213 = vst.msk [vmem:[#allocation11 + $0x8] sm:$0xff] %vm10557_vm15, %v6209_v7 }
0x15c5   :  { %6623 = shalt.err (!%p6620_p10)
}
0x15c6   :  { %6225 = dma.vmem_to_hbm [thread:$0]  %s6220_s17, 256, %s10361_s10, [#allocation5], %s6642_s18, %s6642_s18, %s6643_s19  }
0x15c7   :  { %6638 = dma.done.wait [#allocation5], 256  }
0x15c8   :  { %6639 = vsyncadd [#allocation5], 4294967040 }
0x15c9   :  { %6229 = vsyncpa [#allocation4], 1 }
0x15ca   :  { %6230 = vsyncpa [#allocation7], 1 }
0x15cb   :  { %6231 = vsyncpa [#allocation10], 1 }
0x15cc   :  { %6232 = vsyncpa [#allocation5], 1 }

</bundles_post_ra>
